<compile_context>
chip_gen: v6e
topology: v6e:2x2x1
jax: 0.10.0
libtpu: 0.0.40
codegen_flags: <defaults>
</compile_context>

<pallas_src>
import numpy as np

import jax
import jax.numpy as jnp
from jax import lax
from jax.experimental import pallas as pl
from jax.experimental.pallas import tpu as pltpu


# ----------------------------- lane-shift helper -----------------------------

_ROLL_MODE = "jnp_fallback"     # "pltpu_pos" | "pltpu_neg" | "jnp_fallback"


def _init_roll_mode(n):
    """One-time probe (outside jit) of pltpu.roll's wrap direction."""
    global _ROLL_MODE
    try:
        def k(x_ref, o_ref):
            o_ref[...] = pltpu.roll(x_ref[...], 1, axis=1)
        x = jnp.tile(jnp.arange(n, dtype=jnp.float32)[None, :], (8, 1))
        y = np.asarray(jax.device_get(
            pl.pallas_call(k, out_shape=jax.ShapeDtypeStruct((8, n), jnp.float32))(x)))[0]
        if float(y[0]) == float(n - 1) and float(y[1]) == 0.0:
            _ROLL_MODE = "pltpu_pos"       # result[i] = x[i - shift]  (jnp.roll convention)
        elif float(y[0]) == 1.0:
            _ROLL_MODE = "pltpu_neg"       # result[i] = x[i + shift]
        else:
            _ROLL_MODE = "jnp_fallback"
    except Exception:
        _ROLL_MODE = "jnp_fallback"


def _roll_lanes(v, shift, n):
    """result[..., i] = v[..., (i - shift) % n]; shift is a static int in [0, n)."""
    if shift == 0:
        return v
    if _ROLL_MODE == "pltpu_pos":
        return pltpu.roll(v, shift, axis=1)
    if _ROLL_MODE == "pltpu_neg":
        return pltpu.roll(v, (n - shift) % n, axis=1)
    return jnp.roll(v, shift, axis=1)


# ----------------------------- fused Pallas kernel ----------------------------

def _make_upblock_kernel(H, W, cop):
    """Kernel for one batch element.  All upsampled-resolution feature maps are held
    as 4 parity planes (par = h_parity*2 + w_parity) of shape (C, n), n = H*W."""
    n = H * W
    f32 = jnp.float32

    def shift_and_mask(plane, sh, sw, mask_ref):
        # plane[c, h*W+w] -> plane[c, (h+sh)*W + (w+sw)], zero outside the image.
        delta = sh * W + sw
        v = _roll_lanes(plane, (-delta) % n, n)
        if sh == 0 and sw == 0:
            return v
        return v * mask_ref[(sh + 1) * 3 + (sw + 1)]          # (1, n) border mask

    def conv3x3_relu(planes, w_ref, bias, mask_ref):
        """3x3 'same' conv + folded BN + ReLU on parity-major planes.
        planes : list of 4 (Cin_tot, n) f32 planes.
        w_ref  : (cop, 9*Cin_tot) weight, columns ordered [tap t=kh*3+kw][channel].
        Returns 4 (cop, n) output planes; one long-K MXU matmul per output parity."""
        w = w_ref[...].astype(f32)
        cache = {}

        def tap(pi, sh, sw):
            key = (pi, sh, sw)
            if key not in cache:
                cache[key] = shift_and_mask(planes[pi], sh, sw, mask_ref)
            return cache[key]

        outs = []
        for ao in (0, 1):
            for bo in (0, 1):
                slabs = []
                for dh in (-1, 0, 1):
                    ai, sh = (ao + dh) & 1, (ao + dh) >> 1
                    for dw in (-1, 0, 1):
                        bi, sw = (bo + dw) & 1, (bo + dw) >> 1
                        slabs.append(tap(ai * 2 + bi, sh, sw))
                stack = jnp.concatenate(slabs, axis=0)          # (9*Cin_tot, n) im2col
                acc = jnp.dot(w, stack, preferred_element_type=f32)
                outs.append(jnp.maximum(acc + bias, 0.0))
        return outs

    def kernel(mask_ref, x_ref, p_ref, q_ref,
               wd_ref, w1_ref, w2_ref, w3_ref, w4_ref, b_ref, o_ref):
        x = x_ref[0].astype(f32)                                # (cip, n) original-res input

        # ConvTranspose2d(k=2, s=2): one stacked matmul on the ORIGINAL input;
        # row block k holds the parity-(k//2, k%2) output plane (no upsample in HBM).
        y = jnp.dot(wd_ref[...].astype(f32), x, preferred_element_type=f32)   # (4*cop, n)
        bv = b_ref[...]                                         # (5, cop, 1) packed biases
        up = [y[k * cop:(k + 1) * cop, :] + bv[0] for k in range(4)]

        pv = p_ref[0]                                           # (4, cpp, n) skip (parity-major)
        qv = q_ref[0]                                           # (4, cqp, n) q_embed ch-0 plane
        p = [pv[k].astype(f32) for k in range(4)]
        q = [qv[k].astype(f32) for k in range(4)]

        # ConditionalEncoder ConvBlock(2*Co -> Co): cat([up, q_embed]) as channel stack.
        c = conv3x3_relu([jnp.concatenate([up[k], q[k]], axis=0) for k in range(4)],
                         w1_ref, bv[1], mask_ref)
        c = conv3x3_relu(c, w2_ref, bv[2], mask_ref)
        # Final ConvBlock(3*Co -> Co): cat([p, c]) as channel stack.
        c = conv3x3_relu([jnp.concatenate([p[k], c[k]], axis=0) for k in range(4)],
                         w3_ref, bv[3], mask_ref)
        c = conv3x3_relu(c, w4_ref, bv[4], mask_ref)

        # Lane-dense store: 4 parity planes concatenated along lanes -> (cop, 4*n).
        o_ref[0] = jnp.concatenate(c, axis=1)

    return kernel


# ------------------------------ host-side helpers -----------------------------

def _round_up(v, m):
    return (v + m - 1) // m * m


def _build_shift_masks(H, W):
    """(9, 1, n) border masks indexed by (sh+1)*3 + (sw+1) for the lane rolls."""
    n = H * W
    hh, ww = np.divmod(np.arange(n), W)
    m = np.zeros((9, 1, n), np.float32)
    for sh in (-1, 0, 1):
        for sw in (-1, 0, 1):
            ok = (hh + sh >= 0) & (hh + sh < H) & (ww + sw >= 0) & (ww + sw < W)
            m[(sh + 1) * 3 + (sw + 1), 0] = ok
    return jnp.asarray(m)


def embed_q_channel(q, H2, W2):
    """ConditionalEncoder's q massaging (crop/pad to H2, diag_embed); only the first
    channel of the embedding is non-zero -- that (B, H2, W2) channel is returned."""
    B, Q = q.shape
    qv = q[:, :H2] if Q >= H2 else jnp.pad(q, ((0, 0), (0, H2 - Q)))
    return qv[:, :, None] * jnp.eye(H2, W2, dtype=q.dtype)[None]


def _fold_bn(conv_bias, gamma, beta, mean, var, eps=1e-5):
    s = gamma / jnp.sqrt(var + eps)
    b = beta + (conv_bias - mean) * s
    return s, b


def _im2col_weight(parts, cout, cout_pad):
    """parts: list of (BN-scaled HWIO slice (3,3,cin_i,cout), cin_i_pad).
    Returns (cout_pad, 9*sum(cin_i_pad)) bf16, columns ordered tap-major / channel-minor
    to match the kernel's in-register im2col stack."""
    blocks = []
    for w, cin_pad in parts:
        cin = w.shape[2]
        blocks.append(jnp.pad(w, ((0, 0), (0, 0), (0, cin_pad - cin),
                                  (0, cout_pad - cout))))
    wcat = jnp.concatenate(blocks, axis=2)                       # (3,3,Cin_tot,cout_pad)
    return jnp.transpose(wcat, (3, 0, 1, 2)).reshape(cout_pad, -1).astype(jnp.bfloat16)


def _pad_bias(b, cout_pad):
    return jnp.pad(b, (0, cout_pad - b.shape[0])).astype(jnp.float32)


def prepare_kernel_params(params, out_ch, in_ch, cop, cip, cpp, cqp):
    # ConvTranspose2d weight -> (4*cop, cip), row blocks ordered par = kh*2+kw.
    up_w, up_b = params["up_w"], params["up_b"]                  # (Cin,Cout,2,2), (Cout,)
    wd = jnp.transpose(up_w, (2, 3, 1, 0)).reshape(4, out_ch, in_ch)
    wd = jnp.pad(wd, ((0, 0), (0, cop - out_ch), (0, cip - in_ch)))
    wd = wd.reshape(4 * cop, cip).astype(jnp.bfloat16)

    cnd, cnv = params["cond"], params["conv"]
    s1 = cnd["w1"] * cnd["s1"]                                   # BN scale folded in
    w1 = _im2col_weight([(s1[:, :, :out_ch, :], cop),            # `up` channels
                         (s1[:, :, out_ch:out_ch + 1, :], cqp)], # q_embed live channel
                        out_ch, cop)
    w2 = _im2col_weight([(cnd["w2"] * cnd["s2"], cop)], out_ch, cop)
    s3 = cnv["w1"] * cnv["s1"]
    w3 = _im2col_weight([(s3[:, :, :2 * out_ch, :], cpp),        # skip `p`
                         (s3[:, :, 2 * out_ch:, :], cop)],       # cond output
                        out_ch, cop)
    w4 = _im2col_weight([(cnv["w2"] * cnv["s2"], cop)], out_ch, cop)

    bias = jnp.stack([_pad_bias(up_b, cop), _pad_bias(cnd["b1"], cop),
                      _pad_bias(cnd["b2"], cop), _pad_bias(cnv["b1"], cop),
                      _pad_bias(cnv["b2"], cop)])[:, :, None]    # (5, cop, 1) packed
    return dict(wd=wd, w1=w1, w2=w2, w3=w3, w4=w4, bias=bias)


def upblock_forward(params, x_nchw, p_nchw, q):
    B, in_ch, H, W = x_nchw.shape
    Cp = p_nchw.shape[1]
    out_ch = params["up_w"].shape[1]
    H2, W2 = 2 * H, 2 * W
    n = H * W

    # Channel padding to full sublanes: aligned im2col concats + full-sublane stores.
    cop = _round_up(out_ch, 8)
    cip = _round_up(in_ch, 8)
    cpp = _round_up(Cp, 8)
    cqp = 8

    kp = prepare_kernel_params(params, out_ch, in_ch, cop, cip, cpp, cqp)
    masks = _build_shift_masks(H, W)

    bf16 = jnp.bfloat16
    # Original-resolution x (no 4x upsample in HBM) in bf16 (Cin, n) lanes-flat layout.
    x_flat = jnp.pad(x_nchw.reshape(B, in_ch, n),
                     ((0, 0), (0, cip - in_ch), (0, 0))).astype(bf16)
    # Skip + q_embed pre-split into the kernel's parity-major layout (cheap XLA glue).
    p_par = p_nchw.reshape(B, Cp, H, 2, W, 2).transpose(0, 3, 5, 1, 2, 4)
    p_par = jnp.pad(p_par.reshape(B, 4, Cp, n),
                    ((0, 0), (0, 0), (0, cpp - Cp), (0, 0))).astype(bf16)
    qd = embed_q_channel(q, H2, W2)                              # (B, H2, W2)
    q_par = qd.reshape(B, H, 2, W, 2).transpose(0, 2, 4, 1, 3).reshape(B, 4, 1, n)
    q_par = jnp.pad(q_par, ((0, 0), (0, 0), (0, cqp - 1), (0, 0))).astype(bf16)

    kernel = _make_upblock_kernel(H, W, cop)

    def img_spec(shape):
        nd = len(shape)
        return pl.BlockSpec((1,) + tuple(shape[1:]), lambda b: (b,) + (0,) * (nd - 1))

    def fixed_spec(arr):
        zeros = (0,) * arr.ndim
        return pl.BlockSpec(arr.shape, lambda b: zeros)

    weights = (kp["wd"], kp["w1"], kp["w2"], kp["w3"], kp["w4"], kp["bias"])

    out = pl.pallas_call(
        kernel,
        out_shape=jax.ShapeDtypeStruct((B, cop, 4 * n), jnp.float32),
        grid=(B,),
        in_specs=([fixed_spec(masks), img_spec(x_flat.shape),
                   img_spec(p_par.shape), img_spec(q_par.shape)]
                  + [fixed_spec(w) for w in weights]),
        out_specs=pl.BlockSpec((1, cop, 4 * n), lambda b: (b, 0, 0)),
        compiler_params=pltpu.CompilerParams(
            dimension_semantics=("parallel",)),
    )(masks, x_flat, p_par, q_par, *weights)

    # De-interleave parity-major output back to NCHW and drop padded channels.
    out = out.reshape(B, cop, 2, 2, H, W).transpose(0, 1, 4, 2, 5, 3)
    return out.reshape(B, cop, H2, W2)[:, :out_ch]


# ------------------------------ parameter init --------------------------------

def _init_conv_bn(key, cin, cout):
    ks = jax.random.split(key, 6)
    w = 0.1 * jax.random.normal(ks[0], (cout, cin, 3, 3), jnp.float32)   # OIHW
    cb = 0.1 * jax.random.normal(ks[1], (cout,), jnp.float32)
    gamma = 1.0 + 0.1 * jax.random.normal(ks[2], (cout,), jnp.float32)
    beta = 0.1 * jax.random.normal(ks[3], (cout,), jnp.float32)
    mean = 0.1 * jax.random.normal(ks[4], (cout,), jnp.float32)
    var = 0.5 + jnp.abs(jax.random.normal(ks[5], (cout,), jnp.float32))
    s, b = _fold_bn(cb, gamma, beta, mean, var)
    w_hwio = jnp.transpose(w, (2, 3, 1, 0))
    return w_hwio, s, b


def init_conv_block(key, cin, cout):
    k1, k2 = jax.random.split(key)
    w1, s1, b1 = _init_conv_bn(k1, cin, cout)
    w2, s2, b2 = _init_conv_bn(k2, cout, cout)
    return {"w1": w1, "s1": s1, "b1": b1, "w2": w2, "s2": s2, "b2": b2}


def init_upblock(key, in_ch, out_ch):
    k1, k2, k3, k4 = jax.random.split(key, 4)
    up_w = 0.1 * jax.random.normal(k1, (in_ch, out_ch, 2, 2), jnp.float32)  # PyTorch layout
    up_b = 0.1 * jax.random.normal(k2, (out_ch,), jnp.float32)
    return {"up_w": up_w, "up_b": up_b,
            "cond": init_conv_block(k3, 2 * out_ch, out_ch),
            "conv": init_conv_block(k4, 3 * out_ch, out_ch)}


# --------------------------------- reference ----------------------------------

def _ref_conv3x3(x, w_hwio, s, b):
    y = lax.conv_general_dilated(
        x, w_hwio, (1, 1), "SAME",
        dimension_numbers=("NHWC", "HWIO", "NHWC"),
        precision=lax.Precision.HIGHEST)
    return jnp.maximum(y * s + b, 0.0)


def _ref_conv_block(x, prm):
    x = _ref_conv3x3(x, prm["w1"], prm["s1"], prm["b1"])
    return _ref_conv3x3(x, prm["w2"], prm["s2"], prm["b2"])


def ref_upblock(params, x_nchw, p_nchw, q):
    x = jnp.transpose(x_nchw, (0, 2, 3, 1))
    p = jnp.transpose(p_nchw, (0, 2, 3, 1))
    B, H, W, _ = x.shape
    w = params["up_w"]                                  # (Cin, Cout, 2, 2)
    Cout = w.shape[1]
    up = jnp.einsum("bhwc,cokl->bhkwlo", x, w, precision=lax.Precision.HIGHEST)
    up = up.reshape(B, 2 * H, 2 * W, Cout) + params["up_b"]
    qd = embed_q_channel(q, 2 * H, 2 * W)
    qe = jnp.zeros((B, 2 * H, 2 * W, Cout), x.dtype).at[..., 0].set(qd)
    cx = _ref_conv_block(jnp.concatenate([up, qe], axis=-1), params["cond"])
    out = _ref_conv_block(jnp.concatenate([p, cx], axis=-1), params["conv"])
    return jnp.transpose(out, (0, 3, 1, 2))


# ----------------------------------- main --------------------------------------

if __name__ == "__main__":
    B, IN_CH, OUT_CH = 2, 8, 4
    H = W = 8            # pre-upsample spatial; output is 16x16
    QLEN = 12

    root = jax.random.PRNGKey(0)
    k_par, kx, kskip, kq = jax.random.split(root, 4)
    params = init_upblock(k_par, IN_CH, OUT_CH)

    x = jax.random.normal(kx, (B, IN_CH, H, W), jnp.float32)              # NCHW
    p = jax.random.normal(kskip, (B, 2 * OUT_CH, 2 * H, 2 * W), jnp.float32)
    q = jax.random.normal(kq, (B, QLEN), jnp.float32)

    _init_roll_mode(H * W)    # probe pltpu.roll wrap direction once, outside jit

    fwd = jax.jit(upblock_forward)
    out = jax.block_until_ready(fwd(params, x, p, q))
    ref = jax.block_until_ready(ref_upblock(params, x, p, q))

    assert out.shape == (B, OUT_CH, 2 * H, 2 * W), out.shape
    # Kernel matmuls use bf16 operands / f32 accumulation (default MXU precision);
    # the reference is HIGHEST-precision f32, hence the slightly looser tolerance.
    if not jnp.allclose(out, ref, atol=5e-2, rtol=5e-2):
        max_err = float(jnp.max(jnp.abs(out - ref)))
        raise AssertionError(f"mismatch vs reference, max abs err = {max_err}")

    print("KERNEL_OK")
</pallas_src>

<mosaic_0001>
module attributes {stable_mosaic.version = 11 : i64} {
  func.func @k(%arg0: memref<8x64xf32, #tpu.memory_space<vmem>>, %arg1: memref<8x64xf32, #tpu.memory_space<vmem>>) attributes {dimension_semantics = [], scalar_prefetch = 0 : i64, scratch_operands = 0 : i64, tpu.core_type = #tpu.core_type<tc>} {
    %c0 = arith.constant 0 : index
    %c0_0 = arith.constant 0 : index
    %0 = vector.load %arg0[%c0, %c0_0] : memref<8x64xf32, #tpu.memory_space<vmem>>, vector<8x64xf32>
    %c1_i32 = arith.constant 1 : i32
    %1 = tpu.dynamic_rotate %0 by %c1_i32 dim 1 : vector<8x64xf32>, i32 -> vector<8x64xf32>
    %c0_1 = arith.constant 0 : index
    %c0_2 = arith.constant 0 : index
    %2 = vector.load %arg1[%c0_1, %c0_2] : memref<8x64xf32, #tpu.memory_space<vmem>>, vector<8x64xf32>
    tpu.vector_store %arg1[%c0_1, %c0_2], %1 {strides = array<i32>} : memref<8x64xf32, #tpu.memory_space<vmem>>, vector<8x64xf32>,
    return
  }
}

module attributes {stable_mosaic.version = 11 : i64} {
  func.func @kernel(%arg0: i32, %arg1: memref<9x1x64xf32, #tpu.memory_space<vmem>>, %arg2: memref<1x8x64xbf16, #tpu.memory_space<vmem>>, %arg3: memref<1x4x8x64xbf16, #tpu.memory_space<vmem>>, %arg4: memref<1x4x8x64xbf16, #tpu.memory_space<vmem>>, %arg5: memref<32x8xbf16, #tpu.memory_space<vmem>>, %arg6: memref<8x144xbf16, #tpu.memory_space<vmem>>, %arg7: memref<8x72xbf16, #tpu.memory_space<vmem>>, %arg8: memref<8x144xbf16, #tpu.memory_space<vmem>>, %arg9: memref<8x72xbf16, #tpu.memory_space<vmem>>, %arg10: memref<5x8x1xf32, #tpu.memory_space<vmem>>, %arg11: memref<1x8x256xf32, #tpu.memory_space<vmem>>) attributes {dimension_semantics = [#tpu.dimension_semantics<parallel>], iteration_bounds = array<i64: 2>, scalar_prefetch = 0 : i64, scratch_operands = 0 : i64, tpu.core_type = #tpu.core_type<tc>, window_params = [{pipeline_mode = #tpu.pipeline_mode<synchronous>, transform_indices = @transform_0, window_bounds = array<i64: 9, 1, 64>}, {transform_indices = @transform_1, window_bounds = array<i64: 1, 8, 64>}, {transform_indices = @transform_2, window_bounds = array<i64: 1, 4, 8, 64>}, {transform_indices = @transform_3, window_bounds = array<i64: 1, 4, 8, 64>}, {pipeline_mode = #tpu.pipeline_mode<synchronous>, transform_indices = @transform_4, window_bounds = array<i64: 32, 8>}, {pipeline_mode = #tpu.pipeline_mode<synchronous>, transform_indices = @transform_5, window_bounds = array<i64: 8, 144>}, {pipeline_mode = #tpu.pipeline_mode<synchronous>, transform_indices = @transform_6, window_bounds = array<i64: 8, 72>}, {pipeline_mode = #tpu.pipeline_mode<synchronous>, transform_indices = @transform_7, window_bounds = array<i64: 8, 144>}, {pipeline_mode = #tpu.pipeline_mode<synchronous>, transform_indices = @transform_8, window_bounds = array<i64: 8, 72>}, {pipeline_mode = #tpu.pipeline_mode<synchronous>, transform_indices = @transform_9, window_bounds = array<i64: 5, 8, 1>}, {transform_indices = @transform_10, window_bounds = array<i64: 1, 8, 256>}]} {
    %c0 = arith.constant 0 : index
    %c0_0 = arith.constant 0 : index
    %c0_1 = arith.constant 0 : index
    %0 = vector.load %arg2[%c0, %c0_0, %c0_1] : memref<1x8x64xbf16, #tpu.memory_space<vmem>>, vector<1x8x64xbf16>
    %1 = vector.shape_cast %0 : vector<1x8x64xbf16> to vector<8x64xbf16>
    %2 = arith.extf %1 : vector<8x64xbf16> to vector<8x64xf32>
    %c0_2 = arith.constant 0 : index
    %c0_3 = arith.constant 0 : index
    %3 = vector.load %arg5[%c0_2, %c0_3] : memref<32x8xbf16, #tpu.memory_space<vmem>>, vector<32x8xbf16>
    %4 = arith.extf %3 : vector<32x8xbf16> to vector<32x8xf32>
    %cst = arith.constant dense<0.000000e+00> : vector<32x64xf32>
    %5 = tpu.matmul %4, %2, %cst {dimension_numbers = #tpu.dot_dimension_numbers<[1], [0], [0], [1], [0, 0, 1, 1], [], []>} : vector<32x8xf32>, vector<8x64xf32>, vector<32x64xf32> -> vector<32x64xf32>
    %c0_4 = arith.constant 0 : index
    %c0_5 = arith.constant 0 : index
    %c0_6 = arith.constant 0 : index
    %6 = vector.load %arg10[%c0_4, %c0_5, %c0_6] : memref<5x8x1xf32, #tpu.memory_space<vmem>>, vector<5x8x1xf32>
    %7 = vector.extract_strided_slice %5 {offsets = [0, 0], sizes = [8, 64], strides = [1, 1]} : vector<32x64xf32> to vector<8x64xf32>
    %8 = vector.extract_strided_slice %6 {offsets = [0, 0, 0], sizes = [1, 8, 1], strides = [1, 1, 1]} : vector<5x8x1xf32> to vector<1x8x1xf32>
    %9 = vector.shape_cast %8 : vector<1x8x1xf32> to vector<8x1xf32>
    %10 = vector.broadcast %9 : vector<8x1xf32> to vector<8x64xf32>
    %11 = arith.addf %7, %10 : vector<8x64xf32>
    %12 = vector.extract_strided_slice %5 {offsets = [8, 0], sizes = [8, 64], strides = [1, 1]} : vector<32x64xf32> to vector<8x64xf32>
    %13 = vector.extract_strided_slice %6 {offsets = [0, 0, 0], sizes = [1, 8, 1], strides = [1, 1, 1]} : vector<5x8x1xf32> to vector<1x8x1xf32>
    %14 = vector.shape_cast %13 : vector<1x8x1xf32> to vector<8x1xf32>
    %15 = vector.broadcast %14 : vector<8x1xf32> to vector<8x64xf32>
    %16 = arith.addf %12, %15 : vector<8x64xf32>
    %17 = vector.extract_strided_slice %5 {offsets = [16, 0], sizes = [8, 64], strides = [1, 1]} : vector<32x64xf32> to vector<8x64xf32>
    %18 = vector.extract_strided_slice %6 {offsets = [0, 0, 0], sizes = [1, 8, 1], strides = [1, 1, 1]} : vector<5x8x1xf32> to vector<1x8x1xf32>
    %19 = vector.shape_cast %18 : vector<1x8x1xf32> to vector<8x1xf32>
    %20 = vector.broadcast %19 : vector<8x1xf32> to vector<8x64xf32>
    %21 = arith.addf %17, %20 : vector<8x64xf32>
    %22 = vector.extract_strided_slice %5 {offsets = [24, 0], sizes = [8, 64], strides = [1, 1]} : vector<32x64xf32> to vector<8x64xf32>
    %23 = vector.extract_strided_slice %6 {offsets = [0, 0, 0], sizes = [1, 8, 1], strides = [1, 1, 1]} : vector<5x8x1xf32> to vector<1x8x1xf32>
    %24 = vector.shape_cast %23 : vector<1x8x1xf32> to vector<8x1xf32>
    %25 = vector.broadcast %24 : vector<8x1xf32> to vector<8x64xf32>
    %26 = arith.addf %22, %25 : vector<8x64xf32>
    %c0_7 = arith.constant 0 : index
    %c0_8 = arith.constant 0 : index
    %c0_9 = arith.constant 0 : index
    %c0_10 = arith.constant 0 : index
    %27 = vector.load %arg3[%c0_7, %c0_8, %c0_9, %c0_10] : memref<1x4x8x64xbf16, #tpu.memory_space<vmem>>, vector<1x4x8x64xbf16>
    %28 = vector.shape_cast %27 : vector<1x4x8x64xbf16> to vector<4x8x64xbf16>
    %c0_11 = arith.constant 0 : index
    %c0_12 = arith.constant 0 : index
    %c0_13 = arith.constant 0 : index
    %c0_14 = arith.constant 0 : index
    %29 = vector.load %arg4[%c0_11, %c0_12, %c0_13, %c0_14] : memref<1x4x8x64xbf16, #tpu.memory_space<vmem>>, vector<1x4x8x64xbf16>
    %30 = vector.shape_cast %29 : vector<1x4x8x64xbf16> to vector<4x8x64xbf16>
    %31 = vector.extract_strided_slice %28 {offsets = [0, 0, 0], sizes = [1, 8, 64], strides = [1, 1, 1]} : vector<4x8x64xbf16> to vector<1x8x64xbf16>
    %32 = vector.shape_cast %31 : vector<1x8x64xbf16> to vector<8x64xbf16>
    %33 = arith.extf %32 : vector<8x64xbf16> to vector<8x64xf32>
    %34 = vector.extract_strided_slice %28 {offsets = [1, 0, 0], sizes = [1, 8, 64], strides = [1, 1, 1]} : vector<4x8x64xbf16> to vector<1x8x64xbf16>
    %35 = vector.shape_cast %34 : vector<1x8x64xbf16> to vector<8x64xbf16>
    %36 = arith.extf %35 : vector<8x64xbf16> to vector<8x64xf32>
    %37 = vector.extract_strided_slice %28 {offsets = [2, 0, 0], sizes = [1, 8, 64], strides = [1, 1, 1]} : vector<4x8x64xbf16> to vector<1x8x64xbf16>
    %38 = vector.shape_cast %37 : vector<1x8x64xbf16> to vector<8x64xbf16>
    %39 = arith.extf %38 : vector<8x64xbf16> to vector<8x64xf32>
    %40 = vector.extract_strided_slice %28 {offsets = [3, 0, 0], sizes = [1, 8, 64], strides = [1, 1, 1]} : vector<4x8x64xbf16> to vector<1x8x64xbf16>
    %41 = vector.shape_cast %40 : vector<1x8x64xbf16> to vector<8x64xbf16>
    %42 = arith.extf %41 : vector<8x64xbf16> to vector<8x64xf32>
    %43 = vector.extract_strided_slice %30 {offsets = [0, 0, 0], sizes = [1, 8, 64], strides = [1, 1, 1]} : vector<4x8x64xbf16> to vector<1x8x64xbf16>
    %44 = vector.shape_cast %43 : vector<1x8x64xbf16> to vector<8x64xbf16>
    %45 = arith.extf %44 : vector<8x64xbf16> to vector<8x64xf32>
    %46 = vector.extract_strided_slice %30 {offsets = [1, 0, 0], sizes = [1, 8, 64], strides = [1, 1, 1]} : vector<4x8x64xbf16> to vector<1x8x64xbf16>
    %47 = vector.shape_cast %46 : vector<1x8x64xbf16> to vector<8x64xbf16>
    %48 = arith.extf %47 : vector<8x64xbf16> to vector<8x64xf32>
    %49 = vector.extract_strided_slice %30 {offsets = [2, 0, 0], sizes = [1, 8, 64], strides = [1, 1, 1]} : vector<4x8x64xbf16> to vector<1x8x64xbf16>
    %50 = vector.shape_cast %49 : vector<1x8x64xbf16> to vector<8x64xbf16>
    %51 = arith.extf %50 : vector<8x64xbf16> to vector<8x64xf32>
    %52 = vector.extract_strided_slice %30 {offsets = [3, 0, 0], sizes = [1, 8, 64], strides = [1, 1, 1]} : vector<4x8x64xbf16> to vector<1x8x64xbf16>
    %53 = vector.shape_cast %52 : vector<1x8x64xbf16> to vector<8x64xbf16>
    %54 = arith.extf %53 : vector<8x64xbf16> to vector<8x64xf32>
    %55 = tpu.concatenate %11, %45 in 0 : vector<8x64xf32>, vector<8x64xf32> -> vector<16x64xf32>
    %56 = tpu.concatenate %16, %48 in 0 : vector<8x64xf32>, vector<8x64xf32> -> vector<16x64xf32>
    %57 = tpu.concatenate %21, %51 in 0 : vector<8x64xf32>, vector<8x64xf32> -> vector<16x64xf32>
    %58 = tpu.concatenate %26, %54 in 0 : vector<8x64xf32>, vector<8x64xf32> -> vector<16x64xf32>
    %59 = vector.extract_strided_slice %6 {offsets = [1, 0, 0], sizes = [1, 8, 1], strides = [1, 1, 1]} : vector<5x8x1xf32> to vector<1x8x1xf32>
    %60 = vector.shape_cast %59 : vector<1x8x1xf32> to vector<8x1xf32>
    %c0_15 = arith.constant 0 : index
    %c0_16 = arith.constant 0 : index
    %61 = vector.load %arg6[%c0_15, %c0_16] : memref<8x144xbf16, #tpu.memory_space<vmem>>, vector<8x144xbf16>
    %62 = arith.extf %61 : vector<8x144xbf16> to vector<8x144xf32>
    %63 = vector.extract_strided_slice %58 {offsets = [0, 55], sizes = [16, 9], strides = [1, 1]} : vector<16x64xf32> to vector<16x9xf32>
    %64 = vector.extract_strided_slice %58 {offsets = [0, 0], sizes = [16, 55], strides = [1, 1]} : vector<16x64xf32> to vector<16x55xf32>
    %65 = tpu.concatenate %63, %64 in 1 : vector<16x9xf32>, vector<16x55xf32> -> vector<16x64xf32>
    %c0_17 = arith.constant 0 : index
    %c0_18 = arith.constant 0 : index
    %c0_19 = arith.constant 0 : index
    %66 = vector.load %arg1[%c0_17, %c0_18, %c0_19] : memref<9x1x64xf32, #tpu.memory_space<vmem>>, vector<1x1x64xf32>
    %67 = vector.shape_cast %66 : vector<1x1x64xf32> to vector<1x64xf32>
    %68 = vector.broadcast %67 : vector<1x64xf32> to vector<16x64xf32>
    %69 = arith.mulf %65, %68 : vector<16x64xf32>
    %70 = vector.extract_strided_slice %57 {offsets = [0, 56], sizes = [16, 8], strides = [1, 1]} : vector<16x64xf32> to vector<16x8xf32>
    %71 = vector.extract_strided_slice %57 {offsets = [0, 0], sizes = [16, 56], strides = [1, 1]} : vector<16x64xf32> to vector<16x56xf32>
    %72 = tpu.concatenate %70, %71 in 1 : vector<16x8xf32>, vector<16x56xf32> -> vector<16x64xf32>
    %c1 = arith.constant 1 : index
    %c0_20 = arith.constant 0 : index
    %c0_21 = arith.constant 0 : index
    %73 = vector.load %arg1[%c1, %c0_20, %c0_21] : memref<9x1x64xf32, #tpu.memory_space<vmem>>, vector<1x1x64xf32>
    %74 = vector.shape_cast %73 : vector<1x1x64xf32> to vector<1x64xf32>
    %75 = vector.broadcast %74 : vector<1x64xf32> to vector<16x64xf32>
    %76 = arith.mulf %72, %75 : vector<16x64xf32>
    %77 = vector.extract_strided_slice %58 {offsets = [0, 56], sizes = [16, 8], strides = [1, 1]} : vector<16x64xf32> to vector<16x8xf32>
    %78 = vector.extract_strided_slice %58 {offsets = [0, 0], sizes = [16, 56], strides = [1, 1]} : vector<16x64xf32> to vector<16x56xf32>
    %79 = tpu.concatenate %77, %78 in 1 : vector<16x8xf32>, vector<16x56xf32> -> vector<16x64xf32>
    %c1_22 = arith.constant 1 : index
    %c0_23 = arith.constant 0 : index
    %c0_24 = arith.constant 0 : index
    %80 = vector.load %arg1[%c1_22, %c0_23, %c0_24] : memref<9x1x64xf32, #tpu.memory_space<vmem>>, vector<1x1x64xf32>
    %81 = vector.shape_cast %80 : vector<1x1x64xf32> to vector<1x64xf32>
    %82 = vector.broadcast %81 : vector<1x64xf32> to vector<16x64xf32>
    %83 = arith.mulf %79, %82 : vector<16x64xf32>
    %84 = vector.extract_strided_slice %56 {offsets = [0, 63], sizes = [16, 1], strides = [1, 1]} : vector<16x64xf32> to vector<16x1xf32>
    %85 = vector.extract_strided_slice %56 {offsets = [0, 0], sizes = [16, 63], strides = [1, 1]} : vector<16x64xf32> to vector<16x63xf32>
    %86 = tpu.concatenate %84, %85 in 1 : vector<16x1xf32>, vector<16x63xf32> -> vector<16x64xf32>
    %c3 = arith.constant 3 : index
    %c0_25 = arith.constant 0 : index
    %c0_26 = arith.constant 0 : index
    %87 = vector.load %arg1[%c3, %c0_25, %c0_26] : memref<9x1x64xf32, #tpu.memory_space<vmem>>, vector<1x1x64xf32>
    %88 = vector.shape_cast %87 : vector<1x1x64xf32> to vector<1x64xf32>
    %89 = vector.broadcast %88 : vector<1x64xf32> to vector<16x64xf32>
    %90 = arith.mulf %86, %89 : vector<16x64xf32>
    %91 = vector.extract_strided_slice %58 {offsets = [0, 63], sizes = [16, 1], strides = [1, 1]} : vector<16x64xf32> to vector<16x1xf32>
    %92 = vector.extract_strided_slice %58 {offsets = [0, 0], sizes = [16, 63], strides = [1, 1]} : vector<16x64xf32> to vector<16x63xf32>
    %93 = tpu.concatenate %91, %92 in 1 : vector<16x1xf32>, vector<16x63xf32> -> vector<16x64xf32>
    %c3_27 = arith.constant 3 : index
    %c0_28 = arith.constant 0 : index
    %c0_29 = arith.constant 0 : index
    %94 = vector.load %arg1[%c3_27, %c0_28, %c0_29] : memref<9x1x64xf32, #tpu.memory_space<vmem>>, vector<1x1x64xf32>
    %95 = vector.shape_cast %94 : vector<1x1x64xf32> to vector<1x64xf32>
    %96 = vector.broadcast %95 : vector<1x64xf32> to vector<16x64xf32>
    %97 = arith.mulf %93, %96 : vector<16x64xf32>
    %98 = tpu.concatenate %69, %76, %83, %90, %55, %56, %97, %57, %58 in 0 : vector<16x64xf32>, vector<16x64xf32>, vector<16x64xf32>, vector<16x64xf32>, vector<16x64xf32>, vector<16x64xf32>, vector<16x64xf32>, vector<16x64xf32>, vector<16x64xf32> -> vector<144x64xf32>
    %cst_30 = arith.constant dense<0.000000e+00> : vector<8x64xf32>
    %99 = tpu.matmul %62, %98, %cst_30 {dimension_numbers = #tpu.dot_dimension_numbers<[1], [0], [0], [1], [0, 0, 1, 1], [], []>} : vector<8x144xf32>, vector<144x64xf32>, vector<8x64xf32> -> vector<8x64xf32>
    %100 = vector.broadcast %60 : vector<8x1xf32> to vector<8x64xf32>
    %101 = arith.addf %99, %100 : vector<8x64xf32>
    %cst_31 = arith.constant 0.000000e+00 : f32
    %102 = vector.broadcast %cst_31 : f32 to vector<8x64xf32>
    %103 = arith.maximumf %101, %102 : vector<8x64xf32>
    %104 = vector.extract_strided_slice %57 {offsets = [0, 57], sizes = [16, 7], strides = [1, 1]} : vector<16x64xf32> to vector<16x7xf32>
    %105 = vector.extract_strided_slice %57 {offsets = [0, 0], sizes = [16, 57], strides = [1, 1]} : vector<16x64xf32> to vector<16x57xf32>
    %106 = tpu.concatenate %104, %105 in 1 : vector<16x7xf32>, vector<16x57xf32> -> vector<16x64xf32>
    %c2 = arith.constant 2 : index
    %c0_32 = arith.constant 0 : index
    %c0_33 = arith.constant 0 : index
    %107 = vector.load %arg1[%c2, %c0_32, %c0_33] : memref<9x1x64xf32, #tpu.memory_space<vmem>>, vector<1x1x64xf32>
    %108 = vector.shape_cast %107 : vector<1x1x64xf32> to vector<1x64xf32>
    %109 = vector.broadcast %108 : vector<1x64xf32> to vector<16x64xf32>
    %110 = arith.mulf %106, %109 : vector<16x64xf32>
    %111 = vector.extract_strided_slice %55 {offsets = [0, 1], sizes = [16, 63], strides = [1, 1]} : vector<16x64xf32> to vector<16x63xf32>
    %112 = vector.extract_strided_slice %55 {offsets = [0, 0], sizes = [16, 1], strides = [1, 1]} : vector<16x64xf32> to vector<16x1xf32>
    %113 = tpu.concatenate %111, %112 in 1 : vector<16x63xf32>, vector<16x1xf32> -> vector<16x64xf32>
    %c5 = arith.constant 5 : index
    %c0_34 = arith.constant 0 : index
    %c0_35 = arith.constant 0 : index
    %114 = vector.load %arg1[%c5, %c0_34, %c0_35] : memref<9x1x64xf32, #tpu.memory_space<vmem>>, vector<1x1x64xf32>
    %115 = vector.shape_cast %114 : vector<1x1x64xf32> to vector<1x64xf32>
    %116 = vector.broadcast %115 : vector<1x64xf32> to vector<16x64xf32>
    %117 = arith.mulf %113, %116 : vector<16x64xf32>
    %118 = vector.extract_strided_slice %57 {offsets = [0, 1], sizes = [16, 63], strides = [1, 1]} : vector<16x64xf32> to vector<16x63xf32>
    %119 = vector.extract_strided_slice %57 {offsets = [0, 0], sizes = [16, 1], strides = [1, 1]} : vector<16x64xf32> to vector<16x1xf32>
    %120 = tpu.concatenate %118, %119 in 1 : vector<16x63xf32>, vector<16x1xf32> -> vector<16x64xf32>
    %c5_36 = arith.constant 5 : index
    %c0_37 = arith.constant 0 : index
    %c0_38 = arith.constant 0 : index
    %121 = vector.load %arg1[%c5_36, %c0_37, %c0_38] : memref<9x1x64xf32, #tpu.memory_space<vmem>>, vector<1x1x64xf32>
    %122 = vector.shape_cast %121 : vector<1x1x64xf32> to vector<1x64xf32>
    %123 = vector.broadcast %122 : vector<1x64xf32> to vector<16x64xf32>
    %124 = arith.mulf %120, %123 : vector<16x64xf32>
    %125 = tpu.concatenate %76, %83, %110, %55, %56, %117, %57, %58, %124 in 0 : vector<16x64xf32>, vector<16x64xf32>, vector<16x64xf32>, vector<16x64xf32>, vector<16x64xf32>, vector<16x64xf32>, vector<16x64xf32>, vector<16x64xf32>, vector<16x64xf32> -> vector<144x64xf32>
    %cst_39 = arith.constant dense<0.000000e+00> : vector<8x64xf32>
    %126 = tpu.matmul %62, %125, %cst_39 {dimension_numbers = #tpu.dot_dimension_numbers<[1], [0], [0], [1], [0, 0, 1, 1], [], []>} : vector<8x144xf32>, vector<144x64xf32>, vector<8x64xf32> -> vector<8x64xf32>
    %127 = vector.broadcast %60 : vector<8x1xf32> to vector<8x64xf32>
    %128 = arith.addf %126, %127 : vector<8x64xf32>
    %cst_40 = arith.constant 0.000000e+00 : f32
    %129 = vector.broadcast %cst_40 : f32 to vector<8x64xf32>
    %130 = arith.maximumf %128, %129 : vector<8x64xf32>
    %131 = vector.extract_strided_slice %56 {offsets = [0, 7], sizes = [16, 57], strides = [1, 1]} : vector<16x64xf32> to vector<16x57xf32>
    %132 = vector.extract_strided_slice %56 {offsets = [0, 0], sizes = [16, 7], strides = [1, 1]} : vector<16x64xf32> to vector<16x7xf32>
    %133 = tpu.concatenate %131, %132 in 1 : vector<16x57xf32>, vector<16x7xf32> -> vector<16x64xf32>
    %c6 = arith.constant 6 : index
    %c0_41 = arith.constant 0 : index
    %c0_42 = arith.constant 0 : index
    %134 = vector.load %arg1[%c6, %c0_41, %c0_42] : memref<9x1x64xf32, #tpu.memory_space<vmem>>, vector<1x1x64xf32>
    %135 = vector.shape_cast %134 : vector<1x1x64xf32> to vector<1x64xf32>
    %136 = vector.broadcast %135 : vector<1x64xf32> to vector<16x64xf32>
    %137 = arith.mulf %133, %136 : vector<16x64xf32>
    %138 = vector.extract_strided_slice %55 {offsets = [0, 8], sizes = [16, 56], strides = [1, 1]} : vector<16x64xf32> to vector<16x56xf32>
    %139 = vector.extract_strided_slice %55 {offsets = [0, 0], sizes = [16, 8], strides = [1, 1]} : vector<16x64xf32> to vector<16x8xf32>
    %140 = tpu.concatenate %138, %139 in 1 : vector<16x56xf32>, vector<16x8xf32> -> vector<16x64xf32>
    %c7 = arith.constant 7 : index
    %c0_43 = arith.constant 0 : index
    %c0_44 = arith.constant 0 : index
    %141 = vector.load %arg1[%c7, %c0_43, %c0_44] : memref<9x1x64xf32, #tpu.memory_space<vmem>>, vector<1x1x64xf32>
    %142 = vector.shape_cast %141 : vector<1x1x64xf32> to vector<1x64xf32>
    %143 = vector.broadcast %142 : vector<1x64xf32> to vector<16x64xf32>
    %144 = arith.mulf %140, %143 : vector<16x64xf32>
    %145 = vector.extract_strided_slice %56 {offsets = [0, 8], sizes = [16, 56], strides = [1, 1]} : vector<16x64xf32> to vector<16x56xf32>
    %146 = vector.extract_strided_slice %56 {offsets = [0, 0], sizes = [16, 8], strides = [1, 1]} : vector<16x64xf32> to vector<16x8xf32>
    %147 = tpu.concatenate %145, %146 in 1 : vector<16x56xf32>, vector<16x8xf32> -> vector<16x64xf32>
    %c7_45 = arith.constant 7 : index
    %c0_46 = arith.constant 0 : index
    %c0_47 = arith.constant 0 : index
    %148 = vector.load %arg1[%c7_45, %c0_46, %c0_47] : memref<9x1x64xf32, #tpu.memory_space<vmem>>, vector<1x1x64xf32>
    %149 = vector.shape_cast %148 : vector<1x1x64xf32> to vector<1x64xf32>
    %150 = vector.broadcast %149 : vector<1x64xf32> to vector<16x64xf32>
    %151 = arith.mulf %147, %150 : vector<16x64xf32>
    %152 = tpu.concatenate %90, %55, %56, %97, %57, %58, %137, %144, %151 in 0 : vector<16x64xf32>, vector<16x64xf32>, vector<16x64xf32>, vector<16x64xf32>, vector<16x64xf32>, vector<16x64xf32>, vector<16x64xf32>, vector<16x64xf32>, vector<16x64xf32> -> vector<144x64xf32>
    %cst_48 = arith.constant dense<0.000000e+00> : vector<8x64xf32>
    %153 = tpu.matmul %62, %152, %cst_48 {dimension_numbers = #tpu.dot_dimension_numbers<[1], [0], [0], [1], [0, 0, 1, 1], [], []>} : vector<8x144xf32>, vector<144x64xf32>, vector<8x64xf32> -> vector<8x64xf32>
    %154 = vector.broadcast %60 : vector<8x1xf32> to vector<8x64xf32>
    %155 = arith.addf %153, %154 : vector<8x64xf32>
    %cst_49 = arith.constant 0.000000e+00 : f32
    %156 = vector.broadcast %cst_49 : f32 to vector<8x64xf32>
    %157 = arith.maximumf %155, %156 : vector<8x64xf32>
    %158 = vector.extract_strided_slice %55 {offsets = [0, 9], sizes = [16, 55], strides = [1, 1]} : vector<16x64xf32> to vector<16x55xf32>
    %159 = vector.extract_strided_slice %55 {offsets = [0, 0], sizes = [16, 9], strides = [1, 1]} : vector<16x64xf32> to vector<16x9xf32>
    %160 = tpu.concatenate %158, %159 in 1 : vector<16x55xf32>, vector<16x9xf32> -> vector<16x64xf32>
    %c8 = arith.constant 8 : index
    %c0_50 = arith.constant 0 : index
    %c0_51 = arith.constant 0 : index
    %161 = vector.load %arg1[%c8, %c0_50, %c0_51] : memref<9x1x64xf32, #tpu.memory_space<vmem>>, vector<1x1x64xf32>
    %162 = vector.shape_cast %161 : vector<1x1x64xf32> to vector<1x64xf32>
    %163 = vector.broadcast %162 : vector<1x64xf32> to vector<16x64xf32>
    %164 = arith.mulf %160, %163 : vector<16x64xf32>
    %165 = tpu.concatenate %55, %56, %117, %57, %58, %124, %144, %151, %164 in 0 : vector<16x64xf32>, vector<16x64xf32>, vector<16x64xf32>, vector<16x64xf32>, vector<16x64xf32>, vector<16x64xf32>, vector<16x64xf32>, vector<16x64xf32>, vector<16x64xf32> -> vector<144x64xf32>
    %cst_52 = arith.constant dense<0.000000e+00> : vector<8x64xf32>
    %166 = tpu.matmul %62, %165, %cst_52 {dimension_numbers = #tpu.dot_dimension_numbers<[1], [0], [0], [1], [0, 0, 1, 1], [], []>} : vector<8x144xf32>, vector<144x64xf32>, vector<8x64xf32> -> vector<8x64xf32>
    %167 = vector.broadcast %60 : vector<8x1xf32> to vector<8x64xf32>
    %168 = arith.addf %166, %167 : vector<8x64xf32>
    %cst_53 = arith.constant 0.000000e+00 : f32
    %169 = vector.broadcast %cst_53 : f32 to vector<8x64xf32>
    %170 = arith.maximumf %168, %169 : vector<8x64xf32>
    %171 = vector.extract_strided_slice %6 {offsets = [2, 0, 0], sizes = [1, 8, 1], strides = [1, 1, 1]} : vector<5x8x1xf32> to vector<1x8x1xf32>
    %172 = vector.shape_cast %171 : vector<1x8x1xf32> to vector<8x1xf32>
    %c0_54 = arith.constant 0 : index
    %c0_55 = arith.constant 0 : index
    %173 = vector.load %arg7[%c0_54, %c0_55] : memref<8x72xbf16, #tpu.memory_space<vmem>>, vector<8x72xbf16>
    %174 = arith.extf %173 : vector<8x72xbf16> to vector<8x72xf32>
    %175 = vector.extract_strided_slice %170 {offsets = [0, 55], sizes = [8, 9], strides = [1, 1]} : vector<8x64xf32> to vector<8x9xf32>
    %176 = vector.extract_strided_slice %170 {offsets = [0, 0], sizes = [8, 55], strides = [1, 1]} : vector<8x64xf32> to vector<8x55xf32>
    %177 = tpu.concatenate %175, %176 in 1 : vector<8x9xf32>, vector<8x55xf32> -> vector<8x64xf32>
    %c0_56 = arith.constant 0 : index
    %c0_57 = arith.constant 0 : index
    %c0_58 = arith.constant 0 : index
    %178 = vector.load %arg1[%c0_56, %c0_57, %c0_58] : memref<9x1x64xf32, #tpu.memory_space<vmem>>, vector<1x1x64xf32>
    %179 = vector.shape_cast %178 : vector<1x1x64xf32> to vector<1x64xf32>
    %180 = vector.broadcast %179 : vector<1x64xf32> to vector<8x64xf32>
    %181 = arith.mulf %177, %180 : vector<8x64xf32>
    %182 = vector.extract_strided_slice %157 {offsets = [0, 56], sizes = [8, 8], strides = [1, 1]} : vector<8x64xf32> to vector<8x8xf32>
    %183 = vector.extract_strided_slice %157 {offsets = [0, 0], sizes = [8, 56], strides = [1, 1]} : vector<8x64xf32> to vector<8x56xf32>
    %184 = tpu.concatenate %182, %183 in 1 : vector<8x8xf32>, vector<8x56xf32> -> vector<8x64xf32>
    %c1_59 = arith.constant 1 : index
    %c0_60 = arith.constant 0 : index
    %c0_61 = arith.constant 0 : index
    %185 = vector.load %arg1[%c1_59, %c0_60, %c0_61] : memref<9x1x64xf32, #tpu.memory_space<vmem>>, vector<1x1x64xf32>
    %186 = vector.shape_cast %185 : vector<1x1x64xf32> to vector<1x64xf32>
    %187 = vector.broadcast %186 : vector<1x64xf32> to vector<8x64xf32>
    %188 = arith.mulf %184, %187 : vector<8x64xf32>
    %189 = vector.extract_strided_slice %170 {offsets = [0, 56], sizes = [8, 8], strides = [1, 1]} : vector<8x64xf32> to vector<8x8xf32>
    %190 = vector.extract_strided_slice %170 {offsets = [0, 0], sizes = [8, 56], strides = [1, 1]} : vector<8x64xf32> to vector<8x56xf32>
    %191 = tpu.concatenate %189, %190 in 1 : vector<8x8xf32>, vector<8x56xf32> -> vector<8x64xf32>
    %c1_62 = arith.constant 1 : index
    %c0_63 = arith.constant 0 : index
    %c0_64 = arith.constant 0 : index
    %192 = vector.load %arg1[%c1_62, %c0_63, %c0_64] : memref<9x1x64xf32, #tpu.memory_space<vmem>>, vector<1x1x64xf32>
    %193 = vector.shape_cast %192 : vector<1x1x64xf32> to vector<1x64xf32>
    %194 = vector.broadcast %193 : vector<1x64xf32> to vector<8x64xf32>
    %195 = arith.mulf %191, %194 : vector<8x64xf32>
    %196 = vector.extract_strided_slice %130 {offsets = [0, 63], sizes = [8, 1], strides = [1, 1]} : vector<8x64xf32> to vector<8x1xf32>
    %197 = vector.extract_strided_slice %130 {offsets = [0, 0], sizes = [8, 63], strides = [1, 1]} : vector<8x64xf32> to vector<8x63xf32>
    %198 = tpu.concatenate %196, %197 in 1 : vector<8x1xf32>, vector<8x63xf32> -> vector<8x64xf32>
    %c3_65 = arith.constant 3 : index
    %c0_66 = arith.constant 0 : index
    %c0_67 = arith.constant 0 : index
    %199 = vector.load %arg1[%c3_65, %c0_66, %c0_67] : memref<9x1x64xf32, #tpu.memory_space<vmem>>, vector<1x1x64xf32>
    %200 = vector.shape_cast %199 : vector<1x1x64xf32> to vector<1x64xf32>
    %201 = vector.broadcast %200 : vector<1x64xf32> to vector<8x64xf32>
    %202 = arith.mulf %198, %201 : vector<8x64xf32>
    %203 = vector.extract_strided_slice %170 {offsets = [0, 63], sizes = [8, 1], strides = [1, 1]} : vector<8x64xf32> to vector<8x1xf32>
    %204 = vector.extract_strided_slice %170 {offsets = [0, 0], sizes = [8, 63], strides = [1, 1]} : vector<8x64xf32> to vector<8x63xf32>
    %205 = tpu.concatenate %203, %204 in 1 : vector<8x1xf32>, vector<8x63xf32> -> vector<8x64xf32>
    %c3_68 = arith.constant 3 : index
    %c0_69 = arith.constant 0 : index
    %c0_70 = arith.constant 0 : index
    %206 = vector.load %arg1[%c3_68, %c0_69, %c0_70] : memref<9x1x64xf32, #tpu.memory_space<vmem>>, vector<1x1x64xf32>
    %207 = vector.shape_cast %206 : vector<1x1x64xf32> to vector<1x64xf32>
    %208 = vector.broadcast %207 : vector<1x64xf32> to vector<8x64xf32>
    %209 = arith.mulf %205, %208 : vector<8x64xf32>
    %210 = tpu.concatenate %181, %188, %195, %202, %103, %130, %209, %157, %170 in 0 : vector<8x64xf32>, vector<8x64xf32>, vector<8x64xf32>, vector<8x64xf32>, vector<8x64xf32>, vector<8x64xf32>, vector<8x64xf32>, vector<8x64xf32>, vector<8x64xf32> -> vector<72x64xf32>
    %cst_71 = arith.constant dense<0.000000e+00> : vector<8x64xf32>
    %211 = tpu.matmul %174, %210, %cst_71 {dimension_numbers = #tpu.dot_dimension_numbers<[1], [0], [0], [1], [0, 0, 1, 1], [], []>} : vector<8x72xf32>, vector<72x64xf32>, vector<8x64xf32> -> vector<8x64xf32>
    %212 = vector.broadcast %172 : vector<8x1xf32> to vector<8x64xf32>
    %213 = arith.addf %211, %212 : vector<8x64xf32>
    %cst_72 = arith.constant 0.000000e+00 : f32
    %214 = vector.broadcast %cst_72 : f32 to vector<8x64xf32>
    %215 = arith.maximumf %213, %214 : vector<8x64xf32>
    %216 = vector.extract_strided_slice %157 {offsets = [0, 57], sizes = [8, 7], strides = [1, 1]} : vector<8x64xf32> to vector<8x7xf32>
    %217 = vector.extract_strided_slice %157 {offsets = [0, 0], sizes = [8, 57], strides = [1, 1]} : vector<8x64xf32> to vector<8x57xf32>
    %218 = tpu.concatenate %216, %217 in 1 : vector<8x7xf32>, vector<8x57xf32> -> vector<8x64xf32>
    %c2_73 = arith.constant 2 : index
    %c0_74 = arith.constant 0 : index
    %c0_75 = arith.constant 0 : index
    %219 = vector.load %arg1[%c2_73, %c0_74, %c0_75] : memref<9x1x64xf32, #tpu.memory_space<vmem>>, vector<1x1x64xf32>
    %220 = vector.shape_cast %219 : vector<1x1x64xf32> to vector<1x64xf32>
    %221 = vector.broadcast %220 : vector<1x64xf32> to vector<8x64xf32>
    %222 = arith.mulf %218, %221 : vector<8x64xf32>
    %223 = vector.extract_strided_slice %103 {offsets = [0, 1], sizes = [8, 63], strides = [1, 1]} : vector<8x64xf32> to vector<8x63xf32>
    %224 = vector.extract_strided_slice %103 {offsets = [0, 0], sizes = [8, 1], strides = [1, 1]} : vector<8x64xf32> to vector<8x1xf32>
    %225 = tpu.concatenate %223, %224 in 1 : vector<8x63xf32>, vector<8x1xf32> -> vector<8x64xf32>
    %c5_76 = arith.constant 5 : index
    %c0_77 = arith.constant 0 : index
    %c0_78 = arith.constant 0 : index
    %226 = vector.load %arg1[%c5_76, %c0_77, %c0_78] : memref<9x1x64xf32, #tpu.memory_space<vmem>>, vector<1x1x64xf32>
    %227 = vector.shape_cast %226 : vector<1x1x64xf32> to vector<1x64xf32>
    %228 = vector.broadcast %227 : vector<1x64xf32> to vector<8x64xf32>
    %229 = arith.mulf %225, %228 : vector<8x64xf32>
    %230 = vector.extract_strided_slice %157 {offsets = [0, 1], sizes = [8, 63], strides = [1, 1]} : vector<8x64xf32> to vector<8x63xf32>
    %231 = vector.extract_strided_slice %157 {offsets = [0, 0], sizes = [8, 1], strides = [1, 1]} : vector<8x64xf32> to vector<8x1xf32>
    %232 = tpu.concatenate %230, %231 in 1 : vector<8x63xf32>, vector<8x1xf32> -> vector<8x64xf32>
    %c5_79 = arith.constant 5 : index
    %c0_80 = arith.constant 0 : index
    %c0_81 = arith.constant 0 : index
    %233 = vector.load %arg1[%c5_79, %c0_80, %c0_81] : memref<9x1x64xf32, #tpu.memory_space<vmem>>, vector<1x1x64xf32>
    %234 = vector.shape_cast %233 : vector<1x1x64xf32> to vector<1x64xf32>
    %235 = vector.broadcast %234 : vector<1x64xf32> to vector<8x64xf32>
    %236 = arith.mulf %232, %235 : vector<8x64xf32>
    %237 = tpu.concatenate %188, %195, %222, %103, %130, %229, %157, %170, %236 in 0 : vector<8x64xf32>, vector<8x64xf32>, vector<8x64xf32>, vector<8x64xf32>, vector<8x64xf32>, vector<8x64xf32>, vector<8x64xf32>, vector<8x64xf32>, vector<8x64xf32> -> vector<72x64xf32>
    %cst_82 = arith.constant dense<0.000000e+00> : vector<8x64xf32>
    %238 = tpu.matmul %174, %237, %cst_82 {dimension_numbers = #tpu.dot_dimension_numbers<[1], [0], [0], [1], [0, 0, 1, 1], [], []>} : vector<8x72xf32>, vector<72x64xf32>, vector<8x64xf32> -> vector<8x64xf32>
    %239 = vector.broadcast %172 : vector<8x1xf32> to vector<8x64xf32>
    %240 = arith.addf %238, %239 : vector<8x64xf32>
    %cst_83 = arith.constant 0.000000e+00 : f32
    %241 = vector.broadcast %cst_83 : f32 to vector<8x64xf32>
    %242 = arith.maximumf %240, %241 : vector<8x64xf32>
    %243 = vector.extract_strided_slice %130 {offsets = [0, 7], sizes = [8, 57], strides = [1, 1]} : vector<8x64xf32> to vector<8x57xf32>
    %244 = vector.extract_strided_slice %130 {offsets = [0, 0], sizes = [8, 7], strides = [1, 1]} : vector<8x64xf32> to vector<8x7xf32>
    %245 = tpu.concatenate %243, %244 in 1 : vector<8x57xf32>, vector<8x7xf32> -> vector<8x64xf32>
    %c6_84 = arith.constant 6 : index
    %c0_85 = arith.constant 0 : index
    %c0_86 = arith.constant 0 : index
    %246 = vector.load %arg1[%c6_84, %c0_85, %c0_86] : memref<9x1x64xf32, #tpu.memory_space<vmem>>, vector<1x1x64xf32>
    %247 = vector.shape_cast %246 : vector<1x1x64xf32> to vector<1x64xf32>
    %248 = vector.broadcast %247 : vector<1x64xf32> to vector<8x64xf32>
    %249 = arith.mulf %245, %248 : vector<8x64xf32>
    %250 = vector.extract_strided_slice %103 {offsets = [0, 8], sizes = [8, 56], strides = [1, 1]} : vector<8x64xf32> to vector<8x56xf32>
    %251 = vector.extract_strided_slice %103 {offsets = [0, 0], sizes = [8, 8], strides = [1, 1]} : vector<8x64xf32> to vector<8x8xf32>
    %252 = tpu.concatenate %250, %251 in 1 : vector<8x56xf32>, vector<8x8xf32> -> vector<8x64xf32>
    %c7_87 = arith.constant 7 : index
    %c0_88 = arith.constant 0 : index
    %c0_89 = arith.constant 0 : index
    %253 = vector.load %arg1[%c7_87, %c0_88, %c0_89] : memref<9x1x64xf32, #tpu.memory_space<vmem>>, vector<1x1x64xf32>
    %254 = vector.shape_cast %253 : vector<1x1x64xf32> to vector<1x64xf32>
    %255 = vector.broadcast %254 : vector<1x64xf32> to vector<8x64xf32>
    %256 = arith.mulf %252, %255 : vector<8x64xf32>
    %257 = vector.extract_strided_slice %130 {offsets = [0, 8], sizes = [8, 56], strides = [1, 1]} : vector<8x64xf32> to vector<8x56xf32>
    %258 = vector.extract_strided_slice %130 {offsets = [0, 0], sizes = [8, 8], strides = [1, 1]} : vector<8x64xf32> to vector<8x8xf32>
    %259 = tpu.concatenate %257, %258 in 1 : vector<8x56xf32>, vector<8x8xf32> -> vector<8x64xf32>
    %c7_90 = arith.constant 7 : index
    %c0_91 = arith.constant 0 : index
    %c0_92 = arith.constant 0 : index
    %260 = vector.load %arg1[%c7_90, %c0_91, %c0_92] : memref<9x1x64xf32, #tpu.memory_space<vmem>>, vector<1x1x64xf32>
    %261 = vector.shape_cast %260 : vector<1x1x64xf32> to vector<1x64xf32>
    %262 = vector.broadcast %261 : vector<1x64xf32> to vector<8x64xf32>
    %263 = arith.mulf %259, %262 : vector<8x64xf32>
    %264 = tpu.concatenate %202, %103, %130, %209, %157, %170, %249, %256, %263 in 0 : vector<8x64xf32>, vector<8x64xf32>, vector<8x64xf32>, vector<8x64xf32>, vector<8x64xf32>, vector<8x64xf32>, vector<8x64xf32>, vector<8x64xf32>, vector<8x64xf32> -> vector<72x64xf32>
    %cst_93 = arith.constant dense<0.000000e+00> : vector<8x64xf32>
    %265 = tpu.matmul %174, %264, %cst_93 {dimension_numbers = #tpu.dot_dimension_numbers<[1], [0], [0], [1], [0, 0, 1, 1], [], []>} : vector<8x72xf32>, vector<72x64xf32>, vector<8x64xf32> -> vector<8x64xf32>
    %266 = vector.broadcast %172 : vector<8x1xf32> to vector<8x64xf32>
    %267 = arith.addf %265, %266 : vector<8x64xf32>
    %cst_94 = arith.constant 0.000000e+00 : f32
    %268 = vector.broadcast %cst_94 : f32 to vector<8x64xf32>
    %269 = arith.maximumf %267, %268 : vector<8x64xf32>
    %270 = vector.extract_strided_slice %103 {offsets = [0, 9], sizes = [8, 55], strides = [1, 1]} : vector<8x64xf32> to vector<8x55xf32>
    %271 = vector.extract_strided_slice %103 {offsets = [0, 0], sizes = [8, 9], strides = [1, 1]} : vector<8x64xf32> to vector<8x9xf32>
    %272 = tpu.concatenate %270, %271 in 1 : vector<8x55xf32>, vector<8x9xf32> -> vector<8x64xf32>
    %c8_95 = arith.constant 8 : index
    %c0_96 = arith.constant 0 : index
    %c0_97 = arith.constant 0 : index
    %273 = vector.load %arg1[%c8_95, %c0_96, %c0_97] : memref<9x1x64xf32, #tpu.memory_space<vmem>>, vector<1x1x64xf32>
    %274 = vector.shape_cast %273 : vector<1x1x64xf32> to vector<1x64xf32>
    %275 = vector.broadcast %274 : vector<1x64xf32> to vector<8x64xf32>
    %276 = arith.mulf %272, %275 : vector<8x64xf32>
    %277 = tpu.concatenate %103, %130, %229, %157, %170, %236, %256, %263, %276 in 0 : vector<8x64xf32>, vector<8x64xf32>, vector<8x64xf32>, vector<8x64xf32>, vector<8x64xf32>, vector<8x64xf32>, vector<8x64xf32>, vector<8x64xf32>, vector<8x64xf32> -> vector<72x64xf32>
    %cst_98 = arith.constant dense<0.000000e+00> : vector<8x64xf32>
    %278 = tpu.matmul %174, %277, %cst_98 {dimension_numbers = #tpu.dot_dimension_numbers<[1], [0], [0], [1], [0, 0, 1, 1], [], []>} : vector<8x72xf32>, vector<72x64xf32>, vector<8x64xf32> -> vector<8x64xf32>
    %279 = vector.broadcast %172 : vector<8x1xf32> to vector<8x64xf32>
    %280 = arith.addf %278, %279 : vector<8x64xf32>
    %cst_99 = arith.constant 0.000000e+00 : f32
    %281 = vector.broadcast %cst_99 : f32 to vector<8x64xf32>
    %282 = arith.maximumf %280, %281 : vector<8x64xf32>
    %283 = tpu.concatenate %33, %215 in 0 : vector<8x64xf32>, vector<8x64xf32> -> vector<16x64xf32>
    %284 = tpu.concatenate %36, %242 in 0 : vector<8x64xf32>, vector<8x64xf32> -> vector<16x64xf32>
    %285 = tpu.concatenate %39, %269 in 0 : vector<8x64xf32>, vector<8x64xf32> -> vector<16x64xf32>
    %286 = tpu.concatenate %42, %282 in 0 : vector<8x64xf32>, vector<8x64xf32> -> vector<16x64xf32>
    %287 = vector.extract_strided_slice %6 {offsets = [3, 0, 0], sizes = [1, 8, 1], strides = [1, 1, 1]} : vector<5x8x1xf32> to vector<1x8x1xf32>
    %288 = vector.shape_cast %287 : vector<1x8x1xf32> to vector<8x1xf32>
    %c0_100 = arith.constant 0 : index
    %c0_101 = arith.constant 0 : index
    %289 = vector.load %arg8[%c0_100, %c0_101] : memref<8x144xbf16, #tpu.memory_space<vmem>>, vector<8x144xbf16>
    %290 = arith.extf %289 : vector<8x144xbf16> to vector<8x144xf32>
    %291 = vector.extract_strided_slice %286 {offsets = [0, 55], sizes = [16, 9], strides = [1, 1]} : vector<16x64xf32> to vector<16x9xf32>
    %292 = vector.extract_strided_slice %286 {offsets = [0, 0], sizes = [16, 55], strides = [1, 1]} : vector<16x64xf32> to vector<16x55xf32>
    %293 = tpu.concatenate %291, %292 in 1 : vector<16x9xf32>, vector<16x55xf32> -> vector<16x64xf32>
    %c0_102 = arith.constant 0 : index
    %c0_103 = arith.constant 0 : index
    %c0_104 = arith.constant 0 : index
    %294 = vector.load %arg1[%c0_102, %c0_103, %c0_104] : memref<9x1x64xf32, #tpu.memory_space<vmem>>, vector<1x1x64xf32>
    %295 = vector.shape_cast %294 : vector<1x1x64xf32> to vector<1x64xf32>
    %296 = vector.broadcast %295 : vector<1x64xf32> to vector<16x64xf32>
    %297 = arith.mulf %293, %296 : vector<16x64xf32>
    %298 = vector.extract_strided_slice %285 {offsets = [0, 56], sizes = [16, 8], strides = [1, 1]} : vector<16x64xf32> to vector<16x8xf32>
    %299 = vector.extract_strided_slice %285 {offsets = [0, 0], sizes = [16, 56], strides = [1, 1]} : vector<16x64xf32> to vector<16x56xf32>
    %300 = tpu.concatenate %298, %299 in 1 : vector<16x8xf32>, vector<16x56xf32> -> vector<16x64xf32>
    %c1_105 = arith.constant 1 : index
    %c0_106 = arith.constant 0 : index
    %c0_107 = arith.constant 0 : index
    %301 = vector.load %arg1[%c1_105, %c0_106, %c0_107] : memref<9x1x64xf32, #tpu.memory_space<vmem>>, vector<1x1x64xf32>
    %302 = vector.shape_cast %301 : vector<1x1x64xf32> to vector<1x64xf32>
    %303 = vector.broadcast %302 : vector<1x64xf32> to vector<16x64xf32>
    %304 = arith.mulf %300, %303 : vector<16x64xf32>
    %305 = vector.extract_strided_slice %286 {offsets = [0, 56], sizes = [16, 8], strides = [1, 1]} : vector<16x64xf32> to vector<16x8xf32>
    %306 = vector.extract_strided_slice %286 {offsets = [0, 0], sizes = [16, 56], strides = [1, 1]} : vector<16x64xf32> to vector<16x56xf32>
    %307 = tpu.concatenate %305, %306 in 1 : vector<16x8xf32>, vector<16x56xf32> -> vector<16x64xf32>
    %c1_108 = arith.constant 1 : index
    %c0_109 = arith.constant 0 : index
    %c0_110 = arith.constant 0 : index
    %308 = vector.load %arg1[%c1_108, %c0_109, %c0_110] : memref<9x1x64xf32, #tpu.memory_space<vmem>>, vector<1x1x64xf32>
    %309 = vector.shape_cast %308 : vector<1x1x64xf32> to vector<1x64xf32>
    %310 = vector.broadcast %309 : vector<1x64xf32> to vector<16x64xf32>
    %311 = arith.mulf %307, %310 : vector<16x64xf32>
    %312 = vector.extract_strided_slice %284 {offsets = [0, 63], sizes = [16, 1], strides = [1, 1]} : vector<16x64xf32> to vector<16x1xf32>
    %313 = vector.extract_strided_slice %284 {offsets = [0, 0], sizes = [16, 63], strides = [1, 1]} : vector<16x64xf32> to vector<16x63xf32>
    %314 = tpu.concatenate %312, %313 in 1 : vector<16x1xf32>, vector<16x63xf32> -> vector<16x64xf32>
    %c3_111 = arith.constant 3 : index
    %c0_112 = arith.constant 0 : index
    %c0_113 = arith.constant 0 : index
    %315 = vector.load %arg1[%c3_111, %c0_112, %c0_113] : memref<9x1x64xf32, #tpu.memory_space<vmem>>, vector<1x1x64xf32>
    %316 = vector.shape_cast %315 : vector<1x1x64xf32> to vector<1x64xf32>
    %317 = vector.broadcast %316 : vector<1x64xf32> to vector<16x64xf32>
    %318 = arith.mulf %314, %317 : vector<16x64xf32>
    %319 = vector.extract_strided_slice %286 {offsets = [0, 63], sizes = [16, 1], strides = [1, 1]} : vector<16x64xf32> to vector<16x1xf32>
    %320 = vector.extract_strided_slice %286 {offsets = [0, 0], sizes = [16, 63], strides = [1, 1]} : vector<16x64xf32> to vector<16x63xf32>
    %321 = tpu.concatenate %319, %320 in 1 : vector<16x1xf32>, vector<16x63xf32> -> vector<16x64xf32>
    %c3_114 = arith.constant 3 : index
    %c0_115 = arith.constant 0 : index
    %c0_116 = arith.constant 0 : index
    %322 = vector.load %arg1[%c3_114, %c0_115, %c0_116] : memref<9x1x64xf32, #tpu.memory_space<vmem>>, vector<1x1x64xf32>
    %323 = vector.shape_cast %322 : vector<1x1x64xf32> to vector<1x64xf32>
    %324 = vector.broadcast %323 : vector<1x64xf32> to vector<16x64xf32>
    %325 = arith.mulf %321, %324 : vector<16x64xf32>
    %326 = tpu.concatenate %297, %304, %311, %318, %283, %284, %325, %285, %286 in 0 : vector<16x64xf32>, vector<16x64xf32>, vector<16x64xf32>, vector<16x64xf32>, vector<16x64xf32>, vector<16x64xf32>, vector<16x64xf32>, vector<16x64xf32>, vector<16x64xf32> -> vector<144x64xf32>
    %cst_117 = arith.constant dense<0.000000e+00> : vector<8x64xf32>
    %327 = tpu.matmul %290, %326, %cst_117 {dimension_numbers = #tpu.dot_dimension_numbers<[1], [0], [0], [1], [0, 0, 1, 1], [], []>} : vector<8x144xf32>, vector<144x64xf32>, vector<8x64xf32> -> vector<8x64xf32>
    %328 = vector.broadcast %288 : vector<8x1xf32> to vector<8x64xf32>
    %329 = arith.addf %327, %328 : vector<8x64xf32>
    %cst_118 = arith.constant 0.000000e+00 : f32
    %330 = vector.broadcast %cst_118 : f32 to vector<8x64xf32>
    %331 = arith.maximumf %329, %330 : vector<8x64xf32>
    %332 = vector.extract_strided_slice %285 {offsets = [0, 57], sizes = [16, 7], strides = [1, 1]} : vector<16x64xf32> to vector<16x7xf32>
    %333 = vector.extract_strided_slice %285 {offsets = [0, 0], sizes = [16, 57], strides = [1, 1]} : vector<16x64xf32> to vector<16x57xf32>
    %334 = tpu.concatenate %332, %333 in 1 : vector<16x7xf32>, vector<16x57xf32> -> vector<16x64xf32>
    %c2_119 = arith.constant 2 : index
    %c0_120 = arith.constant 0 : index
    %c0_121 = arith.constant 0 : index
    %335 = vector.load %arg1[%c2_119, %c0_120, %c0_121] : memref<9x1x64xf32, #tpu.memory_space<vmem>>, vector<1x1x64xf32>
    %336 = vector.shape_cast %335 : vector<1x1x64xf32> to vector<1x64xf32>
    %337 = vector.broadcast %336 : vector<1x64xf32> to vector<16x64xf32>
    %338 = arith.mulf %334, %337 : vector<16x64xf32>
    %339 = vector.extract_strided_slice %283 {offsets = [0, 1], sizes = [16, 63], strides = [1, 1]} : vector<16x64xf32> to vector<16x63xf32>
    %340 = vector.extract_strided_slice %283 {offsets = [0, 0], sizes = [16, 1], strides = [1, 1]} : vector<16x64xf32> to vector<16x1xf32>
    %341 = tpu.concatenate %339, %340 in 1 : vector<16x63xf32>, vector<16x1xf32> -> vector<16x64xf32>
    %c5_122 = arith.constant 5 : index
    %c0_123 = arith.constant 0 : index
    %c0_124 = arith.constant 0 : index
    %342 = vector.load %arg1[%c5_122, %c0_123, %c0_124] : memref<9x1x64xf32, #tpu.memory_space<vmem>>, vector<1x1x64xf32>
    %343 = vector.shape_cast %342 : vector<1x1x64xf32> to vector<1x64xf32>
    %344 = vector.broadcast %343 : vector<1x64xf32> to vector<16x64xf32>
    %345 = arith.mulf %341, %344 : vector<16x64xf32>
    %346 = vector.extract_strided_slice %285 {offsets = [0, 1], sizes = [16, 63], strides = [1, 1]} : vector<16x64xf32> to vector<16x63xf32>
    %347 = vector.extract_strided_slice %285 {offsets = [0, 0], sizes = [16, 1], strides = [1, 1]} : vector<16x64xf32> to vector<16x1xf32>
    %348 = tpu.concatenate %346, %347 in 1 : vector<16x63xf32>, vector<16x1xf32> -> vector<16x64xf32>
    %c5_125 = arith.constant 5 : index
    %c0_126 = arith.constant 0 : index
    %c0_127 = arith.constant 0 : index
    %349 = vector.load %arg1[%c5_125, %c0_126, %c0_127] : memref<9x1x64xf32, #tpu.memory_space<vmem>>, vector<1x1x64xf32>
    %350 = vector.shape_cast %349 : vector<1x1x64xf32> to vector<1x64xf32>
    %351 = vector.broadcast %350 : vector<1x64xf32> to vector<16x64xf32>
    %352 = arith.mulf %348, %351 : vector<16x64xf32>
    %353 = tpu.concatenate %304, %311, %338, %283, %284, %345, %285, %286, %352 in 0 : vector<16x64xf32>, vector<16x64xf32>, vector<16x64xf32>, vector<16x64xf32>, vector<16x64xf32>, vector<16x64xf32>, vector<16x64xf32>, vector<16x64xf32>, vector<16x64xf32> -> vector<144x64xf32>
    %cst_128 = arith.constant dense<0.000000e+00> : vector<8x64xf32>
    %354 = tpu.matmul %290, %353, %cst_128 {dimension_numbers = #tpu.dot_dimension_numbers<[1], [0], [0], [1], [0, 0, 1, 1], [], []>} : vector<8x144xf32>, vector<144x64xf32>, vector<8x64xf32> -> vector<8x64xf32>
    %355 = vector.broadcast %288 : vector<8x1xf32> to vector<8x64xf32>
    %356 = arith.addf %354, %355 : vector<8x64xf32>
    %cst_129 = arith.constant 0.000000e+00 : f32
    %357 = vector.broadcast %cst_129 : f32 to vector<8x64xf32>
    %358 = arith.maximumf %356, %357 : vector<8x64xf32>
    %359 = vector.extract_strided_slice %284 {offsets = [0, 7], sizes = [16, 57], strides = [1, 1]} : vector<16x64xf32> to vector<16x57xf32>
    %360 = vector.extract_strided_slice %284 {offsets = [0, 0], sizes = [16, 7], strides = [1, 1]} : vector<16x64xf32> to vector<16x7xf32>
    %361 = tpu.concatenate %359, %360 in 1 : vector<16x57xf32>, vector<16x7xf32> -> vector<16x64xf32>
    %c6_130 = arith.constant 6 : index
    %c0_131 = arith.constant 0 : index
    %c0_132 = arith.constant 0 : index
    %362 = vector.load %arg1[%c6_130, %c0_131, %c0_132] : memref<9x1x64xf32, #tpu.memory_space<vmem>>, vector<1x1x64xf32>
    %363 = vector.shape_cast %362 : vector<1x1x64xf32> to vector<1x64xf32>
    %364 = vector.broadcast %363 : vector<1x64xf32> to vector<16x64xf32>
    %365 = arith.mulf %361, %364 : vector<16x64xf32>
    %366 = vector.extract_strided_slice %283 {offsets = [0, 8], sizes = [16, 56], strides = [1, 1]} : vector<16x64xf32> to vector<16x56xf32>
    %367 = vector.extract_strided_slice %283 {offsets = [0, 0], sizes = [16, 8], strides = [1, 1]} : vector<16x64xf32> to vector<16x8xf32>
    %368 = tpu.concatenate %366, %367 in 1 : vector<16x56xf32>, vector<16x8xf32> -> vector<16x64xf32>
    %c7_133 = arith.constant 7 : index
    %c0_134 = arith.constant 0 : index
    %c0_135 = arith.constant 0 : index
    %369 = vector.load %arg1[%c7_133, %c0_134, %c0_135] : memref<9x1x64xf32, #tpu.memory_space<vmem>>, vector<1x1x64xf32>
    %370 = vector.shape_cast %369 : vector<1x1x64xf32> to vector<1x64xf32>
    %371 = vector.broadcast %370 : vector<1x64xf32> to vector<16x64xf32>
    %372 = arith.mulf %368, %371 : vector<16x64xf32>
    %373 = vector.extract_strided_slice %284 {offsets = [0, 8], sizes = [16, 56], strides = [1, 1]} : vector<16x64xf32> to vector<16x56xf32>
    %374 = vector.extract_strided_slice %284 {offsets = [0, 0], sizes = [16, 8], strides = [1, 1]} : vector<16x64xf32> to vector<16x8xf32>
    %375 = tpu.concatenate %373, %374 in 1 : vector<16x56xf32>, vector<16x8xf32> -> vector<16x64xf32>
    %c7_136 = arith.constant 7 : index
    %c0_137 = arith.constant 0 : index
    %c0_138 = arith.constant 0 : index
    %376 = vector.load %arg1[%c7_136, %c0_137, %c0_138] : memref<9x1x64xf32, #tpu.memory_space<vmem>>, vector<1x1x64xf32>
    %377 = vector.shape_cast %376 : vector<1x1x64xf32> to vector<1x64xf32>
    %378 = vector.broadcast %377 : vector<1x64xf32> to vector<16x64xf32>
    %379 = arith.mulf %375, %378 : vector<16x64xf32>
    %380 = tpu.concatenate %318, %283, %284, %325, %285, %286, %365, %372, %379 in 0 : vector<16x64xf32>, vector<16x64xf32>, vector<16x64xf32>, vector<16x64xf32>, vector<16x64xf32>, vector<16x64xf32>, vector<16x64xf32>, vector<16x64xf32>, vector<16x64xf32> -> vector<144x64xf32>
    %cst_139 = arith.constant dense<0.000000e+00> : vector<8x64xf32>
    %381 = tpu.matmul %290, %380, %cst_139 {dimension_numbers = #tpu.dot_dimension_numbers<[1], [0], [0], [1], [0, 0, 1, 1], [], []>} : vector<8x144xf32>, vector<144x64xf32>, vector<8x64xf32> -> vector<8x64xf32>
    %382 = vector.broadcast %288 : vector<8x1xf32> to vector<8x64xf32>
    %383 = arith.addf %381, %382 : vector<8x64xf32>
    %cst_140 = arith.constant 0.000000e+00 : f32
    %384 = vector.broadcast %cst_140 : f32 to vector<8x64xf32>
    %385 = arith.maximumf %383, %384 : vector<8x64xf32>
    %386 = vector.extract_strided_slice %283 {offsets = [0, 9], sizes = [16, 55], strides = [1, 1]} : vector<16x64xf32> to vector<16x55xf32>
    %387 = vector.extract_strided_slice %283 {offsets = [0, 0], sizes = [16, 9], strides = [1, 1]} : vector<16x64xf32> to vector<16x9xf32>
    %388 = tpu.concatenate %386, %387 in 1 : vector<16x55xf32>, vector<16x9xf32> -> vector<16x64xf32>
    %c8_141 = arith.constant 8 : index
    %c0_142 = arith.constant 0 : index
    %c0_143 = arith.constant 0 : index
    %389 = vector.load %arg1[%c8_141, %c0_142, %c0_143] : memref<9x1x64xf32, #tpu.memory_space<vmem>>, vector<1x1x64xf32>
    %390 = vector.shape_cast %389 : vector<1x1x64xf32> to vector<1x64xf32>
    %391 = vector.broadcast %390 : vector<1x64xf32> to vector<16x64xf32>
    %392 = arith.mulf %388, %391 : vector<16x64xf32>
    %393 = tpu.concatenate %283, %284, %345, %285, %286, %352, %372, %379, %392 in 0 : vector<16x64xf32>, vector<16x64xf32>, vector<16x64xf32>, vector<16x64xf32>, vector<16x64xf32>, vector<16x64xf32>, vector<16x64xf32>, vector<16x64xf32>, vector<16x64xf32> -> vector<144x64xf32>
    %cst_144 = arith.constant dense<0.000000e+00> : vector<8x64xf32>
    %394 = tpu.matmul %290, %393, %cst_144 {dimension_numbers = #tpu.dot_dimension_numbers<[1], [0], [0], [1], [0, 0, 1, 1], [], []>} : vector<8x144xf32>, vector<144x64xf32>, vector<8x64xf32> -> vector<8x64xf32>
    %395 = vector.broadcast %288 : vector<8x1xf32> to vector<8x64xf32>
    %396 = arith.addf %394, %395 : vector<8x64xf32>
    %cst_145 = arith.constant 0.000000e+00 : f32
    %397 = vector.broadcast %cst_145 : f32 to vector<8x64xf32>
    %398 = arith.maximumf %396, %397 : vector<8x64xf32>
    %399 = vector.extract_strided_slice %6 {offsets = [4, 0, 0], sizes = [1, 8, 1], strides = [1, 1, 1]} : vector<5x8x1xf32> to vector<1x8x1xf32>
    %400 = vector.shape_cast %399 : vector<1x8x1xf32> to vector<8x1xf32>
    %c0_146 = arith.constant 0 : index
    %c0_147 = arith.constant 0 : index
    %401 = vector.load %arg9[%c0_146, %c0_147] : memref<8x72xbf16, #tpu.memory_space<vmem>>, vector<8x72xbf16>
    %402 = arith.extf %401 : vector<8x72xbf16> to vector<8x72xf32>
    %403 = vector.extract_strided_slice %398 {offsets = [0, 55], sizes = [8, 9], strides = [1, 1]} : vector<8x64xf32> to vector<8x9xf32>
    %404 = vector.extract_strided_slice %398 {offsets = [0, 0], sizes = [8, 55], strides = [1, 1]} : vector<8x64xf32> to vector<8x55xf32>
    %405 = tpu.concatenate %403, %404 in 1 : vector<8x9xf32>, vector<8x55xf32> -> vector<8x64xf32>
    %c0_148 = arith.constant 0 : index
    %c0_149 = arith.constant 0 : index
    %c0_150 = arith.constant 0 : index
    %406 = vector.load %arg1[%c0_148, %c0_149, %c0_150] : memref<9x1x64xf32, #tpu.memory_space<vmem>>, vector<1x1x64xf32>
    %407 = vector.shape_cast %406 : vector<1x1x64xf32> to vector<1x64xf32>
    %408 = vector.broadcast %407 : vector<1x64xf32> to vector<8x64xf32>
    %409 = arith.mulf %405, %408 : vector<8x64xf32>
    %410 = vector.extract_strided_slice %385 {offsets = [0, 56], sizes = [8, 8], strides = [1, 1]} : vector<8x64xf32> to vector<8x8xf32>
    %411 = vector.extract_strided_slice %385 {offsets = [0, 0], sizes = [8, 56], strides = [1, 1]} : vector<8x64xf32> to vector<8x56xf32>
    %412 = tpu.concatenate %410, %411 in 1 : vector<8x8xf32>, vector<8x56xf32> -> vector<8x64xf32>
    %c1_151 = arith.constant 1 : index
    %c0_152 = arith.constant 0 : index
    %c0_153 = arith.constant 0 : index
    %413 = vector.load %arg1[%c1_151, %c0_152, %c0_153] : memref<9x1x64xf32, #tpu.memory_space<vmem>>, vector<1x1x64xf32>
    %414 = vector.shape_cast %413 : vector<1x1x64xf32> to vector<1x64xf32>
    %415 = vector.broadcast %414 : vector<1x64xf32> to vector<8x64xf32>
    %416 = arith.mulf %412, %415 : vector<8x64xf32>
    %417 = vector.extract_strided_slice %398 {offsets = [0, 56], sizes = [8, 8], strides = [1, 1]} : vector<8x64xf32> to vector<8x8xf32>
    %418 = vector.extract_strided_slice %398 {offsets = [0, 0], sizes = [8, 56], strides = [1, 1]} : vector<8x64xf32> to vector<8x56xf32>
    %419 = tpu.concatenate %417, %418 in 1 : vector<8x8xf32>, vector<8x56xf32> -> vector<8x64xf32>
    %c1_154 = arith.constant 1 : index
    %c0_155 = arith.constant 0 : index
    %c0_156 = arith.constant 0 : index
    %420 = vector.load %arg1[%c1_154, %c0_155, %c0_156] : memref<9x1x64xf32, #tpu.memory_space<vmem>>, vector<1x1x64xf32>
    %421 = vector.shape_cast %420 : vector<1x1x64xf32> to vector<1x64xf32>
    %422 = vector.broadcast %421 : vector<1x64xf32> to vector<8x64xf32>
    %423 = arith.mulf %419, %422 : vector<8x64xf32>
    %424 = vector.extract_strided_slice %358 {offsets = [0, 63], sizes = [8, 1], strides = [1, 1]} : vector<8x64xf32> to vector<8x1xf32>
    %425 = vector.extract_strided_slice %358 {offsets = [0, 0], sizes = [8, 63], strides = [1, 1]} : vector<8x64xf32> to vector<8x63xf32>
    %426 = tpu.concatenate %424, %425 in 1 : vector<8x1xf32>, vector<8x63xf32> -> vector<8x64xf32>
    %c3_157 = arith.constant 3 : index
    %c0_158 = arith.constant 0 : index
    %c0_159 = arith.constant 0 : index
    %427 = vector.load %arg1[%c3_157, %c0_158, %c0_159] : memref<9x1x64xf32, #tpu.memory_space<vmem>>, vector<1x1x64xf32>
    %428 = vector.shape_cast %427 : vector<1x1x64xf32> to vector<1x64xf32>
    %429 = vector.broadcast %428 : vector<1x64xf32> to vector<8x64xf32>
    %430 = arith.mulf %426, %429 : vector<8x64xf32>
    %431 = vector.extract_strided_slice %398 {offsets = [0, 63], sizes = [8, 1], strides = [1, 1]} : vector<8x64xf32> to vector<8x1xf32>
    %432 = vector.extract_strided_slice %398 {offsets = [0, 0], sizes = [8, 63], strides = [1, 1]} : vector<8x64xf32> to vector<8x63xf32>
    %433 = tpu.concatenate %431, %432 in 1 : vector<8x1xf32>, vector<8x63xf32> -> vector<8x64xf32>
    %c3_160 = arith.constant 3 : index
    %c0_161 = arith.constant 0 : index
    %c0_162 = arith.constant 0 : index
    %434 = vector.load %arg1[%c3_160, %c0_161, %c0_162] : memref<9x1x64xf32, #tpu.memory_space<vmem>>, vector<1x1x64xf32>
    %435 = vector.shape_cast %434 : vector<1x1x64xf32> to vector<1x64xf32>
    %436 = vector.broadcast %435 : vector<1x64xf32> to vector<8x64xf32>
    %437 = arith.mulf %433, %436 : vector<8x64xf32>
    %438 = tpu.concatenate %409, %416, %423, %430, %331, %358, %437, %385, %398 in 0 : vector<8x64xf32>, vector<8x64xf32>, vector<8x64xf32>, vector<8x64xf32>, vector<8x64xf32>, vector<8x64xf32>, vector<8x64xf32>, vector<8x64xf32>, vector<8x64xf32> -> vector<72x64xf32>
    %cst_163 = arith.constant dense<0.000000e+00> : vector<8x64xf32>
    %439 = tpu.matmul %402, %438, %cst_163 {dimension_numbers = #tpu.dot_dimension_numbers<[1], [0], [0], [1], [0, 0, 1, 1], [], []>} : vector<8x72xf32>, vector<72x64xf32>, vector<8x64xf32> -> vector<8x64xf32>
    %440 = vector.broadcast %400 : vector<8x1xf32> to vector<8x64xf32>
    %441 = arith.addf %439, %440 : vector<8x64xf32>
    %cst_164 = arith.constant 0.000000e+00 : f32
    %442 = vector.broadcast %cst_164 : f32 to vector<8x64xf32>
    %443 = arith.maximumf %441, %442 : vector<8x64xf32>
    %444 = vector.extract_strided_slice %385 {offsets = [0, 57], sizes = [8, 7], strides = [1, 1]} : vector<8x64xf32> to vector<8x7xf32>
    %445 = vector.extract_strided_slice %385 {offsets = [0, 0], sizes = [8, 57], strides = [1, 1]} : vector<8x64xf32> to vector<8x57xf32>
    %446 = tpu.concatenate %444, %445 in 1 : vector<8x7xf32>, vector<8x57xf32> -> vector<8x64xf32>
    %c2_165 = arith.constant 2 : index
    %c0_166 = arith.constant 0 : index
    %c0_167 = arith.constant 0 : index
    %447 = vector.load %arg1[%c2_165, %c0_166, %c0_167] : memref<9x1x64xf32, #tpu.memory_space<vmem>>, vector<1x1x64xf32>
    %448 = vector.shape_cast %447 : vector<1x1x64xf32> to vector<1x64xf32>
    %449 = vector.broadcast %448 : vector<1x64xf32> to vector<8x64xf32>
    %450 = arith.mulf %446, %449 : vector<8x64xf32>
    %451 = vector.extract_strided_slice %331 {offsets = [0, 1], sizes = [8, 63], strides = [1, 1]} : vector<8x64xf32> to vector<8x63xf32>
    %452 = vector.extract_strided_slice %331 {offsets = [0, 0], sizes = [8, 1], strides = [1, 1]} : vector<8x64xf32> to vector<8x1xf32>
    %453 = tpu.concatenate %451, %452 in 1 : vector<8x63xf32>, vector<8x1xf32> -> vector<8x64xf32>
    %c5_168 = arith.constant 5 : index
    %c0_169 = arith.constant 0 : index
    %c0_170 = arith.constant 0 : index
    %454 = vector.load %arg1[%c5_168, %c0_169, %c0_170] : memref<9x1x64xf32, #tpu.memory_space<vmem>>, vector<1x1x64xf32>
    %455 = vector.shape_cast %454 : vector<1x1x64xf32> to vector<1x64xf32>
    %456 = vector.broadcast %455 : vector<1x64xf32> to vector<8x64xf32>
    %457 = arith.mulf %453, %456 : vector<8x64xf32>
    %458 = vector.extract_strided_slice %385 {offsets = [0, 1], sizes = [8, 63], strides = [1, 1]} : vector<8x64xf32> to vector<8x63xf32>
    %459 = vector.extract_strided_slice %385 {offsets = [0, 0], sizes = [8, 1], strides = [1, 1]} : vector<8x64xf32> to vector<8x1xf32>
    %460 = tpu.concatenate %458, %459 in 1 : vector<8x63xf32>, vector<8x1xf32> -> vector<8x64xf32>
    %c5_171 = arith.constant 5 : index
    %c0_172 = arith.constant 0 : index
    %c0_173 = arith.constant 0 : index
    %461 = vector.load %arg1[%c5_171, %c0_172, %c0_173] : memref<9x1x64xf32, #tpu.memory_space<vmem>>, vector<1x1x64xf32>
    %462 = vector.shape_cast %461 : vector<1x1x64xf32> to vector<1x64xf32>
    %463 = vector.broadcast %462 : vector<1x64xf32> to vector<8x64xf32>
    %464 = arith.mulf %460, %463 : vector<8x64xf32>
    %465 = tpu.concatenate %416, %423, %450, %331, %358, %457, %385, %398, %464 in 0 : vector<8x64xf32>, vector<8x64xf32>, vector<8x64xf32>, vector<8x64xf32>, vector<8x64xf32>, vector<8x64xf32>, vector<8x64xf32>, vector<8x64xf32>, vector<8x64xf32> -> vector<72x64xf32>
    %cst_174 = arith.constant dense<0.000000e+00> : vector<8x64xf32>
    %466 = tpu.matmul %402, %465, %cst_174 {dimension_numbers = #tpu.dot_dimension_numbers<[1], [0], [0], [1], [0, 0, 1, 1], [], []>} : vector<8x72xf32>, vector<72x64xf32>, vector<8x64xf32> -> vector<8x64xf32>
    %467 = vector.broadcast %400 : vector<8x1xf32> to vector<8x64xf32>
    %468 = arith.addf %466, %467 : vector<8x64xf32>
    %cst_175 = arith.constant 0.000000e+00 : f32
    %469 = vector.broadcast %cst_175 : f32 to vector<8x64xf32>
    %470 = arith.maximumf %468, %469 : vector<8x64xf32>
    %471 = vector.extract_strided_slice %358 {offsets = [0, 7], sizes = [8, 57], strides = [1, 1]} : vector<8x64xf32> to vector<8x57xf32>
    %472 = vector.extract_strided_slice %358 {offsets = [0, 0], sizes = [8, 7], strides = [1, 1]} : vector<8x64xf32> to vector<8x7xf32>
    %473 = tpu.concatenate %471, %472 in 1 : vector<8x57xf32>, vector<8x7xf32> -> vector<8x64xf32>
    %c6_176 = arith.constant 6 : index
    %c0_177 = arith.constant 0 : index
    %c0_178 = arith.constant 0 : index
    %474 = vector.load %arg1[%c6_176, %c0_177, %c0_178] : memref<9x1x64xf32, #tpu.memory_space<vmem>>, vector<1x1x64xf32>
    %475 = vector.shape_cast %474 : vector<1x1x64xf32> to vector<1x64xf32>
    %476 = vector.broadcast %475 : vector<1x64xf32> to vector<8x64xf32>
    %477 = arith.mulf %473, %476 : vector<8x64xf32>
    %478 = vector.extract_strided_slice %331 {offsets = [0, 8], sizes = [8, 56], strides = [1, 1]} : vector<8x64xf32> to vector<8x56xf32>
    %479 = vector.extract_strided_slice %331 {offsets = [0, 0], sizes = [8, 8], strides = [1, 1]} : vector<8x64xf32> to vector<8x8xf32>
    %480 = tpu.concatenate %478, %479 in 1 : vector<8x56xf32>, vector<8x8xf32> -> vector<8x64xf32>
    %c7_179 = arith.constant 7 : index
    %c0_180 = arith.constant 0 : index
    %c0_181 = arith.constant 0 : index
    %481 = vector.load %arg1[%c7_179, %c0_180, %c0_181] : memref<9x1x64xf32, #tpu.memory_space<vmem>>, vector<1x1x64xf32>
    %482 = vector.shape_cast %481 : vector<1x1x64xf32> to vector<1x64xf32>
    %483 = vector.broadcast %482 : vector<1x64xf32> to vector<8x64xf32>
    %484 = arith.mulf %480, %483 : vector<8x64xf32>
    %485 = vector.extract_strided_slice %358 {offsets = [0, 8], sizes = [8, 56], strides = [1, 1]} : vector<8x64xf32> to vector<8x56xf32>
    %486 = vector.extract_strided_slice %358 {offsets = [0, 0], sizes = [8, 8], strides = [1, 1]} : vector<8x64xf32> to vector<8x8xf32>
    %487 = tpu.concatenate %485, %486 in 1 : vector<8x56xf32>, vector<8x8xf32> -> vector<8x64xf32>
    %c7_182 = arith.constant 7 : index
    %c0_183 = arith.constant 0 : index
    %c0_184 = arith.constant 0 : index
    %488 = vector.load %arg1[%c7_182, %c0_183, %c0_184] : memref<9x1x64xf32, #tpu.memory_space<vmem>>, vector<1x1x64xf32>
    %489 = vector.shape_cast %488 : vector<1x1x64xf32> to vector<1x64xf32>
    %490 = vector.broadcast %489 : vector<1x64xf32> to vector<8x64xf32>
    %491 = arith.mulf %487, %490 : vector<8x64xf32>
    %492 = tpu.concatenate %430, %331, %358, %437, %385, %398, %477, %484, %491 in 0 : vector<8x64xf32>, vector<8x64xf32>, vector<8x64xf32>, vector<8x64xf32>, vector<8x64xf32>, vector<8x64xf32>, vector<8x64xf32>, vector<8x64xf32>, vector<8x64xf32> -> vector<72x64xf32>
    %cst_185 = arith.constant dense<0.000000e+00> : vector<8x64xf32>
    %493 = tpu.matmul %402, %492, %cst_185 {dimension_numbers = #tpu.dot_dimension_numbers<[1], [0], [0], [1], [0, 0, 1, 1], [], []>} : vector<8x72xf32>, vector<72x64xf32>, vector<8x64xf32> -> vector<8x64xf32>
    %494 = vector.broadcast %400 : vector<8x1xf32> to vector<8x64xf32>
    %495 = arith.addf %493, %494 : vector<8x64xf32>
    %cst_186 = arith.constant 0.000000e+00 : f32
    %496 = vector.broadcast %cst_186 : f32 to vector<8x64xf32>
    %497 = arith.maximumf %495, %496 : vector<8x64xf32>
    %498 = vector.extract_strided_slice %331 {offsets = [0, 9], sizes = [8, 55], strides = [1, 1]} : vector<8x64xf32> to vector<8x55xf32>
    %499 = vector.extract_strided_slice %331 {offsets = [0, 0], sizes = [8, 9], strides = [1, 1]} : vector<8x64xf32> to vector<8x9xf32>
    %500 = tpu.concatenate %498, %499 in 1 : vector<8x55xf32>, vector<8x9xf32> -> vector<8x64xf32>
    %c8_187 = arith.constant 8 : index
    %c0_188 = arith.constant 0 : index
    %c0_189 = arith.constant 0 : index
    %501 = vector.load %arg1[%c8_187, %c0_188, %c0_189] : memref<9x1x64xf32, #tpu.memory_space<vmem>>, vector<1x1x64xf32>
    %502 = vector.shape_cast %501 : vector<1x1x64xf32> to vector<1x64xf32>
    %503 = vector.broadcast %502 : vector<1x64xf32> to vector<8x64xf32>
    %504 = arith.mulf %500, %503 : vector<8x64xf32>
    %505 = tpu.concatenate %331, %358, %457, %385, %398, %464, %484, %491, %504 in 0 : vector<8x64xf32>, vector<8x64xf32>, vector<8x64xf32>, vector<8x64xf32>, vector<8x64xf32>, vector<8x64xf32>, vector<8x64xf32>, vector<8x64xf32>, vector<8x64xf32> -> vector<72x64xf32>
    %cst_190 = arith.constant dense<0.000000e+00> : vector<8x64xf32>
    %506 = tpu.matmul %402, %505, %cst_190 {dimension_numbers = #tpu.dot_dimension_numbers<[1], [0], [0], [1], [0, 0, 1, 1], [], []>} : vector<8x72xf32>, vector<72x64xf32>, vector<8x64xf32> -> vector<8x64xf32>
    %507 = vector.broadcast %400 : vector<8x1xf32> to vector<8x64xf32>
    %508 = arith.addf %506, %507 : vector<8x64xf32>
    %cst_191 = arith.constant 0.000000e+00 : f32
    %509 = vector.broadcast %cst_191 : f32 to vector<8x64xf32>
    %510 = arith.maximumf %508, %509 : vector<8x64xf32>
    %511 = tpu.concatenate %443, %470, %497, %510 in 1 : vector<8x64xf32>, vector<8x64xf32>, vector<8x64xf32>, vector<8x64xf32> -> vector<8x256xf32>
    %c0_192 = arith.constant 0 : index
    %c0_193 = arith.constant 0 : index
    %c0_194 = arith.constant 0 : index
    %512 = vector.load %arg11[%c0_192, %c0_193, %c0_194] : memref<1x8x256xf32, #tpu.memory_space<vmem>>, vector<1x8x256xf32>
    %513 = vector.shape_cast %512 : vector<1x8x256xf32> to vector<8x256xf32>
    %514 = vector.shape_cast %511 : vector<8x256xf32> to vector<1x8x256xf32>
    tpu.vector_store %arg11[%c0_192, %c0_193, %c0_194], %514 {strides = array<i32>} : memref<1x8x256xf32, #tpu.memory_space<vmem>>, vector<1x8x256xf32>,
    return
  }
  func.func @transform_0(%arg0: i32) -> (i32, i32, i32) {
    %c0_i32 = arith.constant 0 : i32
    %c0_i32_0 = arith.constant 0 : i32
    %c0_i32_1 = arith.constant 0 : i32
    %c0_i32_2 = arith.constant 0 : i32
    return %c0_i32, %c0_i32_0, %c0_i32_1 : i32, i32, i32
  }
  func.func @transform_1(%arg0: i32) -> (i32, i32, i32) {
    %c0_i32 = arith.constant 0 : i32
    %c0_i32_0 = arith.constant 0 : i32
    %c0_i32_1 = arith.constant 0 : i32
    return %arg0, %c0_i32, %c0_i32_0 : i32, i32, i32
  }
  func.func @transform_2(%arg0: i32) -> (i32, i32, i32, i32) {
    %c0_i32 = arith.constant 0 : i32
    %c0_i32_0 = arith.constant 0 : i32
    %c0_i32_1 = arith.constant 0 : i32
    %c0_i32_2 = arith.constant 0 : i32
    return %arg0, %c0_i32, %c0_i32_0, %c0_i32_1 : i32, i32, i32, i32
  }
  func.func @transform_3(%arg0: i32) -> (i32, i32, i32, i32) {
    %c0_i32 = arith.constant 0 : i32
    %c0_i32_0 = arith.constant 0 : i32
    %c0_i32_1 = arith.constant 0 : i32
    %c0_i32_2 = arith.constant 0 : i32
    return %arg0, %c0_i32, %c0_i32_0, %c0_i32_1 : i32, i32, i32, i32
  }
  func.func @transform_4(%arg0: i32) -> (i32, i32) {
    %c0_i32 = arith.constant 0 : i32
    %c0_i32_0 = arith.constant 0 : i32
    %c0_i32_1 = arith.constant 0 : i32
    return %c0_i32, %c0_i32_0 : i32, i32
  }
  func.func @transform_5(%arg0: i32) -> (i32, i32) {
    %c0_i32 = arith.constant 0 : i32
    %c0_i32_0 = arith.constant 0 : i32
    %c0_i32_1 = arith.constant 0 : i32
    return %c0_i32, %c0_i32_0 : i32, i32
  }
  func.func @transform_6(%arg0: i32) -> (i32, i32) {
    %c0_i32 = arith.constant 0 : i32
    %c0_i32_0 = arith.constant 0 : i32
    %c0_i32_1 = arith.constant 0 : i32
    return %c0_i32, %c0_i32_0 : i32, i32
  }
  func.func @transform_7(%arg0: i32) -> (i32, i32) {
    %c0_i32 = arith.constant 0 : i32
    %c0_i32_0 = arith.constant 0 : i32
    %c0_i32_1 = arith.constant 0 : i32
    return %c0_i32, %c0_i32_0 : i32, i32
  }
  func.func @transform_8(%arg0: i32) -> (i32, i32) {
    %c0_i32 = arith.constant 0 : i32
    %c0_i32_0 = arith.constant 0 : i32
    %c0_i32_1 = arith.constant 0 : i32
    return %c0_i32, %c0_i32_0 : i32, i32
  }
  func.func @transform_9(%arg0: i32) -> (i32, i32, i32) {
    %c0_i32 = arith.constant 0 : i32
    %c0_i32_0 = arith.constant 0 : i32
    %c0_i32_1 = arith.constant 0 : i32
    %c0_i32_2 = arith.constant 0 : i32
    return %c0_i32, %c0_i32_0, %c0_i32_1 : i32, i32, i32
  }
  func.func @transform_10(%arg0: i32) -> (i32, i32, i32) {
    %c0_i32 = arith.constant 0 : i32
    %c0_i32_0 = arith.constant 0 : i32
    %c0_i32_1 = arith.constant 0 : i32
    return %arg0, %c0_i32, %c0_i32_0 : i32, i32, i32
  }
}

</mosaic_0001>

<bundles_post_ra>
// kernel: tpu_custom_call.1
= control target key start
LH: loop header
LB: loop body
LE: loop exit
PB: predicated region body
PF: predicated region fallthrough
CT: control target
= control target key end

     0   :  { %6 = vsyncpa [#allocation3], 0  ;;  %s118_s0 = inlined_call_operand.hbm [shape: f32[8,64], index: 0, kind: input, shape index: {}]   ;;  %s119_s1 = inlined_call_operand.hbm [shape: f32[8,64], index: 1, kind: output, shape index: {}]  }
   0x1   :  { %7 = vsyncpa [#allocation4], 0  ;;  %s98_s6 = smov [#allocation2]  }
   0x2   :  { %s14_s7 = sshll.u32 %s98_s6, 4  ;;  %s15_s7 = int_to_ptr.vmem [resolvable:$true] %s14_s7 }
   0x3   :  { %s62_s8 = scalar_lea.vmem %s15_s7, 128  ;;  %p67_p1 = scmp.lt.s32.totalorder %s15_s7, %s15_s7 }
   0x4   :  { %p63_p0 = scmp.ne.s32.totalorder %s15_s7, %s62_s8  ;;  %p68_p2 = scmp.lt.s32.totalorder %s62_s8, %s62_s8 }
   0x6   :  { %p69_p3 = por %p68_p2, %p67_p1 }
   0x8   :  { %p70_p4 = pnand %p69_p3, %p63_p0 }
   0xa   :  { %73 = shalt.err (!%p70_p4)
}
   0xb   :  { %17 = dma.hbm_to_vmem [thread:$0]  %s118_s0, 128, %s15_s7, [#allocation3]  }
   0xc   :  { %94 = dma.done.wait [#allocation3], 128  }
   0xd   :  { %95 = vsyncadd [#allocation3], 4294967168  ;;  %v21_v0 = vld [vmem:[#allocation2] sm:$0xff]  ;;  %s99_s11 = smov 64   ;;  %vm22_vm0 = vcmask 1048064   ;;  %s100_s12 = smov 65  }
   0xe   :  { %23 = vrot.lane.b32.xlu0 %v21_v0, %s99_s11  ;;  %s101_s13 = smov [#allocation5]   ;;  %vm33_vm1 = vcmask 523264  }
   0xf   :  { %s41_s14 = sshll.u32 %s101_s13, 4  ;;  %s42_s14 = int_to_ptr.vmem [resolvable:$true] %s41_s14 }
  0x10   :  { %s74_s0 = scalar_lea.vmem %s42_s14, 128  ;;  %p79_p6 = scmp.lt.s32.totalorder %s42_s14, %s42_s14 }
  0x11   :  { %p75_p5 = scmp.ne.s32.totalorder %s42_s14, %s74_s0  ;;  %p80_p7 = scmp.lt.s32.totalorder %s74_s0, %s74_s0 }
  0x13   :  { %p81_p8 = por %p80_p7, %p79_p6 }
  0x15   :  { %p82_p9 = pnand %p81_p8, %p75_p5 }
  0x80   :  { %v24_v1 = vpop.permute.xlu0 %23 }
  0x81   :  { %v25_v2 = vsel %vm22_vm0, %v24_v1, %v21_v0 }
  0x82   :  { %26 = vrot.lane.b32.xlu0 %v25_v2, %s99_s11 }
  0xf4   :  { %v27_v3 = vpop.permute.xlu0 %26 }
  0xf5   :  { %v28_v4 = vsel %vm22_vm0, %v27_v3, %v21_v0 }
  0xf6   :  { %30 = vrot.lane.b32.xlu1 %v28_v4, %s100_s12 }
 0x168   :  { %v31_v5 = vpop.permute.xlu1 %30 }
 0x169   :  { %34 = vst.msk [vmem:[#allocation5] sm:$0xff] %vm33_vm1, %v31_v5 }
 0x16a   :  { %85 = shalt.err (!%p82_p9)
}
 0x16b   :  { %44 = dma.vmem_to_hbm [thread:$0]  %s42_s14, 128, %s119_s1, [#allocation4]  }
 0x16c   :  { %96 = dma.done.wait [#allocation4], 128  }
 0x16d   :  { %97 = vsyncadd [#allocation4], 4294967168 }
 0x16e   :  { %48 = vsyncpa [#allocation3], 1 }
 0x16f   :  { %49 = vsyncpa [#allocation4], 1 }

// kernel: upblock_forward.1
= control target key start
LH: loop header
LB: loop body
LE: loop exit
PB: predicated region body
PF: predicated region fallthrough
CT: control target
= control target key end

     0   :  { %s2978_s13 = smov 0   ;;  %s4100_s0 = inlined_call_operand.vmem [shape: f32[9,1,64], index: 0, kind: input, shape index: {}]   ;;  %s4101_s1 = inlined_call_operand.vmem [shape: bf16[2,8,64], index: 1, kind: input, shape index: {}]   ;;  %s4102_s2 = inlined_call_operand.vmem [shape: bf16[2,4,8,64], index: 2, kind: input, shape index: {}]   ;;  %s4103_s3 = inlined_call_operand.vmem [shape: bf16[2,4,8,64], index: 3, kind: input, shape index: {}]   ;;  %s4104_s4 = inlined_call_operand.vmem [shape: bf16[32,8], index: 4, kind: input, shape index: {}]   ;;  %s4105_s5 = inlined_call_operand.vmem [shape: bf16[8,144], index: 5, kind: input, shape index: {}]   ;;  %s4106_s6 = inlined_call_operand.vmem [shape: bf16[8,72], index: 6, kind: input, shape index: {}]   ;;  %s4107_s7 = inlined_call_operand.vmem [shape: bf16[8,144], index: 7, kind: input, shape index: {}]   ;;  %s4108_s8 = inlined_call_operand.vmem [shape: bf16[8,72], index: 8, kind: input, shape index: {}]   ;;  %s4109_s9 = inlined_call_operand.vmem [shape: f32[5,8,1], index: 9, kind: input, shape index: {}]   ;;  %s4110_s10 = inlined_call_operand.vmem [shape: f32[2,8,256], index: 10, kind: output, shape index: {}]  }
   0x1 LB: > { %s2477_s14 = sadd.s32 4294967295, %s2901_s13   ;;  %p2481_p0 = scmp.ge.s32.totalorder %s2901_s13, 1  ;;  %s2901_s13 = sphi %s2978_s13, %s20_s13  }
   0x2   : > { %p331_p1 = scmp.lt.s32.totalorder %s2901_s13, 3 }
   0x4   : > { %p332_p2 = pnand %p2481_p0, %p331_p1 }
   0x5   : > { %p378_p3 = scmp.lt.s32.totalorder (!%p332_p2), %s2477_s14, 1  ;;  %s2904_s29 = smov (!%p332_p2), 1  }
   0x6   : > { %335 = sbr.rel (%p332_p2) target bundleno = 1862 (0x746), region = 60  ;;  %s2905_s30 = smov (!%p332_p2), 65  }
   0x7   : > { %s2906_s11 = smov (!%p332_p2), 72   ;;  %s2907_s12 = smov (!%p332_p2), 8  }
   0x8   : > { %s2909_s15 = smov (!%p332_p2), 127   ;;  %s2910_s16 = smov (!%p332_p2), 9  }
   0x9   : > { %s2911_s17 = smov (!%p332_p2), 73   ;;  %s2912_s18 = smov (!%p332_p2), 7  }
   0xa   : > { %s2915_s25 = smov (!%p332_p2), 56   ;;  %s2916_s26 = smov (!%p332_p2), 120  }
   0xb   : > { %v2530_v0 = vld [vmem:[%s4104_s4] sm:$0xff]   ;;  %vm407_vm0 = vcmask 64512   ;;  %v2903_v3 = vmov 0   ;;  %s4119_s14 = smov (!%p378_p3, %s2477_s14), 1  ;;  %v2553_v4 = vld [vmem:[%s4104_s4 + $0x8] sm:$0xff]   ;;  %v2914_v18 = vmov 0.0  }
   0xc   : > { %v505_v1 = vld [vmem:[%s4109_s9] sm:$0xff]  ;;  %v2531_v2 = vunpack.c.l.bf16 %v2530_v0  ;;  %2845 = vset.pattern.permute.xlu0 %v2903_v3  ;;  %2866 = vset.pattern.permute.xlu1 %v2903_v3  ;;  %s2482_s19 = sshll.u32 %s4119_s14, 2  ;;  %s2993_s20 = sshll.u32 %s4119_s14, 4  ;;  %v2532_v9 = vunpack.c.h.bf16 %v2530_v0  ;;  %v2535_v11 = vunpack.c.l.bf16 %v2553_v4  ;;  %v2536_v14 = vunpack.c.h.bf16 %v2553_v4  ;;  %v506_v44 = vld [vmem:[%s4109_s9 + $0x8] sm:$0xff] }
   0xd   : > { %512 = vperm.xlu0 %2845, %v505_v1   ;;  %s381_s23 = scalar_lea.vmem %s4101_s1, %s2482_s19  ;;  %s391_s28 = scalar_lea.vmem %s4103_s3, %s2993_s20  ;;  %658 = vmatprep.subr.mxu1 %v2914_v18  ;;  %vm620_vm1 = vcmask 7168   ;;  %vm768_vm2 = vcmask 515072   ;;  %v3065_v35 = vld [vmem:[%s4100_s0 + $0x3] ss:$0 sm:$0xff]  ;;  %v3077_v38 = vld [vmem:[%s4100_s0 + $0x5] ss:$0 sm:$0xff] }
   0xe   : > { %2643 = vmatprep.mubr.msk.f32.mxu0 %vm407_vm0, %v2531_v2  ;;  %v397_v5 = vld [vmem:[%s381_s23] sm:$0xf]  ;;  %v2555_v8 = vld [vmem:[%s391_s28 + $0x8] sm:$0xff]   ;;  %s2908_s14 = smov 63   ;;  %s2913_s19 = smov 71   ;;  %vm654_vm3 = vcmask 130048  }
   0xf   : > { %v398_v6 = vunpack.c.l.bf16 %v397_v5  ;;  %v2546_v7 = vld [vmem:[%s391_s28] sm:$0xff]   ;;  %v3007_v12 = vunpack.c.l.bf16 %v2555_v8  ;;  %v3009_v13 = vunpack.c.h.bf16 %v2555_v8  ;;  %s4114_s21 = smov 57   ;;  %s4113_s22 = smov 121   ;;  %vm741_vm4 = vcmask 56320  }
  0x10   : > { %v3005_v10 = vunpack.c.h.bf16 %v2546_v7  ;;  %v3020_v17 = vunpack.c.l.bf16 %v2546_v7  ;;  %v3121_v42 = vld [vmem:[%s4105_s5] sm:$0xff]  ;;  %s2919_s23 = smov 55   ;;  %s4111_s24 = smov 119   ;;  %vm552_vm5 = vcmask 72704   ;;  %vm905_vm6 = vcmask 457728  }
  0x11   : > { %2641 = vmatprep.subr.mxu0 %v398_v6  ;;  %v2856_v16 = vpack.i.bf16 %v3007_v12, %v3009_v13  ;;  %659 = vmatpush1.msra.mxu1 %v3007_v12  ;;  %v3124_v43 = vunpack.c.h.bf16 %v3121_v42  ;;  %v3195_v60 = vld [vmem:[%s4100_s0 + $0x2] ss:$0 sm:$0xff]  ;;  %vm880_vm7 = vcmask 465920   ;;  %vm1017_vm8 = vcmask 449536   ;;  %s4115_s28 = smov 119  }
  0x12   : > { %2642 = vmatpush3.msra.mxu0 %v398_v6  ;;  %v2851_v15 = vpack.i.bf16 %v3005_v10, %v3009_v13  ;;  %660 = vmatprep.subr.mxu1 %v2914_v18  ;;  %vm2921_vm9 = vmmov 0   ;;  %vm1151_vm10 = vcmask 588800   ;;  %vm2393_vm11 = vcmask 523264  }
  0x13   : > { %2644 = vmatmul.mubr.msk.f32.vlgmr.msra.gmra.mxu0 %vm407_vm0, %v2532_v9  ;;  %797 = vmatprep.subr.mxu0 %v2914_v18 }
  0x14   : > { %2646 = vmatprep.mubr.msk.f32.mxu0 %vm407_vm0, %v2535_v11  ;;  %2852 = vrot.lane.b32.xlu1 %v2851_v15, %s2904_s29 }
  0x15   : > { %2847 = vrot.lane.b32.xlu0 %v2851_v15, %s2905_s30  ;;  %798 = vmatpush1.msra.mxu0 %v3009_v13 }
  0x16   : > { %799 = vmatprep.subr.mxu0 %v2914_v18  ;;  %2498 = vmatprep.mubr.msk.f32.mxu1 %vm654_vm3, %v3124_v43 }
  0x17   : > { %2647 = vmatmul.mubr.msk.f32.gmra.mxu0 %vm407_vm0, %v2536_v14 }
  0x18   : > { %2857 = vrot.lane.b32.xlu1 %v2856_v16, %s2906_s11  ;;  %2503 = vmatprep.mubr.msk.f32.mxu0 %vm654_vm3, %v3124_v43 }
  0x19   : > { %2862 = vrot.lane.b32.xlu0 %v2856_v16, %s2907_s12  ;;  %v3234_v16 = vld [vmem:[%s4100_s0 + $0x1] ss:$0 sm:$0xff] }
  0x1c   : > { %758 = vrot.lane.b32.xlu1 %v3020_v17, %s2909_s15 }
  0x1d   : > { %764 = vrot.lane.b32.xlu0 %v3020_v17, %s2908_s14 }
  0x20   : > { %542 = vrot.lane.b32.xlu1 %v3009_v13, %s2911_s17 }
  0x21   : > { %548 = vrot.lane.b32.xlu0 %v3009_v13, %s2910_s16 }
  0x24   : > { %731 = vrot.lane.b32.xlu1 %v3007_v12, %s2913_s19 }
  0x25   : > { %737 = vrot.lane.b32.xlu0 %v3007_v12, %s2912_s18 }
  0x86   : > { %v3044_v21 = vpop.permute.xlu1 %2852 }
  0x87   : > { %v2854_v27 = vunpack.i.l.bf16 %v3044_v21  ;;  %v2855_v63 = vunpack.i.h.bf16 %v3044_v21 }
  0x88   : > { %v513_v19 = vpop.permute.xlu0 %512 }
  0x8a   : > { %v3048_v23 = vpop.permute.xlu1 %2857 }
  0x8b   : > { %v2859_v4 = vunpack.i.l.bf16 %v3048_v23  ;;  %v2860_v14 = vunpack.i.h.bf16 %v3048_v23 }
  0x8c   : > { %v3042_v20 = vpop.permute.xlu0 %2847 }
  0x8d   : > { %v2849_v28 = vunpack.i.l.bf16 %v3042_v20  ;;  %v2850_v0 = vunpack.i.h.bf16 %v3042_v20 }
  0x8e   : > { %v759_v31 = vpop.permute.xlu1 %758 }
  0x8f   : > { %v646_v36 = vsel %vm620_vm1, %v2849_v28, %v2854_v27  ;;  %v622_v6 = vsel %vm620_vm1, %v2850_v0, %v2855_v63 }
  0x90   : > { %v3046_v22 = vpop.permute.xlu0 %2862  ;;  %v3084_v40 = vmul.f32 %v3065_v35, %v646_v36  ;;  %v3227_v11 = vmul.f32 %v3065_v35, %v622_v6 }
  0x91   : > { %v2864_v5 = vunpack.i.l.bf16 %v3046_v22  ;;  %v2865_v15 = vunpack.i.h.bf16 %v3046_v22 }
  0x92   : > { %v3175_v46 = vpop.permute.xlu1 %542 }
  0x94   : > { %v765_v29 = vpop.permute.xlu0 %764 }
  0x95   : > { %v770_v39 = vsel %vm768_vm2, %v759_v31, %v765_v29  ;;  %v3257_v31 = vld [vmem:[%s4100_s0] ss:$0 sm:$0xff] }
  0x96   : > { %v3089_v41 = vmul.f32 %v3077_v38, %v770_v39  ;;  %v732_v48 = vpop.permute.xlu1 %731 }
  0x98   : > { %v3173_v45 = vpop.permute.xlu0 %548 }
  0x9c   : > { %v738_v47 = vpop.permute.xlu0 %737 }
  0x9d   : > { %v743_v61 = vsel %vm741_vm4, %v732_v48, %v738_v47 }
  0x9e   : > { %v753_v1 = vmul.f32 %v3195_v60, %v743_v61 }
  0xd3   : > { %v2645_v24 = vpop.f32.mrf.mxu0 }
  0xd4   : > { %v3050_v25 = vadd.f32 %v2645_v24, %v513_v19 }
  0xd5   : > { %v486_v26 = vpop.f32.mrf.mxu0 }
  0xd6   : > { %614 = vrot.lane.b32.xlu0 %v3050_v25, %s2904_s29  ;;  %608 = vrot.lane.b32.xlu1 %v3050_v25, %s2905_s30  ;;  %v3058_v32 = vadd.f32 %v513_v19, %v486_v26  ;;  %v579_v26 = vsel %vm407_vm0, %v2860_v14, %v2865_v15 }
  0xd7   : > { %v2648_v30 = vpop.f32.mrf.mxu0 }
  0xd8   : > { %v3060_v33 = vadd.f32 %v2648_v30, %v513_v19  ;;  %v589_v30 = vmul.f32 %v3234_v16, %v579_v26 }
  0xd9   : > { %v496_v34 = vpop.f32.mrf.mxu0 }
  0xda   : > { %v3068_v37 = vadd.f32 %v513_v19, %v496_v34  ;;  %762 = vrot.lane.b32.xlu0 %v3058_v32, %s2908_s14  ;;  %756 = vrot.lane.b32.xlu1 %v3058_v32, %s2909_s15  ;;  %v603_v19 = vsel %vm407_vm0, %v2859_v4, %v2864_v5  ;;  %v554_v34 = vsel %vm552_vm5, %v3175_v46, %v3173_v45 }
  0xdb   : > { %800 = vmatpush1.msra.mxu0 %v3060_v33  ;;  %v605_v24 = vmul.f32 %v3234_v16, %v603_v19  ;;  %v563_v48 = vmul.f32 %v3257_v31, %v554_v34 }
  0xdc   : > { %801 = vmatprep.subr.mxu0 %v2914_v18  ;;  %661 = vmatpush1.msra.mxu1 %v3068_v37 }
  0xdd   : > { %802 = vmatpush1.msra.mxu0 %v3007_v12  ;;  %662 = vmatprep.subr.mxu1 %v2914_v18 }
  0xde   : > { %803 = vmatprep.subr.mxu0 %v2914_v18  ;;  %639 = vrot.lane.b32.xlu0 %v3060_v33, %s2904_s29 }
  0xdf   : > { %633 = vrot.lane.b32.xlu1 %v3060_v33, %s2905_s30  ;;  %804 = vmatpush1.msra.mxu0 %v3068_v37 }
  0xe0   : > { %663 = vmatpush1.msra.mxu1 %v3084_v40  ;;  %805 = vmatprep.subr.mxu0 %v2914_v18 }
  0xe1   : > { %806 = vmatpush1.msra.mxu0 %v3089_v41  ;;  %664 = vmatprep.subr.mxu1 %v2914_v18 }
  0xe2   : > { %901 = vrot.lane.b32.xlu0 %v3020_v17, %s2915_s25  ;;  %807 = vmatprep.subr.mxu0 %v2914_v18 }
  0xe3   : > { %895 = vrot.lane.b32.xlu1 %v3020_v17, %s2916_s26 }
  0xe6   : > { %899 = vrot.lane.b32.xlu0 %v3058_v32, %s2915_s25 }
  0xe7   : > { %893 = vrot.lane.b32.xlu1 %v3058_v32, %s2916_s26 }
  0xea   : > { %596 = vrot.lane.b32.xlu0 %v3060_v33, %s2907_s12 }
  0xeb   : > { %590 = vrot.lane.b32.xlu1 %v3060_v33, %s2906_s11 }
  0xee   : > { %546 = vrot.lane.b32.xlu0 %v3060_v33, %s2910_s16 }
  0xef   : > { %540 = vrot.lane.b32.xlu1 %v3060_v33, %s2911_s17 }
  0xf2   : > { %572 = vrot.lane.b32.xlu0 %v3068_v37, %s2907_s12 }
  0xf3   : > { %566 = vrot.lane.b32.xlu1 %v3068_v37, %s2906_s11 }
  0xf6   : > { %876 = vrot.lane.b32.xlu0 %v3005_v10, %s4114_s21 }
  0xf7   : > { %870 = vrot.lane.b32.xlu1 %v3005_v10, %s4113_s22 }
  0xfa   : > { %874 = vrot.lane.b32.xlu0 %v3050_v25, %s4114_s21 }
  0xfb   : > { %868 = vrot.lane.b32.xlu1 %v3050_v25, %s4113_s22 }
  0xfe   : > { %735 = vrot.lane.b32.xlu0 %v3068_v37, %s2912_s18 }
  0xff   : > { %729 = vrot.lane.b32.xlu1 %v3068_v37, %s2913_s19 }
 0x102   : > { %789 = vrot.lane.b32.xlu0 %v3007_v12, %s2908_s14 }
 0x103   : > { %783 = vrot.lane.b32.xlu1 %v3007_v12, %s2909_s15 }
 0x106   : > { %926 = vrot.lane.b32.xlu0 %v3005_v10, %s2915_s25 }
 0x107   : > { %920 = vrot.lane.b32.xlu1 %v3005_v10, %s2916_s26 }
 0x10a   : > { %787 = vrot.lane.b32.xlu0 %v3068_v37, %s2908_s14 }
 0x10b   : > { %781 = vrot.lane.b32.xlu1 %v3068_v37, %s2909_s15 }
 0x10e   : > { %924 = vrot.lane.b32.xlu0 %v3050_v25, %s2915_s25 }
 0x10f   : > { %918 = vrot.lane.b32.xlu1 %v3050_v25, %s2916_s26 }
 0x112   : > { %1013 = vrot.lane.b32.xlu0 %v3020_v17, %s2919_s23 }
 0x113   : > { %1007 = vrot.lane.b32.xlu1 %v3020_v17, %s4111_s24 }
 0x116   : > { %1011 = vrot.lane.b32.xlu0 %v3058_v32, %s2919_s23 }
 0x117   : > { %1005 = vrot.lane.b32.xlu1 %v3058_v32, %s4111_s24 }
 0x11b   : > { %651 = vperm.xlu1 %2866, %v506_v44  }
 0x148   : > { %v615_v49 = vpop.permute.xlu0 %614  ;;  %v609_v50 = vpop.permute.xlu1 %608 }
 0x149   : > { %v621_v7 = vsel %vm620_vm1, %v609_v50, %v615_v49 }
 0x14a   : > { %v3239_v20 = vmul.f32 %v3065_v35, %v621_v7 }
 0x14c   : > { %v763_v51 = vpop.permute.xlu0 %762  ;;  %v757_v52 = vpop.permute.xlu1 %756 }
 0x14d   : > { %v769_v53 = vsel %vm768_vm2, %v757_v52, %v763_v51  ;;  %v3277_v51 = vld [vmem:[%s4100_s0 + $0x7] ss:$0 sm:$0xff] }
 0x14e   : > { %v3179_v54 = vmul.f32 %v3077_v38, %v769_v53  ;;  %v3284_v53 = vunpack.c.l.bf16 %v3121_v42  ;;  %v3298_v42 = vld [vmem:[%s4100_s0 + $0x6] ss:$0 sm:$0xff] }
 0x150   : > { %v640_v55 = vpop.permute.xlu0 %639  ;;  %808 = vmatpush1.msra.mxu0 %v3179_v54 }
 0x151   : > { %v634_v56 = vpop.permute.xlu1 %633  ;;  %809 = vmatprep.subr.mxu0 %v2914_v18 }
 0x152   : > { %v645_v57 = vsel %vm620_vm1, %v634_v56, %v640_v55  ;;  %810 = vmatpush1.msra.mxu0 %v3005_v10 }
 0x153   : > { %v3186_v58 = vmul.f32 %v3065_v35, %v645_v57  ;;  %811 = vmatprep.subr.mxu0 %v2914_v18 }
 0x154   : > { %v3189_v59 = vpop.permute.xlu0 %901  ;;  %812 = vmatpush1.msra.mxu0 %v3050_v25 }
 0x155   : > { %v3198_v62 = vpop.permute.xlu1 %895  ;;  %665 = vmatpush1.msra.mxu1 %v3186_v58  ;;  %813 = vmatprep.subr.mxu0 %v2914_v18 }
 0x156   : > { %666 = vmatprep.subr.mxu1 %v2914_v18  ;;  %814 = vmatpush1.msra.mxu0 %v3020_v17  ;;  %v907_v52 = vsel %vm905_vm6, %v3198_v62, %v3189_v59 }
 0x157   : > { %667 = vmatpush1.msra.mxu1 %v3005_v10  ;;  %815 = vmatprep.subr.mxu0 %v2914_v18  ;;  %v3292_v57 = vmul.f32 %v3277_v51, %v907_v52 }
 0x158   : > { %668 = vmatprep.subr.mxu1 %v2914_v18  ;;  %v3210_v2 = vpop.permute.xlu0 %899  ;;  %816 = vmatpush1.msra.mxu0 %v3058_v32 }
 0x159   : > { %v3213_v3 = vpop.permute.xlu1 %893  ;;  %669 = vmatpush1.msra.mxu1 %v3050_v25  ;;  %817 = vmatprep.subr.mxu0 %v2914_v18 }
 0x15a   : > { %670 = vmatprep.subr.mxu1 %v2914_v18  ;;  %818 = vmatpush1.msra.mxu0 %v753_v1  ;;  %v906_v55 = vsel %vm905_vm6, %v3213_v3, %v3210_v2 }
 0x15b   : > { %671 = vmatpush1.msra.mxu1 %v3020_v17  ;;  %819 = vmatprep.subr.mxu0 %v2914_v18  ;;  %v3305_v63 = vmul.f32 %v3277_v51, %v906_v55 }
 0x15c   : > { %672 = vmatprep.subr.mxu1 %v2914_v18  ;;  %v597_v8 = vpop.permute.xlu0 %596 }
 0x15d   : > { %v591_v9 = vpop.permute.xlu1 %590  ;;  %673 = vmatpush1.msra.mxu1 %v3058_v32 }
 0x15e   : > { %674 = vmatprep.subr.mxu1 %v2914_v18  ;;  %v602_v21 = vsel %vm407_vm0, %v591_v9, %v597_v8 }
 0x15f   : > { %675 = vmatpush1.msra.mxu1 %v3227_v11  ;;  %v3249_v27 = vmul.f32 %v3234_v16, %v602_v21 }
 0x160   : > { %676 = vmatprep.subr.mxu1 %v2914_v18  ;;  %v547_v23 = vpop.permute.xlu0 %546 }
 0x161   : > { %v541_v22 = vpop.permute.xlu1 %540  ;;  %677 = vmatpush1.msra.mxu1 %v3239_v20 }
 0x162   : > { %678 = vmatprep.subr.mxu1 %v2914_v18  ;;  %v553_v44 = vsel %vm552_vm5, %v541_v22, %v547_v23 }
 0x163   : > { %679 = vmatpush1.msra.mxu1 %v605_v24  ;;  %v562_v45 = vmul.f32 %v3257_v31, %v553_v44 }
 0x164   : > { %680 = vmatprep.subr.mxu1 %v2914_v18  ;;  %v573_v28 = vpop.permute.xlu0 %572 }
 0x165   : > { %v567_v29 = vpop.permute.xlu1 %566  ;;  %681 = vmatpush1.msra.mxu1 %v3249_v27 }
 0x166   : > { %v578_v36 = vsel %vm407_vm0, %v567_v29, %v573_v28  ;;  %682 = vmatprep.subr.mxu1 %v2914_v18 }
 0x167   : > { %v3265_v39 = vmul.f32 %v3234_v16, %v578_v36  ;;  %683 = vmatpush1.msra.mxu1 %v589_v30 }
 0x168   : > { %684 = vmatprep.subr.mxu1 %v2914_v18  ;;  %v877_v47 = vpop.permute.xlu0 %876 }
 0x169   : > { %v871_v49 = vpop.permute.xlu1 %870  ;;  %685 = vmatpush1.msra.mxu1 %v3265_v39 }
 0x16a   : > { %686 = vmatprep.subr.mxu1 %v2914_v18  ;;  %v882_v59 = vsel %vm880_vm7, %v871_v49, %v877_v47 }
 0x16b   : > { %687 = vmatpush1.msra.mxu1 %v563_v48  ;;  %v892_v3 = vmul.f32 %v3298_v42, %v882_v59 }
 0x16c   : > { %688 = vmatprep.subr.mxu1 %v2914_v18  ;;  %v875_v46 = vpop.permute.xlu0 %874 }
 0x16d   : > { %v869_v50 = vpop.permute.xlu1 %868  ;;  %689 = vmatpush1.msra.mxu1 %v562_v45 }
 0x16e   : > { %718 = vmatprep.subr.mxu1 %v2914_v18  ;;  %v881_v1 = vsel %vm880_vm7, %v869_v50, %v875_v46  ;;  %v507_v50 = vld [vmem:[%s4109_s9 + $0x10] sm:$0xff] }
 0x16f   : > { %719 = vmatpush2.msra.mxu1 %v3009_v13  ;;  %v891_v5 = vmul.f32 %v3298_v42, %v881_v1 }
 0x170   : > { %720 = vmatprep.subr.mxu1 %v2914_v18  ;;  %v736_v56 = vpop.permute.xlu0 %735 }
 0x171   : > { %v730_v61 = vpop.permute.xlu1 %729  ;;  %721 = vmatpush2.msra.mxu1 %v3060_v33 }
 0x172   : > { %v742_v62 = vsel %vm741_vm4, %v730_v61, %v736_v56  ;;  %934 = vmatprep.subr.mxu1 %v2914_v18  ;;  %723 = vmatmul.mubr.f32.vlgmr.msra.gmra.mxu1 %v3284_v53 }
 0x173   : > { %v752_v0 = vmul.f32 %v3195_v60, %v742_v62  ;;  %935 = vmatpush1.msra.mxu1 %v3292_v57  ;;  %2508 = vmatprep.mubr.msk.f32.mxu1 %vm654_vm3, %v3124_v43 }
 0x174   : > { %936 = vmatprep.subr.mxu1 %v2914_v18  ;;  %v790_v2 = vpop.permute.xlu0 %789 }
 0x175   : > { %v784_v4 = vpop.permute.xlu1 %783  ;;  %820 = vmatpush1.msra.mxu0 %v752_v0  ;;  %937 = vmatpush1.msra.mxu1 %v3305_v63 }
 0x176   : > { %821 = vmatprep.subr.mxu0 %v2914_v18  ;;  %938 = vmatprep.subr.mxu1 %v2914_v18  ;;  %v794_v8 = vsel %vm768_vm2, %v784_v4, %v790_v2 }
 0x177   : > { %822 = vmatpush1.msra.mxu0 %v605_v24  ;;  %939 = vmatpush1.msra.mxu1 %v892_v3  ;;  %v796_v14 = vmul.f32 %v3077_v38, %v794_v8 }
 0x178   : > { %823 = vmatprep.subr.mxu0 %v2914_v18  ;;  %940 = vmatprep.subr.mxu1 %v2914_v18  ;;  %v927_v6 = vpop.permute.xlu0 %926 }
 0x179   : > { %v921_v7 = vpop.permute.xlu1 %920  ;;  %824 = vmatpush1.msra.mxu0 %v3249_v27  ;;  %941 = vmatpush1.msra.mxu1 %v891_v5 }
 0x17a   : > { %825 = vmatprep.subr.mxu0 %v2914_v18  ;;  %942 = vmatprep.subr.mxu1 %v2914_v18  ;;  %v931_v21 = vsel %vm905_vm6, %v921_v7, %v927_v6 }
 0x17b   : > { %826 = vmatpush1.msra.mxu0 %v589_v30  ;;  %943 = vmatpush1.msra.mxu1 %v3009_v13  ;;  %v933_v26 = vmul.f32 %v3277_v51, %v931_v21 }
 0x17c   : > { %827 = vmatprep.subr.mxu0 %v2914_v18  ;;  %944 = vmatprep.subr.mxu1 %v2914_v18  ;;  %v788_v9 = vpop.permute.xlu0 %787 }
 0x17d   : > { %v782_v15 = vpop.permute.xlu1 %781  ;;  %828 = vmatpush1.msra.mxu0 %v3265_v39  ;;  %945 = vmatpush1.msra.mxu1 %v3060_v33 }
 0x17e   : > { %v793_v19 = vsel %vm768_vm2, %v782_v15, %v788_v9  ;;  %857 = vmatprep.subr.mxu0 %v2914_v18  ;;  %946 = vmatprep.subr.mxu1 %v2914_v18  ;;  %v1101_v9 = vld [vmem:[%s4106_s6] sm:$0xf] }
 0x17f   : > { %v795_v23 = vmul.f32 %v3077_v38, %v793_v19  ;;  %858 = vmatpush2.msra.mxu0 %v796_v14  ;;  %947 = vmatpush1.msra.mxu1 %v3007_v12 }
 0x180   : > { %859 = vmatprep.subr.mxu0 %v2914_v18  ;;  %948 = vmatprep.subr.mxu1 %v2914_v18  ;;  %v925_v22 = vpop.permute.xlu0 %924 }
 0x181   : > { %v919_v24 = vpop.permute.xlu1 %918  ;;  %860 = vmatpush2.msra.mxu0 %v795_v23  ;;  %949 = vmatpush1.msra.mxu1 %v3068_v37 }
 0x182   : > { %v930_v27 = vsel %vm905_vm6, %v919_v24, %v925_v22  ;;  %862 = vmatmul.mubr.f32.vlgmr.msra.gmra.mxu0 %v3284_v53  ;;  %950 = vmatprep.subr.mxu1 %v2914_v18 }
 0x183   : > { %v932_v28 = vmul.f32 %v3277_v51, %v930_v27  ;;  %1030 = vmatprep.subr.mxu0 %v2914_v18  ;;  %951 = vmatpush1.msra.mxu1 %v3084_v40 }
 0x184   : > { %1031 = vmatpush1.msra.mxu0 %v933_v26  ;;  %952 = vmatprep.subr.mxu1 %v2914_v18 }
 0x185   : > { %1032 = vmatprep.subr.mxu0 %v2914_v18  ;;  %953 = vmatpush1.msra.mxu1 %v3186_v58 }
 0x186   : > { %1033 = vmatpush1.msra.mxu0 %v932_v28  ;;  %954 = vmatprep.subr.mxu1 %v2914_v18 }
 0x187   : > { %1034 = vmatprep.subr.mxu0 %v2914_v18  ;;  %955 = vmatpush1.msra.mxu1 %v3005_v10 }
 0x188   : > { %1035 = vmatpush1.msra.mxu0 %v3292_v57  ;;  %956 = vmatprep.subr.mxu1 %v2914_v18 }
 0x189   : > { %1036 = vmatprep.subr.mxu0 %v2914_v18  ;;  %957 = vmatpush1.msra.mxu1 %v3050_v25 }
 0x18a   : > { %1037 = vmatpush1.msra.mxu0 %v3305_v63  ;;  %958 = vmatprep.subr.mxu1 %v2914_v18 }
 0x18b   : > { %1038 = vmatprep.subr.mxu0 %v2914_v18  ;;  %959 = vmatpush1.msra.mxu1 %v3020_v17 }
 0x18c   : > { %1039 = vmatpush1.msra.mxu0 %v796_v14  ;;  %960 = vmatprep.subr.mxu1 %v2914_v18 }
 0x18d   : > { %1040 = vmatprep.subr.mxu0 %v2914_v18  ;;  %961 = vmatpush1.msra.mxu1 %v3058_v32 }
 0x18e   : > { %1041 = vmatpush1.msra.mxu0 %v795_v23  ;;  %962 = vmatprep.subr.mxu1 %v2914_v18 }
 0x18f   : > { %1042 = vmatprep.subr.mxu0 %v2914_v18  ;;  %963 = vmatpush1.msra.mxu1 %v3227_v11 }
 0x190   : > { %1043 = vmatpush1.msra.mxu0 %v3009_v13  ;;  %964 = vmatprep.subr.mxu1 %v2914_v18  ;;  %v1014_v13 = vpop.permute.xlu0 %1013 }
 0x191   : > { %1044 = vmatprep.subr.mxu0 %v2914_v18  ;;  %965 = vmatpush1.msra.mxu1 %v3239_v20 }
 0x192   : > { %1045 = vmatpush1.msra.mxu0 %v3060_v33  ;;  %994 = vmatprep.subr.mxu1 %v2914_v18  ;;  %v1008_v33 = vpop.permute.xlu1 %1007 }
 0x193   : > { %1046 = vmatprep.subr.mxu0 %v2914_v18  ;;  %995 = vmatpush2.msra.mxu1 %v933_v26  ;;  %v1019_v40 = vsel %vm1017_vm8, %v1008_v33, %v1014_v13 }
 0x194   : > { %1047 = vmatpush1.msra.mxu0 %v3007_v12  ;;  %996 = vmatprep.subr.mxu1 %v2914_v18  ;;  %v1012_v12 = vpop.permute.xlu0 %1011 }
 0x195   : > { %1048 = vmatprep.subr.mxu0 %v2914_v18  ;;  %997 = vmatpush2.msra.mxu1 %v932_v28 }
 0x196   : > { %1049 = vmatpush1.msra.mxu0 %v3068_v37  ;;  %999 = vmatmul.mubr.f32.vlgmr.msra.gmra.mxu1 %v3284_v53  ;;  %v1006_v37 = vpop.permute.xlu1 %1005 }
 0x197   : > { %1050 = vmatprep.subr.mxu0 %v2914_v18  ;;  %2511 = vmatprep.mubr.msk.f32.mxu0 %vm654_vm3, %v3124_v43 }
 0x198   : > { %1051 = vmatpush1.msra.mxu0 %v3089_v41  ;;  %2649 = vmatprep.subr.mxu1 %v2914_v18  ;;  %v3395_v41 = vld [vmem:[%s4100_s0 + $0x8] ss:$0 sm:$0xff] }
 0x199   : > { %1052 = vmatprep.subr.mxu0 %v2914_v18  ;;  %v1029_v43 = vmul.f32 %v3395_v41, %v1019_v40  ;;  %2667 = vmatprep.mubr.msk.f32.mxu1 %vm2921_vm9, %v2914_v18 }
 0x19a   : > { %1053 = vmatpush1.msra.mxu0 %v3179_v54 }
 0x19b   : > { %1054 = vmatprep.subr.mxu0 %v2914_v18 }
 0x19c   : > { %1055 = vmatpush1.msra.mxu0 %v3005_v10  ;;  %v1018_v10 = vsel %vm1017_vm8, %v1006_v37, %v1012_v12 }
 0x19d   : > { %1056 = vmatprep.subr.mxu0 %v2914_v18 }
 0x19e   : > { %1057 = vmatpush1.msra.mxu0 %v3050_v25  ;;  %v1028_v25 = vmul.f32 %v3395_v41, %v1018_v10 }
 0x19f   : > { %1058 = vmatprep.subr.mxu0 %v2914_v18 }
 0x1a0   : > { %1059 = vmatpush1.msra.mxu0 %v3020_v17  ;;  %v652_v17 = vpop.permute.xlu1 %651 }
 0x1a1   : > { %1060 = vmatprep.subr.mxu0 %v2914_v18 }
 0x1a2   : > { %1061 = vmatpush1.msra.mxu0 %v3058_v32 }
 0x1a3   : > { %1090 = vmatprep.subr.mxu0 %v2914_v18 }
 0x1a4   : > { %1091 = vmatpush2.msra.mxu0 %v1029_v43 }
 0x1a5   : > { %1092 = vmatprep.subr.mxu0 %v2914_v18 }
 0x1a6   : > { %1093 = vmatpush2.msra.mxu0 %v1028_v25 }
 0x1a7   : > { %1095 = vmatmul.mubr.f32.vlgmr.msra.gmra.mxu0 %v3284_v53  ;;  %2670 = vmatprep.subr.mxu0 %v2914_v18 }
 0x1a8   : > { %2688 = vmatprep.mubr.msk.f32.mxu0 %vm2921_vm9, %v2914_v18 }
 0x232   : > { %v724_v54 = vpop.f32.mrf.mxu1 }
 0x233   : > { %v725_v58 = vadd.f32 %v724_v54, %v652_v17 }
 0x234   : > { %v726_v11 = vpop.f32.mrf.mxu1 }
 0x235   : > { %v3406_v20 = vmax.f32 %v725_v58, 0.0 }
 0x237   : > { %1238 = vrot.lane.b32.xlu1 %v3406_v20, %s2908_s14  ;;  %1235 = vrot.lane.b32.xlu0 %v3406_v20, %s2909_s15 }
 0x242   : > { %v863_v32 = vpop.f32.mrf.mxu0 }
 0x243   : > { %v864_v45 = vadd.f32 %v863_v32, %v652_v17 }
 0x244   : > { %v865_v29 = vpop.f32.mrf.mxu0 }
 0x245   : > { %v3432_v46 = vmax.f32 %v864_v45, 0.0 }
 0x256   : > { %v1000_v30 = vpop.f32.mrf.mxu1 }
 0x257   : > { %v1001_v39 = vadd.f32 %v1000_v30, %v652_v17 }
 0x258   : > { %v1002_v34 = vpop.f32.mrf.mxu1 }
 0x259   : > { %v3414_v49 = vmax.f32 %v1001_v39, 0.0 }
 0x267   : > { %v1096_v36 = vpop.f32.mrf.mxu0 }
 0x268   : > { %v1097_v44 = vadd.f32 %v1096_v36, %v652_v17 }
 0x269   : > { %v1098_v47 = vpop.f32.mrf.mxu0 }
 0x26a   : > { %v3412_v48 = vmax.f32 %v1097_v44, 0.0 }
 0x26c   : > { %2650 = vmatpush3.msra.mxu1 %v3412_v48  ;;  %1124 = vrot.lane.b32.xlu1 %v3412_v48, %s2907_s12 }
 0x26d   : > { %1121 = vrot.lane.b32.xlu0 %v3412_v48, %s2906_s11  ;;  %2651 = vmatprep.subr.mxu1 %v2914_v18 }
 0x26e   : > { %2652 = vmatpush3.msra.mxu1 %v3414_v49 }
 0x26f   : > { %2653 = vmatprep.subr.mxu1 %v2914_v18 }
 0x270   : > { %1246 = vrot.lane.b32.xlu1 %v3414_v49, %s2908_s14 }
 0x271   : > { %1243 = vrot.lane.b32.xlu0 %v3414_v49, %s2909_s15 }
 0x274   : > { %1420 = vrot.lane.b32.xlu1 %v3406_v20, %s2919_s23 }
 0x275   : > { %1417 = vrot.lane.b32.xlu0 %v3406_v20, %s4111_s24  ;;  %s386_s24 = scalar_lea.vmem %s4102_s2, %s2993_s20 }
 0x276   : > { %v2554_v34 = vld [vmem:[%s386_s24 + $0x8] sm:$0xff]  }
 0x277   : > { %v3572_v39 = vunpack.c.h.bf16 %v2554_v34  ;;  %v3574_v44 = vunpack.c.l.bf16 %v2554_v34 }
 0x278   : > { %1341 = vrot.lane.b32.xlu1 %v3432_v46, %s2915_s25 }
 0x279   : > { %1338 = vrot.lane.b32.xlu0 %v3432_v46, %s2916_s26  ;;  %v2877_v47 = vpack.i.bf16 %v3574_v44, %v3572_v39 }
 0x27c   : > { %1229 = vrot.lane.b32.xlu1 %v3414_v49, %s2912_s18 }
 0x27d   : > { %1226 = vrot.lane.b32.xlu0 %v3414_v49, %s2913_s19 }
 0x280   : > { %1116 = vrot.lane.b32.xlu1 %v3414_v49, %s2907_s12 }
 0x281   : > { %1113 = vrot.lane.b32.xlu0 %v3414_v49, %s2906_s11 }
 0x284   : > { %1333 = vrot.lane.b32.xlu1 %v3406_v20, %s2915_s25 }
 0x285   : > { %1330 = vrot.lane.b32.xlu0 %v3406_v20, %s2916_s26 }
 0x288   : > { %1141 = vrot.lane.b32.xlu1 %v3412_v48, %s2904_s29 }
 0x289   : > { %1138 = vrot.lane.b32.xlu0 %v3412_v48, %s2905_s30 }
 0x28c   : > { %1133 = vrot.lane.b32.xlu1 %v3432_v46, %s2904_s29 }
 0x28d   : > { %1130 = vrot.lane.b32.xlu0 %v3432_v46, %s2905_s30 }
 0x290   : > { %1107 = vrot.lane.b32.xlu1 %v3412_v48, %s2910_s16 }
 0x291   : > { %1104 = vrot.lane.b32.xlu0 %v3412_v48, %s2911_s17 }
 0x294   : > { %1325 = vrot.lane.b32.xlu1 %v3432_v46, %s4114_s21 }
 0x295   : > { %1322 = vrot.lane.b32.xlu0 %v3432_v46, %s4113_s22 }
 0x299   : > { %1148 = vperm.xlu0 %2845, %v507_v50  }
 0x2a9   : > { %v1239_v52 = vpop.permute.xlu1 %1238  ;;  %v1236_v53 = vpop.permute.xlu0 %1235 }
 0x2aa   : > { %v1241_v1 = vsel %vm768_vm2, %v1236_v53, %v1239_v52 }
 0x2ab   : > { %v3480_v3 = vmul.f32 %v3077_v38, %v1241_v1 }
 0x2de   : > { %v1125_v55 = vpop.permute.xlu1 %1124 }
 0x2df   : > { %v1122_v56 = vpop.permute.xlu0 %1121 }
 0x2e0   : > { %v1127_v7 = vsel %vm407_vm0, %v1122_v56, %v1125_v55 }
 0x2e1   : > { %v1128_v15 = vmul.f32 %v3234_v16, %v1127_v7 }
 0x2e2   : > { %v1247_v57 = vpop.permute.xlu1 %1246 }
 0x2e3   : > { %v1244_v61 = vpop.permute.xlu0 %1243 }
 0x2e4   : > { %v1249_v59 = vsel %vm768_vm2, %v1244_v61, %v1247_v57 }
 0x2e5   : > { %v1250_v62 = vmul.f32 %v3077_v38, %v1249_v59 }
 0x2e6   : > { %v1421_v63 = vpop.permute.xlu1 %1420 }
 0x2e7   : > { %2671 = vmatpush3.msra.mxu0 %v1250_v62  ;;  %v1418_v0 = vpop.permute.xlu0 %1417 }
 0x2e8   : > { %2672 = vmatprep.subr.mxu0 %v2914_v18  ;;  %v1423_v21 = vsel %vm1017_vm8, %v1418_v0, %v1421_v63 }
 0x2e9   : > { %2673 = vmatpush3.msra.mxu0 %v3412_v48  ;;  %v1424_v27 = vmul.f32 %v3395_v41, %v1423_v21 }
 0x2ea   : > { %2674 = vmatprep.subr.mxu0 %v2914_v18  ;;  %v1342_v2 = vpop.permute.xlu1 %1341 }
 0x2eb   : > { %2675 = vmatpush3.msra.mxu0 %v3414_v49  ;;  %v1339_v4 = vpop.permute.xlu0 %1338 }
 0x2ec   : > { %2676 = vmatprep.subr.mxu0 %v2914_v18  ;;  %v1344_v24 = vsel %vm905_vm6, %v1339_v4, %v1342_v2  ;;  %v3649_v4 = vld [vmem:[%s4107_s7] sm:$0xff] }
 0x2ed   : > { %2677 = vmatpush3.msra.mxu0 %v3480_v3 }
 0x2ee   : > { %2678 = vmatprep.subr.mxu0 %v2914_v18  ;;  %v1230_v5 = vpop.permute.xlu1 %1229 }
 0x2ef   : > { %2679 = vmatpush3.msra.mxu0 %v3432_v46  ;;  %v1227_v6 = vpop.permute.xlu0 %1226 }
 0x2f0   : > { %v1232_v8 = vsel %vm741_vm4, %v1227_v6, %v1230_v5  ;;  %2680 = vmatprep.subr.mxu0 %v2914_v18  ;;  %v3652_v5 = vunpack.c.h.bf16 %v3649_v4  ;;  %v508_v6 = vld [vmem:[%s4109_s9 + $0x18] sm:$0xff] }
 0x2f1   : > { %v1233_v38 = vmul.f32 %v3195_v60, %v1232_v8  ;;  %2681 = vmatpush3.msra.mxu0 %v3406_v20  ;;  %v3500_v60 = vunpack.c.l.bf16 %v1101_v9 }
 0x2f2   : > { %2682 = vmatprep.subr.mxu0 %v2914_v18  ;;  %v1117_v14 = vpop.permute.xlu1 %1116 }
 0x2f3   : > { %2683 = vmatpush3.msra.mxu0 %v1233_v38  ;;  %v1114_v19 = vpop.permute.xlu0 %1113 }
 0x2f4   : > { %v1119_v23 = vsel %vm407_vm0, %v1114_v19, %v1117_v14  ;;  %2684 = vmatprep.subr.mxu0 %v2914_v18 }
 0x2f5   : > { %v1120_v22 = vmul.f32 %v3234_v16, %v1119_v23  ;;  %2685 = vmatpush3.msra.mxu0 %v1128_v15  ;;  %v1345_v16 = vmul.f32 %v3277_v51, %v1344_v24 }
 0x2f6   : > { %2686 = vmatprep.subr.mxu0 %v2914_v18  ;;  %v1334_v26 = vpop.permute.xlu1 %1333 }
 0x2f7   : > { %2687 = vmatpush3.msra.mxu0 %v1120_v22  ;;  %v1331_v28 = vpop.permute.xlu0 %1330 }
 0x2f8   : > { %v1336_v13 = vsel %vm905_vm6, %v1331_v28, %v1334_v26  ;;  %2689 = vmatmul.mubr.msk.f32.vlgmr.msra.gmra.mxu0 %vm1151_vm10, %v3500_v60  ;;  %2712 = vmatprep.subr.mxu0 %v2914_v18  ;;  %v3718_v26 = vld [vmem:[%s4100_s0 + $0x5] ss:$0 sm:$0xff] }
 0x2f9   : > { %2713 = vmatpush3.msra.mxu0 %v1424_v27  ;;  %2730 = vmatprep.mubr.msk.f32.mxu0 %vm2921_vm9, %v2914_v18  ;;  %v1337_v12 = vmul.f32 %v3277_v51, %v1336_v13 }
 0x2fa   : > { %2714 = vmatprep.subr.mxu0 %v2914_v18  ;;  %v1142_v33 = vpop.permute.xlu1 %1141 }
 0x2fb   : > { %2715 = vmatpush3.msra.mxu0 %v1345_v16  ;;  %v1139_v37 = vpop.permute.xlu0 %1138 }
 0x2fc   : > { %v1144_v40 = vsel %vm620_vm1, %v1139_v37, %v1142_v33  ;;  %2716 = vmatprep.subr.mxu0 %v2914_v18 }
 0x2fd   : > { %v1145_v10 = vmul.f32 %v3065_v35, %v1144_v40  ;;  %2717 = vmatpush3.msra.mxu0 %v1337_v12 }
 0x2fe   : > { %2718 = vmatprep.subr.mxu0 %v2914_v18  ;;  %v1134_v43 = vpop.permute.xlu1 %1133 }
 0x2ff   : > { %2654 = vmatpush3.msra.mxu1 %v1145_v10  ;;  %2719 = vmatpush3.msra.mxu0 %v1250_v62  ;;  %v1131_v25 = vpop.permute.xlu0 %1130 }
 0x300   : > { %v1136_v17 = vsel %vm620_vm1, %v1131_v25, %v1134_v43  ;;  %2655 = vmatprep.subr.mxu1 %v2914_v18  ;;  %2720 = vmatprep.subr.mxu0 %v2914_v18 }
 0x301   : > { %2656 = vmatpush3.msra.mxu1 %v3432_v46  ;;  %2721 = vmatpush3.msra.mxu0 %v3412_v48  ;;  %v1137_v51 = vmul.f32 %v3065_v35, %v1136_v17 }
 0x302   : > { %2657 = vmatprep.subr.mxu1 %v2914_v18  ;;  %2722 = vmatprep.subr.mxu0 %v2914_v18  ;;  %v1108_v54 = vpop.permute.xlu1 %1107 }
 0x303   : > { %2658 = vmatpush3.msra.mxu1 %v3406_v20  ;;  %2723 = vmatpush3.msra.mxu0 %v3414_v49  ;;  %v1105_v58 = vpop.permute.xlu0 %1104 }
 0x304   : > { %2659 = vmatprep.subr.mxu1 %v2914_v18  ;;  %2724 = vmatprep.subr.mxu0 %v2914_v18  ;;  %v1110_v11 = vsel %vm552_vm5, %v1105_v58, %v1108_v54 }
 0x305   : > { %2660 = vmatpush3.msra.mxu1 %v1137_v51  ;;  %2725 = vmatpush3.msra.mxu0 %v3480_v3  ;;  %v1111_v35 = vmul.f32 %v3257_v31, %v1110_v11 }
 0x306   : > { %2661 = vmatprep.subr.mxu1 %v2914_v18  ;;  %2726 = vmatprep.subr.mxu0 %v2914_v18  ;;  %v1326_v32 = vpop.permute.xlu1 %1325 }
 0x307   : > { %2662 = vmatpush3.msra.mxu1 %v1128_v15  ;;  %2727 = vmatpush3.msra.mxu0 %v3432_v46  ;;  %v1323_v29 = vpop.permute.xlu0 %1322 }
 0x308   : > { %2663 = vmatprep.subr.mxu1 %v2914_v18  ;;  %2728 = vmatprep.subr.mxu0 %v2914_v18  ;;  %v1328_v30 = vsel %vm880_vm7, %v1323_v29, %v1326_v32  ;;  %v3759_v29 = vld [vmem:[%s4100_s0 + $0x2] ss:$0 sm:$0xff] }
 0x309   : > { %2664 = vmatpush3.msra.mxu1 %v1120_v22  ;;  %2729 = vmatpush3.msra.mxu0 %v3406_v20  ;;  %v1329_v31 = vmul.f32 %v3298_v42, %v1328_v30  ;;  %v2538_v42 = vld [vmem:[%s386_s24] sm:$0xff]  }
 0x30a   : > { %2665 = vmatprep.subr.mxu1 %v2914_v18  ;;  %2731 = vmatmul.mubr.msk.f32.vlgmr.msra.gmra.mxu0 %vm1151_vm10, %v3500_v60  ;;  %v3570_v36 = vunpack.c.h.bf16 %v2538_v42 }
 0x30b   : > { %2666 = vmatpush3.msra.mxu1 %v1111_v35  ;;  %1714 = vmatprep.subr.mxu0 %v2914_v18 }
 0x30c   : > { %2668 = vmatmul.mubr.msk.f32.vlgmr.msra.gmra.mxu1 %vm1151_vm10, %v3500_v60  ;;  %2691 = vmatprep.subr.mxu1 %v2914_v18 }
 0x30d   : > { %2692 = vmatpush3.msra.mxu1 %v1345_v16  ;;  %2709 = vmatprep.mubr.msk.f32.mxu1 %vm2921_vm9, %v2914_v18 }
 0x30e   : > { %2693 = vmatprep.subr.mxu1 %v2914_v18  ;;  %2517 = vmatprep.mubr.msk.f32.mxu0 %vm654_vm3, %v3652_v5 }
 0x30f   : > { %2694 = vmatpush3.msra.mxu1 %v1337_v12 }
 0x310   : > { %2695 = vmatprep.subr.mxu1 %v2914_v18 }
 0x311   : > { %2696 = vmatpush3.msra.mxu1 %v1329_v31 }
 0x312   : > { %2697 = vmatprep.subr.mxu1 %v2914_v18 }
 0x313   : > { %2698 = vmatpush3.msra.mxu1 %v3412_v48  ;;  %v3582_v48 = vunpack.c.l.bf16 %v2538_v42 }
 0x314   : > { %2699 = vmatprep.subr.mxu1 %v2914_v18 }
 0x315   : > { %2700 = vmatpush3.msra.mxu1 %v3414_v49 }
 0x316   : > { %2701 = vmatprep.subr.mxu1 %v2914_v18 }
 0x317   : > { %2702 = vmatpush3.msra.mxu1 %v1145_v10 }
 0x318   : > { %2703 = vmatprep.subr.mxu1 %v2914_v18 }
 0x319   : > { %2704 = vmatpush3.msra.mxu1 %v3432_v46  ;;  %v1149_v46 = vpop.permute.xlu0 %1148 }
 0x31a   : > { %2705 = vmatprep.subr.mxu1 %v2914_v18 }
 0x31b   : > { %2706 = vmatpush3.msra.mxu1 %v3406_v20  ;;  %v2867_v20 = vpack.i.bf16 %v3570_v36, %v3572_v39 }
 0x31c   : > { %2707 = vmatprep.subr.mxu1 %v2914_v18 }
 0x31d   : > { %2708 = vmatpush3.msra.mxu1 %v1137_v51  ;;  %2868 = vrot.lane.b32.xlu1 %v2867_v20, %s2905_s30  ;;  %v3745_v51 = vld [vmem:[%s4100_s0 + $0x3] ss:$0 sm:$0xff] }
 0x31e   : > { %2710 = vmatmul.mubr.msk.f32.vlgmr.msra.gmra.mxu1 %vm1151_vm10, %v3500_v60  ;;  %1593 = vmatprep.subr.mxu1 %v2914_v18 }
 0x31f   : > { %2873 = vrot.lane.b32.xlu0 %v2867_v20, %s2904_s29  ;;  %2516 = vmatprep.mubr.msk.f32.mxu1 %vm654_vm3, %v3652_v5 }
 0x321   : > { %2878 = vrot.lane.b32.xlu1 %v2877_v47, %s2906_s11 }
 0x323   : > { %2883 = vrot.lane.b32.xlu0 %v2877_v47, %s2907_s12 }
 0x325   : > { %1682 = vrot.lane.b32.xlu1 %v3582_v48, %s2909_s15 }
 0x327   : > { %1688 = vrot.lane.b32.xlu0 %v3582_v48, %s2908_s14 }
 0x329   : > { %1501 = vrot.lane.b32.xlu1 %v3572_v39, %s2911_s17 }
 0x32b   : > { %1507 = vrot.lane.b32.xlu0 %v3572_v39, %s2910_s16 }
 0x38f   : > { %v3701_v7 = vpop.permute.xlu1 %2868 }
 0x390   : > { %v2870_v37 = vunpack.i.l.bf16 %v3701_v7  ;;  %v2871_v34 = vunpack.i.h.bf16 %v3701_v7 }
 0x391   : > { %v3703_v8 = vpop.permute.xlu0 %2873 }
 0x392   : > { %v2875_v40 = vunpack.i.l.bf16 %v3703_v8  ;;  %v2876_v20 = vunpack.i.h.bf16 %v3703_v8  ;;  %v3797_v8 = vld [vmem:[%s4100_s0 + $0x1] ss:$0 sm:$0xff] }
 0x393   : > { %v3705_v38 = vpop.permute.xlu1 %2878 }
 0x394   : > { %v1581_v25 = vsel %vm620_vm1, %v2870_v37, %v2875_v40  ;;  %v3820_v37 = vld [vmem:[%s4100_s0] ss:$0 sm:$0xff] }
 0x395   : > { %v3707_v9 = vpop.permute.xlu0 %2883  ;;  %v3751_v58 = vmul.f32 %v3745_v51, %v1581_v25  ;;  %v3830_v25 = vunpack.c.l.bf16 %v3649_v4 }
 0x397   : > { %v1683_v14 = vpop.permute.xlu1 %1682 }
 0x399   : > { %v1689_v15 = vpop.permute.xlu0 %1688 }
 0x39a   : > { %v1694_v23 = vsel %vm768_vm2, %v1683_v14, %v1689_v15 }
 0x39b   : > { %v3709_v19 = vpop.permute.xlu1 %1501  ;;  %v3721_v27 = vmul.f32 %v3718_v26, %v1694_v23 }
 0x39d   : > { %v3711_v21 = vpop.permute.xlu0 %1507 }
 0x3b8   : > { %v1317_v49 = vpop.f32.mrf.mxu0 }
 0x3b9   : > { %v1318_v59 = vadd.f32 %v1317_v49, %v1149_v46 }
 0x3ba   : > { %v2690_v45 = vpop.f32.mrf.mxu0 }
 0x3bb   : > { %v3605_v63 = vmax.f32 %v1318_v59, 0.0 }
 0x3ca   : > { %v1491_v50 = vpop.f32.mrf.mxu0 }
 0x3cb   : > { %v1492_v52 = vadd.f32 %v1491_v50, %v1149_v46 }
 0x3cc   : > { %v1221_v53 = vpop.f32.mrf.mxu1  ;;  %v2732_v55 = vpop.f32.mrf.mxu0 }
 0x3cd   : > { %v3594_v56 = vmax.f32 %v1492_v52, 0.0  ;;  %v1222_v57 = vadd.f32 %v1221_v53, %v1149_v46  ;;  %v1565_v52 = vsel %vm620_vm1, %v2871_v34, %v2876_v20  ;;  %v2880_v53 = vunpack.i.l.bf16 %v3705_v38 }
 0x3ce   : > { %v2669_v61 = vpop.f32.mrf.mxu1  ;;  %v2885_v55 = vunpack.i.l.bf16 %v3707_v9 }
 0x3cf   : > { %v3596_v62 = vmax.f32 %v1222_v57, 0.0  ;;  %1715 = vmatpush1.msra.mxu0 %v3594_v56  ;;  %v3786_v61 = vmul.f32 %v3745_v51, %v1565_v52 }
 0x3d0   : > { %1716 = vmatprep.subr.mxu0 %v2914_v18 }
 0x3d1   : > { %1690 = vrot.lane.b32.xlu0 %v3596_v62, %s2908_s14  ;;  %1684 = vrot.lane.b32.xlu1 %v3596_v62, %s2909_s15 }
 0x3d2   : > { %1717 = vmatpush1.msra.mxu0 %v3572_v39 }
 0x3d3   : > { %1718 = vmatprep.subr.mxu0 %v2914_v18 }
 0x3d5   : > { %1561 = vrot.lane.b32.xlu0 %v3605_v63, %s2904_s29  ;;  %1555 = vrot.lane.b32.xlu1 %v3605_v63, %s2905_s30 }
 0x3de   : > { %v1412_v0 = vpop.f32.mrf.mxu1 }
 0x3df   : > { %v1413_v1 = vadd.f32 %v1412_v0, %v1149_v46 }
 0x3e0   : > { %v2711_v2 = vpop.f32.mrf.mxu1 }
 0x3e1   : > { %v3612_v3 = vmax.f32 %v1413_v1, 0.0  ;;  %v2881_v1 = vunpack.i.h.bf16 %v3705_v38  ;;  %v2886_v2 = vunpack.i.h.bf16 %v3707_v9 }
 0x3e3   : > { %1594 = vmatpush1.msra.mxu1 %v3612_v3  ;;  %1719 = vmatpush1.msra.mxu0 %v3612_v3 }
 0x3e4   : > { %1527 = vrot.lane.b32.xlu0 %v3612_v3, %s2907_s12  ;;  %1521 = vrot.lane.b32.xlu1 %v3612_v3, %s2906_s11 }
 0x3e5   : > { %1720 = vmatprep.subr.mxu0 %v2914_v18  ;;  %1595 = vmatprep.subr.mxu1 %v2914_v18 }
 0x3e6   : > { %1721 = vmatpush1.msra.mxu0 %v3574_v44  ;;  %1596 = vmatpush1.msra.mxu1 %v3574_v44 }
 0x3e7   : > { %1722 = vmatprep.subr.mxu0 %v2914_v18  ;;  %1597 = vmatprep.subr.mxu1 %v2914_v18 }
 0x3e8   : > { %1577 = vrot.lane.b32.xlu0 %v3594_v56, %s2904_s29  ;;  %1571 = vrot.lane.b32.xlu1 %v3594_v56, %s2905_s30 }
 0x3ec   : > { %1672 = vrot.lane.b32.xlu0 %v3612_v3, %s2912_s18  ;;  %1666 = vrot.lane.b32.xlu1 %v3612_v3, %s2913_s19 }
 0x3f0   : > { %1670 = vrot.lane.b32.xlu0 %v3574_v44, %s2912_s18  ;;  %1664 = vrot.lane.b32.xlu1 %v3574_v44, %s2913_s19 }
 0x3f4   : > { %1809 = vrot.lane.b32.xlu0 %v3596_v62, %s2915_s25  ;;  %1803 = vrot.lane.b32.xlu1 %v3596_v62, %s2916_s26 }
 0x3f8   : > { %1543 = vrot.lane.b32.xlu0 %v3594_v56, %s2907_s12  ;;  %1537 = vrot.lane.b32.xlu1 %v3594_v56, %s2906_s11 }
 0x3fc   : > { %1807 = vrot.lane.b32.xlu0 %v3582_v48, %s2915_s25  ;;  %1801 = vrot.lane.b32.xlu1 %v3582_v48, %s2916_s26 }
 0x400   : > { %1509 = vrot.lane.b32.xlu0 %v3594_v56, %s2910_s16  ;;  %1503 = vrot.lane.b32.xlu1 %v3594_v56, %s2911_s17 }
 0x404   : > { %1793 = vrot.lane.b32.xlu0 %v3605_v63, %s4114_s21  ;;  %1787 = vrot.lane.b32.xlu1 %v3605_v63, %s4113_s22 }
 0x408   : > { %1791 = vrot.lane.b32.xlu0 %v3570_v36, %s4114_s21  ;;  %1785 = vrot.lane.b32.xlu1 %v3570_v36, %s4113_s22 }
 0x40c   : > { %1706 = vrot.lane.b32.xlu0 %v3612_v3, %s2908_s14  ;;  %1700 = vrot.lane.b32.xlu1 %v3612_v3, %s2909_s15 }
 0x410   : > { %1704 = vrot.lane.b32.xlu0 %v3574_v44, %s2908_s14  ;;  %1698 = vrot.lane.b32.xlu1 %v3574_v44, %s2909_s15 }
 0x414   : > { %1825 = vrot.lane.b32.xlu0 %v3605_v63, %s2915_s25  ;;  %1819 = vrot.lane.b32.xlu1 %v3605_v63, %s2916_s26 }
 0x418   : > { %1823 = vrot.lane.b32.xlu0 %v3570_v36, %s2915_s25  ;;  %1817 = vrot.lane.b32.xlu1 %v3570_v36, %s2916_s26 }
 0x41c   : > { %1912 = vrot.lane.b32.xlu0 %v3596_v62, %s2919_s23  ;;  %1906 = vrot.lane.b32.xlu1 %v3596_v62, %s4115_s28 }
 0x420   : > { %1904 = vrot.lane.b32.xlu1 %v3582_v48, %s4115_s28  ;;  %1910 = vrot.lane.b32.xlu0 %v3582_v48, %s2919_s23 }
 0x424   : > { %1587 = vperm.xlu1 %2866, %v508_v6   ;;  %v1547_v6 = vsel %vm407_vm0, %v2880_v53, %v2885_v55 }
 0x425   : > { %v1549_v38 = vmul.f32 %v3797_v8, %v1547_v6 }
 0x443   : > { %v1685_v60 = vpop.permute.xlu1 %1684  ;;  %v1691_v22 = vpop.permute.xlu0 %1690 }
 0x444   : > { %v1695_v24 = vsel %vm768_vm2, %v1685_v60, %v1691_v22  ;;  %v1531_v60 = vsel %vm407_vm0, %v2881_v1, %v2886_v2 }
 0x445   : > { %v3724_v28 = vmul.f32 %v3718_v26, %v1695_v24  ;;  %v1533_v24 = vmul.f32 %v3797_v8, %v1531_v60 }
 0x447   : > { %1723 = vmatpush1.msra.mxu0 %v3724_v28  ;;  %v1556_v13 = vpop.permute.xlu1 %1555  ;;  %v1562_v16 = vpop.permute.xlu0 %1561 }
 0x448   : > { %1724 = vmatprep.subr.mxu0 %v2914_v18  ;;  %v1566_v45 = vsel %vm620_vm1, %v1556_v13, %v1562_v16 }
 0x449   : > { %1725 = vmatpush1.msra.mxu0 %v3721_v27  ;;  %v3781_v57 = vmul.f32 %v3745_v51, %v1566_v45 }
 0x44a   : > { %1726 = vmatprep.subr.mxu0 %v2914_v18 }
 0x44b   : > { %1727 = vmatpush1.msra.mxu0 %v3605_v63 }
 0x44c   : > { %1728 = vmatprep.subr.mxu0 %v2914_v18 }
 0x44d   : > { %1729 = vmatpush1.msra.mxu0 %v3570_v36 }
 0x44e   : > { %1730 = vmatprep.subr.mxu0 %v2914_v18 }
 0x44f   : > { %1731 = vmatpush1.msra.mxu0 %v3596_v62 }
 0x450   : > { %1732 = vmatprep.subr.mxu0 %v2914_v18 }
 0x451   : > { %1733 = vmatpush1.msra.mxu0 %v3582_v48 }
 0x452   : > { %1734 = vmatprep.subr.mxu0 %v2914_v18 }
 0x456   : > { %v1522_v33 = vpop.permute.xlu1 %1521  ;;  %v1528_v12 = vpop.permute.xlu0 %1527 }
 0x457   : > { %v1532_v15 = vsel %vm407_vm0, %v1522_v33, %v1528_v12  ;;  %v1513_v33 = vsel %vm552_vm5, %v3709_v19, %v3711_v21 }
 0x458   : > { %v1534_v22 = vmul.f32 %v3797_v8, %v1532_v15  ;;  %v1515_v19 = vmul.f32 %v3820_v37, %v1513_v33 }
 0x45a   : > { %v1572_v10 = vpop.permute.xlu1 %1571  ;;  %v1578_v43 = vpop.permute.xlu0 %1577 }
 0x45b   : > { %v1582_v17 = vsel %vm620_vm1, %v1572_v10, %v1578_v43 }
 0x45c   : > { %v3748_v54 = vmul.f32 %v3745_v51, %v1582_v17 }
 0x45e   : > { %v1667_v11 = vpop.permute.xlu1 %1666  ;;  %1598 = vmatpush1.msra.mxu1 %v3748_v54  ;;  %v1673_v35 = vpop.permute.xlu0 %1672 }
 0x45f   : > { %v1677_v32 = vsel %vm741_vm4, %v1667_v11, %v1673_v35  ;;  %1599 = vmatprep.subr.mxu1 %v2914_v18 }
 0x460   : > { %v1679_v30 = vmul.f32 %v3759_v29, %v1677_v32  ;;  %1600 = vmatpush1.msra.mxu1 %v3751_v58  ;;  %v3838_v32 = vld [vmem:[%s4100_s0 + $0x7] ss:$0 sm:$0xff] }
 0x461   : > { %1601 = vmatprep.subr.mxu1 %v2914_v18 }
 0x462   : > { %v1665_v31 = vpop.permute.xlu1 %1664  ;;  %1735 = vmatpush1.msra.mxu0 %v1679_v30  ;;  %v1671_v42 = vpop.permute.xlu0 %1670  ;;  %1602 = vmatpush1.msra.mxu1 %v3605_v63 }
 0x463   : > { %v1676_v47 = vsel %vm741_vm4, %v1665_v31, %v1671_v42  ;;  %1603 = vmatprep.subr.mxu1 %v2914_v18  ;;  %1736 = vmatprep.subr.mxu0 %v2914_v18 }
 0x464   : > { %v1678_v49 = vmul.f32 %v3759_v29, %v1676_v47  ;;  %1604 = vmatpush1.msra.mxu1 %v3570_v36 }
 0x465   : > { %1605 = vmatprep.subr.mxu1 %v2914_v18 }
 0x466   : > { %v1804_v46 = vpop.permute.xlu1 %1803  ;;  %1737 = vmatpush1.msra.mxu0 %v1678_v49  ;;  %v1810_v50 = vpop.permute.xlu0 %1809  ;;  %1606 = vmatpush1.msra.mxu1 %v3596_v62  ;;  %v3854_v49 = vld [vmem:[%s4100_s0 + $0x6] ss:$0 sm:$0xff] }
 0x467   : > { %1607 = vmatprep.subr.mxu1 %v2914_v18  ;;  %1738 = vmatprep.subr.mxu0 %v2914_v18  ;;  %v1814_v43 = vsel %vm905_vm6, %v1804_v46, %v1810_v50 }
 0x468   : > { %1608 = vmatpush1.msra.mxu1 %v3582_v48  ;;  %v1816_v30 = vmul.f32 %v3838_v32, %v1814_v43 }
 0x469   : > { %1609 = vmatprep.subr.mxu1 %v2914_v18 }
 0x46a   : > { %v1538_v59 = vpop.permute.xlu1 %1537  ;;  %v1544_v0 = vpop.permute.xlu0 %1543  ;;  %1610 = vmatpush1.msra.mxu1 %v3781_v57 }
 0x46b   : > { %v1548_v7 = vsel %vm407_vm0, %v1538_v59, %v1544_v0  ;;  %1611 = vmatprep.subr.mxu1 %v2914_v18 }
 0x46c   : > { %v1550_v14 = vmul.f32 %v3797_v8, %v1548_v7  ;;  %1612 = vmatpush1.msra.mxu1 %v3786_v61 }
 0x46d   : > { %1613 = vmatprep.subr.mxu1 %v2914_v18 }
 0x46e   : > { %v1802_v9 = vpop.permute.xlu1 %1801  ;;  %1739 = vmatpush1.msra.mxu0 %v1550_v14  ;;  %v1808_v23 = vpop.permute.xlu0 %1807  ;;  %1614 = vmatpush1.msra.mxu1 %v1550_v14 }
 0x46f   : > { %1615 = vmatprep.subr.mxu1 %v2914_v18  ;;  %1740 = vmatprep.subr.mxu0 %v2914_v18  ;;  %v1813_v35 = vsel %vm905_vm6, %v1802_v9, %v1808_v23 }
 0x470   : > { %1616 = vmatpush1.msra.mxu1 %v1549_v38  ;;  %1741 = vmatpush1.msra.mxu0 %v1549_v38  ;;  %v1815_v31 = vmul.f32 %v3838_v32, %v1813_v35 }
 0x471   : > { %1617 = vmatprep.subr.mxu1 %v2914_v18  ;;  %1742 = vmatprep.subr.mxu0 %v2914_v18 }
 0x472   : > { %v1504_v13 = vpop.permute.xlu1 %1503  ;;  %v1510_v16 = vpop.permute.xlu0 %1509  ;;  %1618 = vmatpush1.msra.mxu1 %v1534_v22  ;;  %1743 = vmatpush1.msra.mxu0 %v1534_v22 }
 0x473   : > { %v1514_v12 = vsel %vm552_vm5, %v1504_v13, %v1510_v16  ;;  %1619 = vmatprep.subr.mxu1 %v2914_v18  ;;  %1744 = vmatprep.subr.mxu0 %v2914_v18 }
 0x474   : > { %v1516_v40 = vmul.f32 %v3820_v37, %v1514_v12  ;;  %1620 = vmatpush1.msra.mxu1 %v1533_v24  ;;  %1745 = vmatpush1.msra.mxu0 %v1533_v24 }
 0x475   : > { %1621 = vmatprep.subr.mxu1 %v2914_v18  ;;  %1774 = vmatprep.subr.mxu0 %v2914_v18 }
 0x476   : > { %v1788_v21 = vpop.permute.xlu1 %1787  ;;  %v1794_v10 = vpop.permute.xlu0 %1793  ;;  %1622 = vmatpush1.msra.mxu1 %v1516_v40  ;;  %v509_v40 = vld [vmem:[%s4109_s9 + $0x20] sm:$0xff] }
 0x477   : > { %1623 = vmatprep.subr.mxu1 %v2914_v18  ;;  %v1798_v4 = vsel %vm880_vm7, %v1788_v21, %v1794_v10 }
 0x478   : > { %1624 = vmatpush1.msra.mxu1 %v1515_v19  ;;  %v1800_v45 = vmul.f32 %v3854_v49, %v1798_v4 }
 0x479   : > { %1653 = vmatprep.subr.mxu1 %v2914_v18 }
 0x47a   : > { %v1786_v17 = vpop.permute.xlu1 %1785  ;;  %v1792_v11 = vpop.permute.xlu0 %1791  ;;  %1654 = vmatpush2.msra.mxu1 %v3594_v56 }
 0x47b   : > { %1655 = vmatprep.subr.mxu1 %v2914_v18  ;;  %v1797_v20 = vsel %vm880_vm7, %v1786_v17, %v1792_v11 }
 0x47c   : > { %1656 = vmatpush2.msra.mxu1 %v3572_v39  ;;  %v1799_v50 = vmul.f32 %v3854_v49, %v1797_v20 }
 0x47d   : > { %1658 = vmatmul.mubr.f32.vlgmr.msra.gmra.mxu1 %v3830_v25  ;;  %1833 = vmatprep.subr.mxu1 %v2914_v18 }
 0x47e   : > { %v1701_v42 = vpop.permute.xlu1 %1700  ;;  %v1707_v34 = vpop.permute.xlu0 %1706  ;;  %1834 = vmatpush1.msra.mxu1 %v1816_v30  ;;  %2518 = vmatprep.mubr.msk.f32.mxu1 %vm654_vm3, %v3652_v5 }
 0x47f   : > { %v1711_v47 = vsel %vm768_vm2, %v1701_v42, %v1707_v34  ;;  %1835 = vmatprep.subr.mxu1 %v2914_v18 }
 0x480   : > { %v1713_v46 = vmul.f32 %v3718_v26, %v1711_v47  ;;  %1836 = vmatpush1.msra.mxu1 %v1815_v31 }
 0x481   : > { %1837 = vmatprep.subr.mxu1 %v2914_v18 }
 0x482   : > { %v1699_v52 = vpop.permute.xlu1 %1698  ;;  %v1705_v53 = vpop.permute.xlu0 %1704  ;;  %1775 = vmatpush2.msra.mxu0 %v1713_v46  ;;  %1838 = vmatpush1.msra.mxu1 %v1800_v45 }
 0x483   : > { %v1710_v55 = vsel %vm768_vm2, %v1699_v52, %v1705_v53  ;;  %1839 = vmatprep.subr.mxu1 %v2914_v18  ;;  %1776 = vmatprep.subr.mxu0 %v2914_v18 }
 0x484   : > { %v1712_v59 = vmul.f32 %v3718_v26, %v1710_v55  ;;  %1840 = vmatpush1.msra.mxu1 %v1799_v50 }
 0x485   : > { %1841 = vmatprep.subr.mxu1 %v2914_v18 }
 0x486   : > { %v1820_v0 = vpop.permute.xlu1 %1819  ;;  %v1826_v1 = vpop.permute.xlu0 %1825  ;;  %1777 = vmatpush2.msra.mxu0 %v1712_v59  ;;  %1842 = vmatpush1.msra.mxu1 %v3594_v56 }
 0x487   : > { %v1830_v2 = vsel %vm905_vm6, %v1820_v0, %v1826_v1  ;;  %1779 = vmatmul.mubr.f32.vlgmr.msra.gmra.mxu0 %v3830_v25  ;;  %1843 = vmatprep.subr.mxu1 %v2914_v18 }
 0x488   : > { %v1832_v6 = vmul.f32 %v3838_v32, %v1830_v2  ;;  %1844 = vmatpush1.msra.mxu1 %v3572_v39  ;;  %1920 = vmatprep.subr.mxu0 %v2914_v18  ;;  %v2894_v2 = vld [vmem:[%s4100_s0 + $0x8] ss:$0 sm:$0xff] }
 0x489   : > { %1845 = vmatprep.subr.mxu1 %v2914_v18  ;;  %2519 = vmatprep.mubr.msk.f32.mxu0 %vm654_vm3, %v3652_v5 }
 0x48a   : > { %v1818_v7 = vpop.permute.xlu1 %1817  ;;  %v1824_v14 = vpop.permute.xlu0 %1823  ;;  %1846 = vmatpush1.msra.mxu1 %v3612_v3  ;;  %1921 = vmatpush1.msra.mxu0 %v1832_v6 }
 0x48b   : > { %v1829_v15 = vsel %vm905_vm6, %v1818_v7, %v1824_v14  ;;  %1847 = vmatprep.subr.mxu1 %v2914_v18  ;;  %1922 = vmatprep.subr.mxu0 %v2914_v18 }
 0x48c   : > { %v1831_v38 = vmul.f32 %v3838_v32, %v1829_v15  ;;  %1848 = vmatpush1.msra.mxu1 %v3574_v44 }
 0x48d   : > { %1849 = vmatprep.subr.mxu1 %v2914_v18 }
 0x48e   : > { %1850 = vmatpush1.msra.mxu1 %v3748_v54  ;;  %1923 = vmatpush1.msra.mxu0 %v1831_v38 }
 0x48f   : > { %1851 = vmatprep.subr.mxu1 %v2914_v18  ;;  %1924 = vmatprep.subr.mxu0 %v2914_v18 }
 0x490   : > { %1852 = vmatpush1.msra.mxu1 %v3751_v58  ;;  %1925 = vmatpush1.msra.mxu0 %v1816_v30 }
 0x491   : > { %1853 = vmatprep.subr.mxu1 %v2914_v18  ;;  %1926 = vmatprep.subr.mxu0 %v2914_v18 }
 0x492   : > { %1854 = vmatpush1.msra.mxu1 %v3605_v63  ;;  %1927 = vmatpush1.msra.mxu0 %v1815_v31 }
 0x493   : > { %1855 = vmatprep.subr.mxu1 %v2914_v18  ;;  %1928 = vmatprep.subr.mxu0 %v2914_v18 }
 0x494   : > { %1856 = vmatpush1.msra.mxu1 %v3570_v36  ;;  %1929 = vmatpush1.msra.mxu0 %v1713_v46  ;;  %v1991_v46 = vld [vmem:[%s4108_s8] sm:$0xf] }
 0x495   : > { %1857 = vmatprep.subr.mxu1 %v2914_v18  ;;  %1930 = vmatprep.subr.mxu0 %v2914_v18  ;;  %v4027_v0 = vunpack.c.l.bf16 %v1991_v46 }
 0x496   : > { %1858 = vmatpush1.msra.mxu1 %v3596_v62  ;;  %1931 = vmatpush1.msra.mxu0 %v1712_v59 }
 0x497   : > { %1859 = vmatprep.subr.mxu1 %v2914_v18  ;;  %1932 = vmatprep.subr.mxu0 %v2914_v18 }
 0x498   : > { %1860 = vmatpush1.msra.mxu1 %v3582_v48  ;;  %1933 = vmatpush1.msra.mxu0 %v3594_v56  ;;  %v1907_v56 = vpop.permute.xlu1 %1906 }
 0x499   : > { %1861 = vmatprep.subr.mxu1 %v2914_v18  ;;  %1934 = vmatprep.subr.mxu0 %v2914_v18 }
 0x49a   : > { %1862 = vmatpush1.msra.mxu1 %v3781_v57  ;;  %1935 = vmatpush1.msra.mxu0 %v3572_v39  ;;  %v1913_v39 = vpop.permute.xlu0 %1912 }
 0x49b   : > { %1863 = vmatprep.subr.mxu1 %v2914_v18  ;;  %1936 = vmatprep.subr.mxu0 %v2914_v18  ;;  %v1917_v5 = vsel %vm1017_vm8, %v1907_v56, %v1913_v39 }
 0x49c   : > { %1864 = vmatpush1.msra.mxu1 %v3786_v61  ;;  %1937 = vmatpush1.msra.mxu0 %v3612_v3  ;;  %v1905_v3 = vpop.permute.xlu1 %1904 }
 0x49d   : > { %1893 = vmatprep.subr.mxu1 %v2914_v18  ;;  %1938 = vmatprep.subr.mxu0 %v2914_v18 }
 0x49e   : > { %1894 = vmatpush2.msra.mxu1 %v1832_v6  ;;  %1939 = vmatpush1.msra.mxu0 %v3574_v44  ;;  %v1911_v44 = vpop.permute.xlu0 %1910 }
 0x49f   : > { %1895 = vmatprep.subr.mxu1 %v2914_v18  ;;  %1940 = vmatprep.subr.mxu0 %v2914_v18 }
 0x4a0   : > { %1896 = vmatpush2.msra.mxu1 %v1831_v38  ;;  %1941 = vmatpush1.msra.mxu0 %v3724_v28  ;;  %v1919_v28 = vmul.f32 %v3395_v41, %v1917_v5 }
 0x4a1   : > { %1898 = vmatmul.mubr.f32.vlgmr.msra.gmra.mxu1 %v3830_v25  ;;  %1942 = vmatprep.subr.mxu0 %v2914_v18 }
 0x4a2   : > { %1943 = vmatpush1.msra.mxu0 %v3721_v27  ;;  %2733 = vmatprep.subr.mxu1 %v2914_v18  ;;  %v1916_v27 = vsel %vm1017_vm8, %v1905_v3, %v1911_v44 }
 0x4a3   : > { %1944 = vmatprep.subr.mxu0 %v2914_v18  ;;  %2751 = vmatprep.mubr.msk.f32.mxu1 %vm2921_vm9, %v2914_v18 }
 0x4a4   : > { %1945 = vmatpush1.msra.mxu0 %v3605_v63  ;;  %v1918_v63 = vmul.f32 %v3395_v41, %v1916_v27 }
 0x4a5   : > { %1946 = vmatprep.subr.mxu0 %v2914_v18 }
 0x4a6   : > { %1947 = vmatpush1.msra.mxu0 %v3570_v36  ;;  %v1588_v36 = vpop.permute.xlu1 %1587 }
 0x4a7   : > { %1948 = vmatprep.subr.mxu0 %v2914_v18 }
 0x4a8   : > { %1949 = vmatpush1.msra.mxu0 %v3596_v62 }
 0x4a9   : > { %1950 = vmatprep.subr.mxu0 %v2914_v18 }
 0x4aa   : > { %1951 = vmatpush1.msra.mxu0 %v3582_v48 }
 0x4ab   : > { %1980 = vmatprep.subr.mxu0 %v2914_v18 }
 0x4ac   : > { %1981 = vmatpush2.msra.mxu0 %v1919_v28 }
 0x4ad   : > { %1982 = vmatprep.subr.mxu0 %v2914_v18 }
 0x4ae   : > { %1983 = vmatpush2.msra.mxu0 %v1918_v63 }
 0x4af   : > { %1985 = vmatmul.mubr.f32.vlgmr.msra.gmra.mxu0 %v3830_v25  ;;  %2754 = vmatprep.subr.mxu0 %v2914_v18 }
 0x4b0   : > { %2772 = vmatprep.mubr.msk.f32.mxu0 %vm2921_vm9, %v2914_v18 }
 0x53d   : > { %v1659_v62 = vpop.f32.mrf.mxu1 }
 0x53e   : > { %v1660_v54 = vadd.f32 %v1659_v62, %v1588_v36 }
 0x53f   : > { %v1661_v58 = vpop.f32.mrf.mxu1 }
 0x540   : > { %v3937_v41 = vmax.f32 %v1660_v54, 0.0 }
 0x542   : > { %2127 = vrot.lane.b32.xlu1 %v3937_v41, %s2908_s14  ;;  %2124 = vrot.lane.b32.xlu0 %v3937_v41, %s2909_s15 }
 0x547   : > { %v1780_v48 = vpop.f32.mrf.mxu0 }
 0x548   : > { %v1781_v33 = vadd.f32 %v1780_v48, %v1588_v36 }
 0x549   : > { %v1782_v57 = vpop.f32.mrf.mxu0 }
 0x54a   : > { %v3971_v12 = vmax.f32 %v1781_v33, 0.0 }
 0x561   : > { %v1899_v61 = vpop.f32.mrf.mxu1 }
 0x562   : > { %v1900_v9 = vadd.f32 %v1899_v61, %v1588_v36 }
 0x563   : > { %v1901_v23 = vpop.f32.mrf.mxu1 }
 0x564   : > { %v3943_v60 = vmax.f32 %v1900_v9, 0.0 }
 0x566   : > { %2135 = vrot.lane.b32.xlu1 %v3943_v60, %s2908_s14  ;;  %2132 = vrot.lane.b32.xlu0 %v3943_v60, %s2909_s15 }
 0x56f   : > { %v1986_v22 = vpop.f32.mrf.mxu0 }
 0x570   : > { %v1987_v24 = vadd.f32 %v1986_v22, %v1588_v36 }
 0x571   : > { %v1988_v13 = vpop.f32.mrf.mxu0 }
 0x572   : > { %v3949_v16 = vmax.f32 %v1987_v24, 0.0 }
 0x574   : > { %2734 = vmatpush3.msra.mxu1 %v3949_v16  ;;  %2014 = vrot.lane.b32.xlu1 %v3949_v16, %s2907_s12 }
 0x575   : > { %2011 = vrot.lane.b32.xlu0 %v3949_v16, %s2906_s11  ;;  %2735 = vmatprep.subr.mxu1 %v2914_v18 }
 0x576   : > { %2736 = vmatpush3.msra.mxu1 %v3943_v60 }
 0x577   : > { %2737 = vmatprep.subr.mxu1 %v2914_v18 }
 0x578   : > { %2309 = vrot.lane.b32.xlu1 %v3937_v41, %s2919_s23 }
 0x579   : > { %2306 = vrot.lane.b32.xlu0 %v3937_v41, %s4115_s28 }
 0x57c   : > { %2118 = vrot.lane.b32.xlu1 %v3943_v60, %s2912_s18  ;;  %s2922_s18 = smov 64  }
 0x57d   : > { %2115 = vrot.lane.b32.xlu0 %v3943_v60, %s2913_s19 }
 0x580   : > { %2006 = vrot.lane.b32.xlu1 %v3943_v60, %s2907_s12  ;;  %s4117_s12 = smov 121  }
 0x581   : > { %2003 = vrot.lane.b32.xlu0 %v3943_v60, %s2906_s11  ;;  %s4116_s11 = smov 57  }
 0x584   : > { %2230 = vrot.lane.b32.xlu1 %v3971_v12, %s2915_s25 }
 0x585   : > { %2227 = vrot.lane.b32.xlu0 %v3971_v12, %s2916_s26 }
 0x588   : > { %2222 = vrot.lane.b32.xlu1 %v3937_v41, %s2915_s25 }
 0x589   : > { %2219 = vrot.lane.b32.xlu0 %v3937_v41, %s2916_s26  ;;  %s396_s26 = scalar_lea.vmem %s4110_s10, %s2993_s20 }
 0x58c   : > { %2031 = vrot.lane.b32.xlu1 %v3949_v16, %s2904_s29 }
 0x58d   : > { %2028 = vrot.lane.b32.xlu0 %v3949_v16, %s2905_s30 }
 0x590   : > { %2023 = vrot.lane.b32.xlu1 %v3971_v12, %s2904_s29 }
 0x591   : > { %2020 = vrot.lane.b32.xlu0 %v3971_v12, %s2905_s30 }
 0x594   : > { %1997 = vrot.lane.b32.xlu1 %v3949_v16, %s2910_s16 }
 0x595   : > { %1994 = vrot.lane.b32.xlu0 %v3949_v16, %s2911_s17 }
 0x598   : > { %2214 = vrot.lane.b32.xlu1 %v3971_v12, %s4116_s11 }
 0x599   : > { %2211 = vrot.lane.b32.xlu0 %v3971_v12, %s4117_s12 }
 0x59d   : > { %2038 = vperm.xlu0 %2845, %v509_v40  }
 0x5b4   : > { %v2128_v19 = vpop.permute.xlu1 %2127  ;;  %v2125_v21 = vpop.permute.xlu0 %2124 }
 0x5b5   : > { %v2130_v11 = vsel %vm768_vm2, %v2125_v21, %v2128_v19 }
 0x5b6   : > { %v4007_v35 = vmul.f32 %v3718_v26, %v2130_v11 }
 0x5d8   : > { %v2136_v10 = vpop.permute.xlu1 %2135  ;;  %v2133_v43 = vpop.permute.xlu0 %2132 }
 0x5d9   : > { %v2138_v25 = vsel %vm768_vm2, %v2133_v43, %v2136_v10 }
 0x5da   : > { %v2139_v17 = vmul.f32 %v3718_v26, %v2138_v25 }
 0x5dc   : > { %2755 = vmatpush3.msra.mxu0 %v2139_v17 }
 0x5dd   : > { %2756 = vmatprep.subr.mxu0 %v2914_v18 }
 0x5de   : > { %2757 = vmatpush3.msra.mxu0 %v3949_v16 }
 0x5df   : > { %2758 = vmatprep.subr.mxu0 %v2914_v18 }
 0x5e0   : > { %2759 = vmatpush3.msra.mxu0 %v3943_v60 }
 0x5e1   : > { %2760 = vmatprep.subr.mxu0 %v2914_v18 }
 0x5e2   : > { %2761 = vmatpush3.msra.mxu0 %v4007_v35 }
 0x5e3   : > { %2762 = vmatprep.subr.mxu0 %v2914_v18 }
 0x5e4   : > { %2763 = vmatpush3.msra.mxu0 %v3971_v12 }
 0x5e5   : > { %2764 = vmatprep.subr.mxu0 %v2914_v18 }
 0x5e6   : > { %v2015_v30 = vpop.permute.xlu1 %2014  ;;  %2765 = vmatpush3.msra.mxu0 %v3937_v41 }
 0x5e7   : > { %v2012_v4 = vpop.permute.xlu0 %2011  ;;  %2766 = vmatprep.subr.mxu0 %v2914_v18 }
 0x5e8   : > { %v2017_v20 = vsel %vm407_vm0, %v2012_v4, %v2015_v30 }
 0x5e9   : > { %v2018_v52 = vmul.f32 %v3797_v8, %v2017_v20 }
 0x5ea   : > { %v2310_v26 = vpop.permute.xlu1 %2309 }
 0x5eb   : > { %v2307_v31 = vpop.permute.xlu0 %2306 }
 0x5ec   : > { %v2312_v55 = vsel %vm1017_vm8, %v2307_v31, %v2310_v26 }
 0x5ed   : > { %v2313_v6 = vmul.f32 %v2894_v2, %v2312_v55 }
 0x5ee   : > { %v2119_v42 = vpop.permute.xlu1 %2118 }
 0x5ef   : > { %v2116_v34 = vpop.permute.xlu0 %2115 }
 0x5f0   : > { %v2121_v47 = vsel %vm741_vm4, %v2116_v34, %v2119_v42 }
 0x5f1   : > { %v2122_v45 = vmul.f32 %v3759_v29, %v2121_v47 }
 0x5f2   : > { %v2007_v50 = vpop.permute.xlu1 %2006 }
 0x5f3   : > { %2767 = vmatpush3.msra.mxu0 %v2122_v45  ;;  %v2004_v53 = vpop.permute.xlu0 %2003 }
 0x5f4   : > { %v2009_v59 = vsel %vm407_vm0, %v2004_v53, %v2007_v50  ;;  %2768 = vmatprep.subr.mxu0 %v2914_v18 }
 0x5f5   : > { %v2010_v1 = vmul.f32 %v3797_v8, %v2009_v59  ;;  %2769 = vmatpush3.msra.mxu0 %v2018_v52 }
 0x5f6   : > { %2770 = vmatprep.subr.mxu0 %v2914_v18  ;;  %v2231_v29 = vpop.permute.xlu1 %2230 }
 0x5f7   : > { %2771 = vmatpush3.msra.mxu0 %v2010_v1  ;;  %v2228_v7 = vpop.permute.xlu0 %2227 }
 0x5f8   : > { %v2233_v14 = vsel %vm905_vm6, %v2228_v7, %v2231_v29  ;;  %2773 = vmatmul.mubr.msk.f32.vlgmr.msra.gmra.mxu0 %vm1151_vm10, %v4027_v0  ;;  %2796 = vmatprep.subr.mxu0 %v2914_v18 }
 0x5f9   : > { %v2234_v8 = vmul.f32 %v3838_v32, %v2233_v14  ;;  %2797 = vmatpush3.msra.mxu0 %v2313_v6  ;;  %2814 = vmatprep.mubr.msk.f32.mxu0 %vm2921_vm9, %v2914_v18 }
 0x5fa   : > { %2798 = vmatprep.subr.mxu0 %v2914_v18  ;;  %v2223_v15 = vpop.permute.xlu1 %2222 }
 0x5fb   : > { %2799 = vmatpush3.msra.mxu0 %v2234_v8  ;;  %v2220_v38 = vpop.permute.xlu0 %2219 }
 0x5fc   : > { %v2225_v39 = vsel %vm905_vm6, %v2220_v38, %v2223_v15  ;;  %2800 = vmatprep.subr.mxu0 %v2914_v18 }
 0x5fd   : > { %v2226_v56 = vmul.f32 %v3838_v32, %v2225_v39 }
 0x5fe   : > { %v2032_v44 = vpop.permute.xlu1 %2031 }
 0x5ff   : > { %2801 = vmatpush3.msra.mxu0 %v2226_v56  ;;  %v2029_v3 = vpop.permute.xlu0 %2028 }
 0x600   : > { %v2034_v5 = vsel %vm620_vm1, %v2029_v3, %v2032_v44  ;;  %2802 = vmatprep.subr.mxu0 %v2914_v18 }
 0x601   : > { %v2035_v27 = vmul.f32 %v3745_v51, %v2034_v5  ;;  %2803 = vmatpush3.msra.mxu0 %v2139_v17 }
 0x602   : > { %2804 = vmatprep.subr.mxu0 %v2914_v18  ;;  %v2024_v28 = vpop.permute.xlu1 %2023 }
 0x603   : > { %2738 = vmatpush3.msra.mxu1 %v2035_v27  ;;  %2805 = vmatpush3.msra.mxu0 %v3949_v16  ;;  %v2021_v63 = vpop.permute.xlu0 %2020 }
 0x604   : > { %v2026_v36 = vsel %vm620_vm1, %v2021_v63, %v2024_v28  ;;  %2739 = vmatprep.subr.mxu1 %v2914_v18  ;;  %2806 = vmatprep.subr.mxu0 %v2914_v18 }
 0x605   : > { %2740 = vmatpush3.msra.mxu1 %v3971_v12  ;;  %2807 = vmatpush3.msra.mxu0 %v3943_v60  ;;  %v2027_v32 = vmul.f32 %v3745_v51, %v2026_v36 }
 0x606   : > { %2741 = vmatprep.subr.mxu1 %v2914_v18  ;;  %2808 = vmatprep.subr.mxu0 %v2914_v18  ;;  %v1998_v62 = vpop.permute.xlu1 %1997 }
 0x607   : > { %2742 = vmatpush3.msra.mxu1 %v3937_v41  ;;  %2809 = vmatpush3.msra.mxu0 %v4007_v35  ;;  %v1995_v54 = vpop.permute.xlu0 %1994 }
 0x608   : > { %2743 = vmatprep.subr.mxu1 %v2914_v18  ;;  %2810 = vmatprep.subr.mxu0 %v2914_v18  ;;  %v2000_v58 = vsel %vm552_vm5, %v1995_v54, %v1998_v62 }
 0x609   : > { %2744 = vmatpush3.msra.mxu1 %v2027_v32  ;;  %2811 = vmatpush3.msra.mxu0 %v3971_v12  ;;  %v2001_v51 = vmul.f32 %v3820_v37, %v2000_v58 }
 0x60a   : > { %2745 = vmatprep.subr.mxu1 %v2914_v18  ;;  %2812 = vmatprep.subr.mxu0 %v2914_v18  ;;  %v2215_v48 = vpop.permute.xlu1 %2214 }
 0x60b   : > { %2746 = vmatpush3.msra.mxu1 %v2018_v52  ;;  %2813 = vmatpush3.msra.mxu0 %v3937_v41  ;;  %v2212_v57 = vpop.permute.xlu0 %2211 }
 0x60c   : > { %2747 = vmatprep.subr.mxu1 %v2914_v18  ;;  %2815 = vmatmul.mubr.msk.f32.vlgmr.msra.gmra.mxu0 %vm1151_vm10, %v4027_v0  ;;  %v2217_v61 = vsel %vm880_vm7, %v2212_v57, %v2215_v48 }
 0x60d   : > { %2748 = vmatpush3.msra.mxu1 %v2010_v1  ;;  %v2218_v37 = vmul.f32 %v3854_v49, %v2217_v61 }
 0x60e   : > { %2749 = vmatprep.subr.mxu1 %v2914_v18 }
 0x60f   : > { %2750 = vmatpush3.msra.mxu1 %v2001_v51 }
 0x610   : > { %2752 = vmatmul.mubr.msk.f32.vlgmr.msra.gmra.mxu1 %vm1151_vm10, %v4027_v0  ;;  %2775 = vmatprep.subr.mxu1 %v2914_v18 }
 0x611   : > { %2776 = vmatpush3.msra.mxu1 %v2234_v8  ;;  %2793 = vmatprep.mubr.msk.f32.mxu1 %vm2921_vm9, %v2914_v18 }
 0x612   : > { %2777 = vmatprep.subr.mxu1 %v2914_v18 }
 0x613   : > { %2778 = vmatpush3.msra.mxu1 %v2226_v56 }
 0x614   : > { %2779 = vmatprep.subr.mxu1 %v2914_v18 }
 0x615   : > { %2780 = vmatpush3.msra.mxu1 %v2218_v37 }
 0x616   : > { %2781 = vmatprep.subr.mxu1 %v2914_v18 }
 0x617   : > { %2782 = vmatpush3.msra.mxu1 %v3949_v16 }
 0x618   : > { %2783 = vmatprep.subr.mxu1 %v2914_v18  ;;  %v2039_v49 = vpop.permute.xlu0 %2038 }
 0x619   : > { %2784 = vmatpush3.msra.mxu1 %v3943_v60 }
 0x61a   : > { %2785 = vmatprep.subr.mxu1 %v2914_v18 }
 0x61b   : > { %2786 = vmatpush3.msra.mxu1 %v2035_v27 }
 0x61c   : > { %2787 = vmatprep.subr.mxu1 %v2914_v18 }
 0x61d   : > { %2788 = vmatpush3.msra.mxu1 %v3971_v12 }
 0x61e   : > { %2789 = vmatprep.subr.mxu1 %v2914_v18 }
 0x61f   : > { %2790 = vmatpush3.msra.mxu1 %v3937_v41 }
 0x620   : > { %2791 = vmatprep.subr.mxu1 %v2914_v18 }
 0x621   : > { %2792 = vmatpush3.msra.mxu1 %v2027_v32 }
 0x622   : > { %2794 = vmatmul.mubr.msk.f32.vlgmr.msra.gmra.mxu1 %vm1151_vm10, %v4027_v0 }
 0x6b8   : > { %v2206_v9 = vpop.f32.mrf.mxu0 }
 0x6b9   : > { %v2207_v23 = vadd.f32 %v2206_v9, %v2039_v49 }
 0x6ba   : > { %v2774_v60 = vpop.f32.mrf.mxu0 }
 0x6bb   : > { %v2210_v22 = vmax.f32 %v2207_v23, 0.0 }
 0x6bd   : > { %2386 = vrot.lane.b32.xlu1 %v2210_v22, %s2922_s18 }
 0x6cc   : > { %v2380_v24 = vpop.f32.mrf.mxu0 }
 0x6cd   : > { %v2381_v13 = vadd.f32 %v2380_v24, %v2039_v49 }
 0x6ce   : > { %v2816_v16 = vpop.f32.mrf.mxu0 }
 0x6cf   : > { %v2384_v33 = vmax.f32 %v2381_v13, 0.0 }
 0x6d0   : > { %v2110_v12 = vpop.f32.mrf.mxu1 }
 0x6d1   : > { %2390 = vrot.lane.b32.xlu0 %v2384_v33, %s2922_s18  ;;  %v2111_v19 = vadd.f32 %v2110_v12, %v2039_v49 }
 0x6d2   : > { %v2753_v41 = vpop.f32.mrf.mxu1 }
 0x6d3   : > { %v2114_v21 = vmax.f32 %v2111_v19, 0.0 }
 0x6e2   : > { %v2301_v18 = vpop.f32.mrf.mxu1 }
 0x6e3   : > { %v2302_v25 = vadd.f32 %v2301_v18, %v2039_v49 }
 0x6e4   : > { %v2795_v40 = vpop.f32.mrf.mxu1 }
 0x6e5   : > { %v2305_v17 = vmax.f32 %v2302_v25, 0.0 }
 0x72f   : > { %v2387_v10 = vpop.permute.xlu1 %2386 }
 0x730   : > { %v2394_v43 = vsel %vm2393_vm11, %v2114_v21, %v2387_v10 }
 0x731   : > { %2396 = vst [vmem:[%s396_s26] sm:$0xff] %v2394_v43 }
 0x743   : > { %v2391_v11 = vpop.permute.xlu0 %2390 }
 0x744   : > { %v2395_v35 = vsel %vm2393_vm11, %v2305_v17, %v2391_v11 }
 0x745   : > { %2397 = vst [vmem:[%s396_s26 + $0x8] sm:$0xff] %v2395_v35 }
 0x746 PF: > { %s20_s13 = sadd.s32 1, %s2901_s13  }
 0x747   : > { %p17_p4 = scmp.ge.s32.totalorder %s20_s13, 4  }
 0x749   :  { %19 = sbr.rel (!%p17_p4) target bundleno = 1 (0x1), region = 103 }

</bundles_post_ra>
